<compile_context>
chip_gen: v7x
topology: tpu7x:2x2x1
jax: 0.10.0
libtpu: 0.0.40
codegen_flags: <defaults>
</compile_context>

<pallas_src>
import jax
import jax.numpy as jnp
from jax import lax
from jax.experimental import pallas as pl
from jax.experimental.pallas import tpu as pltpu

# ---------------------------------------------------------------------------
# Static sizes implied by the module (Conv2d(3,16,5), fc1 = Linear(12*12*16,100))
# ---------------------------------------------------------------------------
H_IN, W_IN, C_IN = 28, 28, 3
KH, KW = 5, 5
C_OUT = 16
H_CONV, W_CONV = H_IN - KH + 1, W_IN - KW + 1      # 24, 24
H_POOL, W_POOL = H_CONV // 2, W_CONV // 2          # 12, 12
F1_OUT, F2_OUT = 100, 18
FC_PAD = 128                                       # lane-dense padded fc width

J_CAP = 16                                         # pooled-width capacity (lane align)
LANE_Q = J_CAP * C_OUT                             # 256 lanes per pooling "quadrant"
N_CONV = 4 * LANE_Q                                # 1024 conv lanes: (hp, wp, j, c)
WIN_ROWS = KH + 1                                  # 6 input rows per pooled output row
K_IM2COL = WIN_ROWS * W_IN * C_IN                  # 504 = conv matmul K
UCOLS = H_POOL * F1_OUT                            # 1200 fc1 staged columns: i*100+o


# ---------------------------------------------------------------------------
# The fused kernel: one grid step == B images, M = B*12 rows everywhere
# ---------------------------------------------------------------------------
def _net_kernel(x_ref, r_ref, cb_ref, v_ref, rg_ref, cg_ref, sel_ref,
                f_ref, b1_ref, w2_ref, b2_ref, o_ref):
    bf16 = jnp.bfloat16

    # ---- conv1 (+ bias + ReLU): ONE bf16 MXU matmul --------------------------
    # rows = (image, pooled-row i); lanes = (h_parity, w_parity, j, c_out)
    lhs = x_ref[...].astype(bf16)                                      # (B*12, 504)
    acc = jnp.dot(lhs, r_ref[...], preferred_element_type=jnp.float32)  # (B*12, 1024)
    acc = jnp.maximum(acc + cb_ref[...], 0.0)

    # ---- 2x2 / stride-2 max pool: aligned-quadrant element-wise maxes --------
    # The four elements of each pooling window sit at the same (j, c) offset in
    # four 256-lane (vreg-aligned) quadrants of the same row -> zero data movement.
    s = jnp.maximum(
        jnp.maximum(acc[:, 0 * LANE_Q:1 * LANE_Q], acc[:, 1 * LANE_Q:2 * LANE_Q]),
        jnp.maximum(acc[:, 2 * LANE_Q:3 * LANE_Q], acc[:, 3 * LANE_Q:4 * LANE_Q]))

    # ---- fc1 (staged) ---------------------------------------------------------
    # u[(b,i'), i*100+o] = <s[(b,i'), :], vcat[:, i*100+o]>; keep only i == i'
    # (broadcast compare of two tiny vectors), segment-sum the 12 rows of each
    # image with the `sel` matmul, then fold (i, o) -> o with the `fold` matmul.
    u = jnp.dot(s.astype(bf16), v_ref[...],
                preferred_element_type=jnp.float32)                    # (B*12, 1200)
    u = jnp.where(rg_ref[...] == cg_ref[...], u, 0.0).astype(bf16)
    z = jnp.dot(sel_ref[...], u, preferred_element_type=jnp.float32)   # (B, 1200)
    y1 = jnp.dot(z.astype(bf16), f_ref[...],
                 preferred_element_type=jnp.float32)                   # (B, 128)
    y1 = jnp.maximum(y1 + b1_ref[...], 0.0)

    # ---- fc2 (zero-padded to 128 lanes; real logits live in [:, :18]) --------
    o_ref[...] = jnp.dot(y1.astype(bf16), w2_ref[...],
                         preferred_element_type=jnp.float32) + b2_ref[...]


# ---------------------------------------------------------------------------
# One-time (host side) parameter preparation: conv-as-one-matmul weights with
# the (hp, wp, j, c) lane layout, and permuted / zero-expanded, lane-padded fc
# weights.  Numerically a pure re-indexing (exact).
# ---------------------------------------------------------------------------
def prepare_kernel_params(params):
    f32, bf16 = jnp.float32, jnp.bfloat16
    conv_w = params["conv1_w"].astype(f32)     # (16, 3, 5, 5)  (c_out, c_in, kh, kw)
    conv_b = params["conv1_b"].astype(f32)     # (16,)
    fc1_w = params["fc1_w"].astype(f32)        # (2304, 100), rows = torch (c,h,w) flatten
    fc1_b = params["fc1_b"].astype(f32)        # (100,)
    fc2_w = params["fc2_w"].astype(f32)        # (100, 18)
    fc2_b = params["fc2_b"].astype(f32)        # (18,)

    # Conv as one matmul.  K index: k = e*84 + v*3 + ci  (e = row within the
    # 6-row window, v = input column, ci = input channel).  Lane index:
    # lane = hp*512 + wp*256 + j*16 + c  (hp/wp = pooling parity, j = pooled
    # column (12 used of 16), c = conv output channel).
    e = jnp.arange(WIN_ROWS)
    hp = jnp.arange(2)
    v = jnp.arange(W_IN)
    j = jnp.arange(J_CAP)
    wp = jnp.arange(2)

    dh = e[:, None] - hp[None, :]                                     # (6, 2)
    dh_ok = (dh >= 0) & (dh < KH)
    dw = v[:, None, None] - (2 * j[None, :, None] + wp[None, None, :])  # (28, 16, 2)
    dw_ok = (dw >= 0) & (dw < KW) & (j[None, :, None] < W_POOL)

    g = conv_w[:, :, jnp.clip(dh, 0, KH - 1), :]          # (c, ci, e, hp, kw)
    g = g[..., jnp.clip(dw, 0, KW - 1)]                   # (c, ci, e, hp, v, j, wp)
    ok = (dh_ok[None, None, :, :, None, None, None]
          & dw_ok[None, None, None, None, :, :, :])
    g = jnp.where(ok, g, 0.0)
    r_mat = jnp.transpose(g, (2, 4, 1, 3, 6, 5, 0)).reshape(K_IM2COL, N_CONV)

    cb = jnp.where(j[:, None] < W_POOL, conv_b[None, :], 0.0)         # (16 j, 16 c)
    cb = jnp.tile(cb.reshape(1, LANE_Q), (1, 4))                      # (1, 1024)

    # fc1 rows permuted from torch (c, i, j) order onto the pooled lane layout
    # (j, c); unused j >= 12 rows stay zero (they annihilate pooling fillers).
    w1 = fc1_w.reshape(C_OUT, H_POOL, W_POOL, F1_OUT)                 # (c, i, j, o)
    vcat = jnp.zeros((J_CAP, C_OUT, H_POOL, F1_OUT), f32)             # (j, c, i, o)
    vcat = vcat.at[:W_POOL].set(jnp.transpose(w1, (2, 0, 1, 3)))
    vcat = vcat.reshape(LANE_Q, UCOLS)                                # (256, 1200)

    fold = jnp.tile(jnp.eye(F1_OUT, dtype=f32), (H_POOL, 1))          # (1200, 100)
    fold = jnp.pad(fold, ((0, 0), (0, FC_PAD - F1_OUT)))              # (1200, 128)

    b1 = jnp.pad(fc1_b, (0, FC_PAD - F1_OUT)).reshape(1, FC_PAD)
    w2 = jnp.pad(fc2_w, ((0, FC_PAD - F1_OUT), (0, FC_PAD - F2_OUT)))  # (128, 128)
    b2 = jnp.pad(fc2_b, (0, FC_PAD - F2_OUT)).reshape(1, FC_PAD)

    return {"r_mat": r_mat.astype(bf16), "conv_b_row": cb.astype(f32),
            "vcat": vcat.astype(bf16), "fold": fold.astype(bf16),
            "b1": b1.astype(f32), "w2": w2.astype(bf16), "b2": b2.astype(f32)}


# ---------------------------------------------------------------------------
# Forward pass: one fused pallas_call over batch tiles of B images
# ---------------------------------------------------------------------------
def net_forward(x_nchw, kparams, batch_tile=16):
    # batch_tile: 16 fits comfortably on every generation (v7x's 64 MiB VMEM
    # included); 32 is also fine on v5e/v6e if you want more MXU rows per step.
    n = x_nchw.shape[0]
    b = min(batch_tile, n)
    b = b + (b % 2)                        # even -> (b*12) % 8 == 0 for the BlockSpec
    n_pad = -(-n // b) * b
    x = jnp.pad(x_nchw.astype(jnp.float32),
                ((0, n_pad - n), (0, 0), (0, 0), (0, 0)))

    # Layout glue only (XLA side): NCHW -> rows (h, w*3+ci), then the 6
    # overlapping input rows feeding each pooled output row are flattened into
    # the matmul K dimension -> (n_pad*12, 504).
    x_rows = jnp.transpose(x, (0, 2, 3, 1)).reshape(n_pad, H_IN, W_IN * C_IN)
    win = 2 * jnp.arange(H_POOL)[:, None] + jnp.arange(WIN_ROWS)[None, :]   # (12, 6)
    x6 = x_rows[:, win, :].reshape(n_pad * H_POOL, K_IM2COL)

    # Tiny per-batch-tile constants (selection / grouping vectors).
    sel = jnp.repeat(jnp.eye(b, dtype=jnp.bfloat16), H_POOL, axis=1)        # (b, b*12)
    rowgrp = jnp.tile(jnp.arange(H_POOL, dtype=jnp.float32), b).reshape(b * H_POOL, 1)
    colgrp = (jnp.arange(UCOLS) // F1_OUT).astype(jnp.float32).reshape(1, UCOLS)

    out = pl.pallas_call(
        _net_kernel,
        out_shape=jax.ShapeDtypeStruct((n_pad, FC_PAD), jnp.float32),
        grid=(n_pad // b,),
        in_specs=[
            pl.BlockSpec((b * H_POOL, K_IM2COL), lambda g: (g, 0)),   # images (im2col'd)
            pl.BlockSpec((K_IM2COL, N_CONV), lambda g: (0, 0)),       # conv weights
            pl.BlockSpec((1, N_CONV), lambda g: (0, 0)),              # conv bias row
            pl.BlockSpec((LANE_Q, UCOLS), lambda g: (0, 0)),          # fc1 staged weights
            pl.BlockSpec((b * H_POOL, 1), lambda g: (0, 0)),          # row pool-index
            pl.BlockSpec((1, UCOLS), lambda g: (0, 0)),               # column group index
            pl.BlockSpec((b, b * H_POOL), lambda g: (0, 0)),          # per-image row-sum
            pl.BlockSpec((UCOLS, FC_PAD), lambda g: (0, 0)),          # (i,o)->o fold
            pl.BlockSpec((1, FC_PAD), lambda g: (0, 0)),              # fc1 bias
            pl.BlockSpec((FC_PAD, FC_PAD), lambda g: (0, 0)),         # fc2 weight
            pl.BlockSpec((1, FC_PAD), lambda g: (0, 0)),              # fc2 bias
        ],
        out_specs=pl.BlockSpec((b, FC_PAD), lambda g: (g, 0)),
        compiler_params=pltpu.CompilerParams(dimension_semantics=("parallel",)),
    )(x6, kparams["r_mat"], kparams["conv_b_row"], kparams["vcat"],
      rowgrp, colgrp, sel, kparams["fold"], kparams["b1"],
      kparams["w2"], kparams["b2"])
    return out[:n, :F2_OUT]


# ---------------------------------------------------------------------------
# Plain-JAX reference (mirrors the PyTorch forward exactly) + init
# ---------------------------------------------------------------------------
def net_reference(x_nchw, params):
    y = lax.conv_general_dilated(
        x_nchw, params["conv1_w"], window_strides=(1, 1), padding="VALID",
        dimension_numbers=("NCHW", "OIHW", "NCHW"))
    y = jnp.maximum(y + params["conv1_b"][None, :, None, None], 0.0)
    y = lax.reduce_window(y, -jnp.inf, lax.max,
                          window_dimensions=(1, 1, 2, 2),
                          window_strides=(1, 1, 2, 2), padding="VALID")
    y = y.reshape(y.shape[0], -1)                        # torch (C,H,W) flatten order
    y = jnp.maximum(y @ params["fc1_w"] + params["fc1_b"], 0.0)
    return y @ params["fc2_w"] + params["fc2_b"]


def init_params(key):
    """Deterministic PyTorch-style (uniform +/- 1/sqrt(fan_in)) init."""
    ks = jax.random.split(key, 6)

    def u(k, shape, fan_in):
        bound = 1.0 / jnp.sqrt(jnp.float32(fan_in))
        return jax.random.uniform(k, shape, jnp.float32, -bound, bound)

    return {
        "conv1_w": u(ks[0], (C_OUT, C_IN, KH, KW), C_IN * KH * KW),
        "conv1_b": u(ks[1], (C_OUT,), C_IN * KH * KW),
        "fc1_w":   u(ks[2], (H_POOL * W_POOL * C_OUT, F1_OUT), H_POOL * W_POOL * C_OUT),
        "fc1_b":   u(ks[3], (F1_OUT,), H_POOL * W_POOL * C_OUT),
        "fc2_w":   u(ks[4], (F1_OUT, F2_OUT), F1_OUT),
        "fc2_b":   u(ks[5], (F2_OUT,), F1_OUT),
    }


if __name__ == "__main__":
    key = jax.random.PRNGKey(0)
    pkey, xkey = jax.random.split(key)
    params = init_params(pkey)
    kparams = prepare_kernel_params(params)            # one-time weight prep
    x = jax.random.normal(xkey, (2, C_IN, H_IN, W_IN), dtype=jnp.float32)

    fwd = jax.jit(net_forward)
    out = jax.block_until_ready(fwd(x, kparams))

    assert out.shape == (2, F2_OUT), out.shape
    assert out.dtype == jnp.float32, out.dtype

    ref = jax.block_until_ready(jax.jit(net_reference)(x, params))
    max_err = float(jnp.max(jnp.abs(out - ref)))
    # bf16 MXU operands (f32 accumulation) -> bf16-rounding-level tolerance.
    assert max_err < 3e-2, f"mismatch vs reference: max abs err {max_err}"

    print("KERNEL_OK")
</pallas_src>

<mosaic_0001>
module attributes {stable_mosaic.version = 11 : i64} {
  func.func @_net_kernel(%arg0: i32, %arg1: memref<24x504xf32, #tpu.memory_space<vmem>>, %arg2: memref<504x1024xbf16, #tpu.memory_space<vmem>>, %arg3: memref<1x1024xf32, #tpu.memory_space<vmem>>, %arg4: memref<256x1200xbf16, #tpu.memory_space<vmem>>, %arg5: memref<24x1xf32, #tpu.memory_space<vmem>>, %arg6: memref<1x1200xf32, #tpu.memory_space<vmem>>, %arg7: memref<2x24xbf16, #tpu.memory_space<vmem>>, %arg8: memref<1200x128xbf16, #tpu.memory_space<vmem>>, %arg9: memref<1x128xf32, #tpu.memory_space<vmem>>, %arg10: memref<128x128xbf16, #tpu.memory_space<vmem>>, %arg11: memref<1x128xf32, #tpu.memory_space<vmem>>, %arg12: memref<2x128xf32, #tpu.memory_space<vmem>>) attributes {dimension_semantics = [#tpu.dimension_semantics<parallel>], iteration_bounds = array<i64: 1>, scalar_prefetch = 0 : i64, scratch_operands = 0 : i64, tpu.core_type = #tpu.core_type<tc>, window_params = [{transform_indices = @transform_0, window_bounds = array<i64: 24, 504>}, {pipeline_mode = #tpu.pipeline_mode<synchronous>, transform_indices = @transform_1, window_bounds = array<i64: 504, 1024>}, {pipeline_mode = #tpu.pipeline_mode<synchronous>, transform_indices = @transform_2, window_bounds = array<i64: 1, 1024>}, {pipeline_mode = #tpu.pipeline_mode<synchronous>, transform_indices = @transform_3, window_bounds = array<i64: 256, 1200>}, {pipeline_mode = #tpu.pipeline_mode<synchronous>, transform_indices = @transform_4, window_bounds = array<i64: 24, 1>}, {pipeline_mode = #tpu.pipeline_mode<synchronous>, transform_indices = @transform_5, window_bounds = array<i64: 1, 1200>}, {pipeline_mode = #tpu.pipeline_mode<synchronous>, transform_indices = @transform_6, window_bounds = array<i64: 2, 24>}, {pipeline_mode = #tpu.pipeline_mode<synchronous>, transform_indices = @transform_7, window_bounds = array<i64: 1200, 128>}, {pipeline_mode = #tpu.pipeline_mode<synchronous>, transform_indices = @transform_8, window_bounds = array<i64: 1, 128>}, {pipeline_mode = #tpu.pipeline_mode<synchronous>, transform_indices = @transform_9, window_bounds = array<i64: 128, 128>}, {pipeline_mode = #tpu.pipeline_mode<synchronous>, transform_indices = @transform_10, window_bounds = array<i64: 1, 128>}, {transform_indices = @transform_11, window_bounds = array<i64: 2, 128>}]} {
    %c0 = arith.constant 0 : index
    %c0_0 = arith.constant 0 : index
    %0 = vector.load %arg1[%c0, %c0_0] : memref<24x504xf32, #tpu.memory_space<vmem>>, vector<24x504xf32>
    %1 = arith.truncf %0 : vector<24x504xf32> to vector<24x504xbf16>
    %c0_1 = arith.constant 0 : index
    %c0_2 = arith.constant 0 : index
    %2 = vector.load %arg2[%c0_1, %c0_2] : memref<504x1024xbf16, #tpu.memory_space<vmem>>, vector<504x1024xbf16>
    %cst = arith.constant dense<0.000000e+00> : vector<24x1024xf32>
    %3 = tpu.matmul %1, %2, %cst {dimension_numbers = #tpu.dot_dimension_numbers<[1], [0], [0], [1], [0, 0, 1, 1], [], []>} : vector<24x504xbf16>, vector<504x1024xbf16>, vector<24x1024xf32> -> vector<24x1024xf32>
    %c0_3 = arith.constant 0 : index
    %c0_4 = arith.constant 0 : index
    %4 = vector.load %arg3[%c0_3, %c0_4] : memref<1x1024xf32, #tpu.memory_space<vmem>>, vector<1x1024xf32>
    %5 = vector.broadcast %4 : vector<1x1024xf32> to vector<24x1024xf32>
    %6 = arith.addf %3, %5 : vector<24x1024xf32>
    %cst_5 = arith.constant 0.000000e+00 : f32
    %7 = vector.broadcast %cst_5 : f32 to vector<24x1024xf32>
    %8 = arith.maximumf %6, %7 : vector<24x1024xf32>
    %9 = vector.extract_strided_slice %8 {offsets = [0, 0], sizes = [24, 256], strides = [1, 1]} : vector<24x1024xf32> to vector<24x256xf32>
    %10 = vector.extract_strided_slice %8 {offsets = [0, 256], sizes = [24, 256], strides = [1, 1]} : vector<24x1024xf32> to vector<24x256xf32>
    %11 = arith.maximumf %9, %10 : vector<24x256xf32>
    %12 = vector.extract_strided_slice %8 {offsets = [0, 512], sizes = [24, 256], strides = [1, 1]} : vector<24x1024xf32> to vector<24x256xf32>
    %13 = vector.extract_strided_slice %8 {offsets = [0, 768], sizes = [24, 256], strides = [1, 1]} : vector<24x1024xf32> to vector<24x256xf32>
    %14 = arith.maximumf %12, %13 : vector<24x256xf32>
    %15 = arith.maximumf %11, %14 : vector<24x256xf32>
    %16 = arith.truncf %15 : vector<24x256xf32> to vector<24x256xbf16>
    %c0_6 = arith.constant 0 : index
    %c0_7 = arith.constant 0 : index
    %17 = vector.load %arg4[%c0_6, %c0_7] : memref<256x1200xbf16, #tpu.memory_space<vmem>>, vector<256x1200xbf16>
    %cst_8 = arith.constant dense<0.000000e+00> : vector<24x1200xf32>
    %18 = tpu.matmul %16, %17, %cst_8 {dimension_numbers = #tpu.dot_dimension_numbers<[1], [0], [0], [1], [0, 0, 1, 1], [], []>} : vector<24x256xbf16>, vector<256x1200xbf16>, vector<24x1200xf32> -> vector<24x1200xf32>
    %c0_9 = arith.constant 0 : index
    %c0_10 = arith.constant 0 : index
    %19 = vector.load %arg5[%c0_9, %c0_10] : memref<24x1xf32, #tpu.memory_space<vmem>>, vector<24x1xf32>
    %c0_11 = arith.constant 0 : index
    %c0_12 = arith.constant 0 : index
    %20 = vector.load %arg6[%c0_11, %c0_12] : memref<1x1200xf32, #tpu.memory_space<vmem>>, vector<1x1200xf32>
    %21 = vector.broadcast %19 : vector<24x1xf32> to vector<24x1200xf32>
    %22 = vector.broadcast %20 : vector<1x1200xf32> to vector<24x1200xf32>
    %23 = arith.cmpf oeq, %21, %22 : vector<24x1200xf32>
    %cst_13 = arith.constant 0.000000e+00 : f32
    %24 = vector.broadcast %cst_13 : f32 to vector<24x1200xf32>
    %25 = arith.select %23, %18, %24 : vector<24x1200xi1>, vector<24x1200xf32>
    %26 = arith.truncf %25 : vector<24x1200xf32> to vector<24x1200xbf16>
    %c0_14 = arith.constant 0 : index
    %c0_15 = arith.constant 0 : index
    %27 = vector.load %arg7[%c0_14, %c0_15] : memref<2x24xbf16, #tpu.memory_space<vmem>>, vector<2x24xbf16>
    %cst_16 = arith.constant dense<0.000000e+00> : vector<2x1200xf32>
    %28 = tpu.matmul %27, %26, %cst_16 {dimension_numbers = #tpu.dot_dimension_numbers<[1], [0], [0], [1], [0, 0, 1, 1], [], []>} : vector<2x24xbf16>, vector<24x1200xbf16>, vector<2x1200xf32> -> vector<2x1200xf32>
    %29 = arith.truncf %28 : vector<2x1200xf32> to vector<2x1200xbf16>
    %c0_17 = arith.constant 0 : index
    %c0_18 = arith.constant 0 : index
    %30 = vector.load %arg8[%c0_17, %c0_18] : memref<1200x128xbf16, #tpu.memory_space<vmem>>, vector<1200x128xbf16>
    %cst_19 = arith.constant dense<0.000000e+00> : vector<2x128xf32>
    %31 = tpu.matmul %29, %30, %cst_19 {dimension_numbers = #tpu.dot_dimension_numbers<[1], [0], [0], [1], [0, 0, 1, 1], [], []>} : vector<2x1200xbf16>, vector<1200x128xbf16>, vector<2x128xf32> -> vector<2x128xf32>
    %c0_20 = arith.constant 0 : index
    %c0_21 = arith.constant 0 : index
    %32 = vector.load %arg9[%c0_20, %c0_21] : memref<1x128xf32, #tpu.memory_space<vmem>>, vector<1x128xf32>
    %33 = vector.broadcast %32 : vector<1x128xf32> to vector<2x128xf32>
    %34 = arith.addf %31, %33 : vector<2x128xf32>
    %cst_22 = arith.constant 0.000000e+00 : f32
    %35 = vector.broadcast %cst_22 : f32 to vector<2x128xf32>
    %36 = arith.maximumf %34, %35 : vector<2x128xf32>
    %37 = arith.truncf %36 : vector<2x128xf32> to vector<2x128xbf16>
    %c0_23 = arith.constant 0 : index
    %c0_24 = arith.constant 0 : index
    %38 = vector.load %arg10[%c0_23, %c0_24] : memref<128x128xbf16, #tpu.memory_space<vmem>>, vector<128x128xbf16>
    %cst_25 = arith.constant dense<0.000000e+00> : vector<2x128xf32>
    %39 = tpu.matmul %37, %38, %cst_25 {dimension_numbers = #tpu.dot_dimension_numbers<[1], [0], [0], [1], [0, 0, 1, 1], [], []>} : vector<2x128xbf16>, vector<128x128xbf16>, vector<2x128xf32> -> vector<2x128xf32>
    %c0_26 = arith.constant 0 : index
    %c0_27 = arith.constant 0 : index
    %40 = vector.load %arg11[%c0_26, %c0_27] : memref<1x128xf32, #tpu.memory_space<vmem>>, vector<1x128xf32>
    %41 = vector.broadcast %40 : vector<1x128xf32> to vector<2x128xf32>
    %42 = arith.addf %39, %41 : vector<2x128xf32>
    %c0_28 = arith.constant 0 : index
    %c0_29 = arith.constant 0 : index
    %43 = vector.load %arg12[%c0_28, %c0_29] : memref<2x128xf32, #tpu.memory_space<vmem>>, vector<2x128xf32>
    tpu.vector_store %arg12[%c0_28, %c0_29], %42 {strides = array<i32>} : memref<2x128xf32, #tpu.memory_space<vmem>>, vector<2x128xf32>,
    return
  }
  func.func @transform_0(%arg0: i32) -> (i32, i32) {
    %c0_i32 = arith.constant 0 : i32
    %c0_i32_0 = arith.constant 0 : i32
    return %arg0, %c0_i32 : i32, i32
  }
  func.func @transform_1(%arg0: i32) -> (i32, i32) {
    %c0_i32 = arith.constant 0 : i32
    %c0_i32_0 = arith.constant 0 : i32
    %c0_i32_1 = arith.constant 0 : i32
    return %c0_i32, %c0_i32_0 : i32, i32
  }
  func.func @transform_2(%arg0: i32) -> (i32, i32) {
    %c0_i32 = arith.constant 0 : i32
    %c0_i32_0 = arith.constant 0 : i32
    %c0_i32_1 = arith.constant 0 : i32
    return %c0_i32, %c0_i32_0 : i32, i32
  }
  func.func @transform_3(%arg0: i32) -> (i32, i32) {
    %c0_i32 = arith.constant 0 : i32
    %c0_i32_0 = arith.constant 0 : i32
    %c0_i32_1 = arith.constant 0 : i32
    return %c0_i32, %c0_i32_0 : i32, i32
  }
  func.func @transform_4(%arg0: i32) -> (i32, i32) {
    %c0_i32 = arith.constant 0 : i32
    %c0_i32_0 = arith.constant 0 : i32
    %c0_i32_1 = arith.constant 0 : i32
    return %c0_i32, %c0_i32_0 : i32, i32
  }
  func.func @transform_5(%arg0: i32) -> (i32, i32) {
    %c0_i32 = arith.constant 0 : i32
    %c0_i32_0 = arith.constant 0 : i32
    %c0_i32_1 = arith.constant 0 : i32
    return %c0_i32, %c0_i32_0 : i32, i32
  }
  func.func @transform_6(%arg0: i32) -> (i32, i32) {
    %c0_i32 = arith.constant 0 : i32
    %c0_i32_0 = arith.constant 0 : i32
    %c0_i32_1 = arith.constant 0 : i32
    return %c0_i32, %c0_i32_0 : i32, i32
  }
  func.func @transform_7(%arg0: i32) -> (i32, i32) {
    %c0_i32 = arith.constant 0 : i32
    %c0_i32_0 = arith.constant 0 : i32
    %c0_i32_1 = arith.constant 0 : i32
    return %c0_i32, %c0_i32_0 : i32, i32
  }
  func.func @transform_8(%arg0: i32) -> (i32, i32) {
    %c0_i32 = arith.constant 0 : i32
    %c0_i32_0 = arith.constant 0 : i32
    %c0_i32_1 = arith.constant 0 : i32
    return %c0_i32, %c0_i32_0 : i32, i32
  }
  func.func @transform_9(%arg0: i32) -> (i32, i32) {
    %c0_i32 = arith.constant 0 : i32
    %c0_i32_0 = arith.constant 0 : i32
    %c0_i32_1 = arith.constant 0 : i32
    return %c0_i32, %c0_i32_0 : i32, i32
  }
  func.func @transform_10(%arg0: i32) -> (i32, i32) {
    %c0_i32 = arith.constant 0 : i32
    %c0_i32_0 = arith.constant 0 : i32
    %c0_i32_1 = arith.constant 0 : i32
    return %c0_i32, %c0_i32_0 : i32, i32
  }
  func.func @transform_11(%arg0: i32) -> (i32, i32) {
    %c0_i32 = arith.constant 0 : i32
    %c0_i32_0 = arith.constant 0 : i32
    return %arg0, %c0_i32 : i32, i32
  }
}

</mosaic_0001>

<bundles_post_ra>
// kernel: tile.0
= control target key start
LH: loop header
LB: loop body
LE: loop exit
PB: predicated region body
PF: predicated region fallthrough
CT: control target
= control target key end

     0   :  { %s98_s8 = smov 125   ;;  %vm7_vm0 = vcmask 7168   ;;  %s99_s11 = smov 126   ;;  %s169_s0 = inlined_call_operand.vmem [shape: f32[2,12], index: 0, kind: input, shape index: {}]   ;;  %s170_s1 = inlined_call_operand.vmem [shape: f32[24,1], index: 1, kind: output, shape index: {}]  }
   0x1   :  { %v4_v0 = vld [vmem:[%s169_s0] sm:$0x3]  ;;  %s97_s0 = smov 127   ;;  %s100_s12 = smov 124  }
   0x2   :  { %5 = vst [vmem:[#allocation0] sm:$0x3] %v4_v0  ;;  %s101_s13 = smov 123   ;;  %s102_s14 = smov 122  }
   0x3   :  { %s103_s15 = smov 121   ;;  %s104_s16 = smov 120  }
   0x4   :  { %s105_s17 = smov 119   ;;  %s106_s18 = smov 118  }
   0x5   :  { %s107_s19 = smov 117  }
   0x9   :  { %v9_v1 = vld [vmem:[#allocation0] sm:$0x3]  }
   0xa   :  { %v21_v2 = vld [vmem:[#allocation0] sm:$0x3]   ;;  %10 = vrot.lane.b32.xlu0 %v9_v1, %s97_s0 }
   0xb   :  { %22 = vrot.lane.b32.xlu1 %v21_v2, %s98_s8  ;;  %v15_v3 = vld [vmem:[#allocation0] sm:$0x3]  }
   0xc   :  { %v27_v4 = vld [vmem:[#allocation0] sm:$0x3]  }
   0xd   :  { %v6_v5 = vld [vmem:[#allocation0] sm:$0x3]  }
   0xe   :  { %8 = vst.msk [vmem:[%s170_s1] ss:$12 sm:$0x3] %vm7_vm0, %v6_v5   ;;  %16 = vrot.lane.b32.xlu0 %v15_v3, %s99_s11  ;;  %v33_v6 = vld [vmem:[#allocation0] sm:$0x3]  }
   0xf   :  { %28 = vrot.lane.b32.xlu1 %v27_v4, %s100_s12  ;;  %v39_v7 = vld [vmem:[#allocation0] sm:$0x3]  }
  0x10   :  { %v45_v8 = vld [vmem:[#allocation0] sm:$0x3]  }
  0x11   :  { %v51_v9 = vld [vmem:[#allocation0] sm:$0x3]  }
  0x12   :  { %34 = vrot.lane.b32.xlu0 %v33_v6, %s101_s13  ;;  %v57_v10 = vld [vmem:[#allocation0] sm:$0x3]  }
  0x13   :  { %40 = vrot.lane.b32.xlu1 %v39_v7, %s102_s14  ;;  %v63_v11 = vld [vmem:[#allocation0] sm:$0x3]  }
  0x14   :  { %v69_v12 = vld [vmem:[#allocation0] sm:$0x3]  }
  0x16   :  { %46 = vrot.lane.b32.xlu0 %v45_v8, %s103_s15 }
  0x17   :  { %52 = vrot.lane.b32.xlu1 %v51_v9, %s104_s16 }
  0x1a   :  { %58 = vrot.lane.b32.xlu0 %v57_v10, %s105_s17 }
  0x1b   :  { %64 = vrot.lane.b32.xlu1 %v63_v11, %s106_s18 }
  0x1e   :  { %70 = vrot.lane.b32.xlu0 %v69_v12, %s107_s19 }
  0x7c   :  { %v11_v13 = vpop.permute.xlu0 %10  }
  0x7d   :  { %v23_v14 = vpop.permute.xlu1 %22   ;;  %75 = vst.msk [vmem:[%s170_s1 + $0x1] ss:$12 sm:$0x3] %vm7_vm0, %v11_v13  }
  0x7e   :  { %77 = vst.msk [vmem:[%s170_s1 + $0x3] ss:$12 sm:$0x3] %vm7_vm0, %v23_v14  }
  0x80   :  { %v17_v15 = vpop.permute.xlu0 %16  }
  0x81   :  { %v29_v16 = vpop.permute.xlu1 %28   ;;  %76 = vst.msk [vmem:[%s170_s1 + $0x2] ss:$12 sm:$0x3] %vm7_vm0, %v17_v15  }
  0x82   :  { %78 = vst.msk [vmem:[%s170_s1 + $0x4] ss:$12 sm:$0x3] %vm7_vm0, %v29_v16  }
  0x84   :  { %v35_v17 = vpop.permute.xlu0 %34  }
  0x85   :  { %v41_v18 = vpop.permute.xlu1 %40   ;;  %79 = vst.msk [vmem:[%s170_s1 + $0x5] ss:$12 sm:$0x3] %vm7_vm0, %v35_v17  }
  0x86   :  { %80 = vst.msk [vmem:[%s170_s1 + $0x6] ss:$12 sm:$0x3] %vm7_vm0, %v41_v18  }
  0x88   :  { %v47_v19 = vpop.permute.xlu0 %46  }
  0x89   :  { %v53_v20 = vpop.permute.xlu1 %52   ;;  %81 = vst.msk [vmem:[%s170_s1 + $0x7] ss:$12 sm:$0x3] %vm7_vm0, %v47_v19  }
  0x8a   :  { %82 = vst.msk [vmem:[%s170_s1 + $0x8] ss:$12 sm:$0x3] %vm7_vm0, %v53_v20  }
  0x8c   :  { %v59_v21 = vpop.permute.xlu0 %58  }
  0x8d   :  { %v65_v22 = vpop.permute.xlu1 %64   ;;  %83 = vst.msk [vmem:[%s170_s1 + $0x9] ss:$12 sm:$0x3] %vm7_vm0, %v59_v21  }
  0x8e   :  { %84 = vst.msk [vmem:[%s170_s1 + $0xa] ss:$12 sm:$0x3] %vm7_vm0, %v65_v22  }
  0x90   :  { %v71_v23 = vpop.permute.xlu0 %70  }
  0x91   :  { %85 = vst.msk [vmem:[%s170_s1 + $0xb] ss:$12 sm:$0x3] %vm7_vm0, %v71_v23  }

// kernel: net_forward.1
= control target key start
LH: loop header
LB: loop body
LE: loop exit
PB: predicated region body
PF: predicated region fallthrough
CT: control target
= control target key end

     0   :  { %vm1614_vm0 = vcmask 982016   ;;  %vm1621_vm1 = vcmask 1043456   ;;  %s7674_s0 = inlined_call_operand.vmem [shape: f32[24,504], index: 0, kind: input, shape index: {}]   ;;  %s7675_s1 = inlined_call_operand.vmem [shape: bf16[504,1024], index: 1, kind: input, shape index: {}]   ;;  %s7676_s2 = inlined_call_operand.vmem [shape: f32[1,1024], index: 2, kind: input, shape index: {}]   ;;  %s7677_s3 = inlined_call_operand.vmem [shape: bf16[256,1200], index: 3, kind: input, shape index: {}]   ;;  %s7678_s4 = inlined_call_operand.vmem [shape: f32[24,1], index: 4, kind: input, shape index: {}]   ;;  %s7679_s5 = inlined_call_operand.vmem [shape: f32[1,1200], index: 5, kind: input, shape index: {}]   ;;  %s7680_s6 = inlined_call_operand.vmem [shape: bf16[2,24], index: 6, kind: input, shape index: {}]   ;;  %s7681_s7 = inlined_call_operand.vmem [shape: bf16[1200,128], index: 7, kind: input, shape index: {}]   ;;  %s7682_s8 = inlined_call_operand.vmem [shape: f32[1,128], index: 8, kind: input, shape index: {}]   ;;  %s7683_s9 = inlined_call_operand.vmem [shape: bf16[128,128], index: 9, kind: input, shape index: {}]   ;;  %s7684_s10 = inlined_call_operand.vmem [shape: f32[1,128], index: 10, kind: input, shape index: {}]   ;;  %s7685_s11 = inlined_call_operand.hbm [shape: f32[2,128], index: 11, kind: output, shape index: {}]  }
   0x1   :  { %v60_v0 = vld [vmem:[%s7675_s1] sm:$0xff]  ;;  %v61_v2 = vld [vmem:[%s7675_s1 + $0x8] sm:$0xff] }
   0x2   :  { %v64_v1 = vld [vmem:[%s7675_s1 + $0x20] sm:$0xff]  ;;  %v65_v4 = vld [vmem:[%s7675_s1 + $0x28] sm:$0xff] }
   0x3   :  { %v4657_v3 = vcombine.high %v60_v0, %v64_v1  ;;  %v4656_v5 = vcombine.low %v60_v0, %v64_v1  ;;  %v68_v6 = vld [vmem:[%s7675_s1 + $0x40] sm:$0xff]  ;;  %v4659_v8 = vcombine.high %v61_v2, %v65_v4  ;;  %v4658_v9 = vcombine.low %v61_v2, %v65_v4  ;;  %v69_v11 = vld [vmem:[%s7675_s1 + $0x48] sm:$0xff] }
   0x4   :  { %v72_v7 = vld [vmem:[%s7675_s1 + $0x60] sm:$0xff]  ;;  %v73_v12 = vld [vmem:[%s7675_s1 + $0x68] sm:$0xff] }
   0x5   :  { %v4665_v10 = vcombine.high %v68_v6, %v72_v7  ;;  %v76_v13 = vld [vmem:[%s7675_s1 + $0x80] sm:$0xff]  ;;  %1646 = vmatprep.subr.bf16.mxu0 %v4657_v3  ;;  %v4667_v14 = vcombine.high %v69_v11, %v73_v12  ;;  %v77_v16 = vld [vmem:[%s7675_s1 + $0x88] sm:$0xff]  ;;  %1748 = vmatprep.subr.bf16.mxu1 %v4659_v8  ;;  %v4664_v18 = vcombine.low %v68_v6, %v72_v7 }
   0x6   :  { %v80_v15 = vld [vmem:[%s7675_s1 + $0xa0] sm:$0xff]  ;;  %v81_v17 = vld [vmem:[%s7675_s1 + $0xa8] sm:$0xff]  ;;  %1647 = vmatpush1.bf16.msra.mxu0 %v4656_v5  ;;  %1749 = vmatpush1.bf16.msra.mxu1 %v4658_v9  ;;  %v4666_v19 = vcombine.low %v69_v11, %v73_v12 }
   0x7   :  { %1648 = vmatprep.subr.bf16.mxu0 %v4665_v10  ;;  %v4673_v20 = vcombine.high %v76_v13, %v80_v15  ;;  %1750 = vmatprep.subr.bf16.mxu1 %v4667_v14  ;;  %v4675_v21 = vcombine.high %v77_v16, %v81_v17  ;;  %v84_v22 = vld [vmem:[%s7675_s1 + $0xc0] sm:$0xff]  ;;  %v85_v24 = vld [vmem:[%s7675_s1 + $0xc8] sm:$0xff]  ;;  %v4672_v26 = vcombine.low %v76_v13, %v80_v15 }
   0x8   :  { %v88_v23 = vld [vmem:[%s7675_s1 + $0xe0] sm:$0xff]  ;;  %v89_v25 = vld [vmem:[%s7675_s1 + $0xe8] sm:$0xff]  ;;  %v4674_v27 = vcombine.low %v77_v16, %v81_v17 }
   0x9   :  { %v4681_v28 = vcombine.high %v84_v22, %v88_v23  ;;  %v4683_v29 = vcombine.high %v85_v24, %v89_v25  ;;  %v92_v30 = vld [vmem:[%s7675_s1 + $0x100] sm:$0xff]  ;;  %v93_v32 = vld [vmem:[%s7675_s1 + $0x108] sm:$0xff]  ;;  %v4680_v34 = vcombine.low %v84_v22, %v88_v23  ;;  %v4682_v35 = vcombine.low %v85_v24, %v89_v25 }
   0xa   :  { %1649 = vmatpush1.bf16.msra.mxu0 %v4664_v18  ;;  %1751 = vmatpush1.bf16.msra.mxu1 %v4666_v19  ;;  %v96_v31 = vld [vmem:[%s7675_s1 + $0x120] sm:$0xff]  ;;  %v97_v33 = vld [vmem:[%s7675_s1 + $0x128] sm:$0xff] }
   0xb   :  { %1650 = vmatprep.subr.bf16.mxu0 %v4673_v20  ;;  %1752 = vmatprep.subr.bf16.mxu1 %v4675_v21  ;;  %v4689_v36 = vcombine.high %v92_v30, %v96_v31  ;;  %v4691_v37 = vcombine.high %v93_v32, %v97_v33  ;;  %v100_v38 = vld [vmem:[%s7675_s1 + $0x140] sm:$0xff]  ;;  %v101_v40 = vld [vmem:[%s7675_s1 + $0x148] sm:$0xff]  ;;  %v4688_v42 = vcombine.low %v92_v30, %v96_v31 }
   0xc   :  { %v104_v39 = vld [vmem:[%s7675_s1 + $0x160] sm:$0xff]  ;;  %v105_v41 = vld [vmem:[%s7675_s1 + $0x168] sm:$0xff]  ;;  %v4690_v43 = vcombine.low %v93_v32, %v97_v33 }
   0xd   :  { %v4697_v44 = vcombine.high %v100_v38, %v104_v39  ;;  %v4699_v45 = vcombine.high %v101_v40, %v105_v41  ;;  %v108_v46 = vld [vmem:[%s7675_s1 + $0x180] sm:$0xff]  ;;  %v109_v48 = vld [vmem:[%s7675_s1 + $0x188] sm:$0xff]  ;;  %v4696_v50 = vcombine.low %v100_v38, %v104_v39  ;;  %v4698_v51 = vcombine.low %v101_v40, %v105_v41 }
   0xe   :  { %1651 = vmatpush1.bf16.msra.mxu0 %v4672_v26  ;;  %1753 = vmatpush1.bf16.msra.mxu1 %v4674_v27  ;;  %v112_v47 = vld [vmem:[%s7675_s1 + $0x1a0] sm:$0xff]  ;;  %v113_v49 = vld [vmem:[%s7675_s1 + $0x1a8] sm:$0xff] }
   0xf   :  { %1652 = vmatprep.subr.bf16.mxu0 %v4681_v28  ;;  %1754 = vmatprep.subr.bf16.mxu1 %v4683_v29  ;;  %v4705_v52 = vcombine.high %v108_v46, %v112_v47  ;;  %v41_v53 = vld [vmem:[%s7674_s0 + $0x8] sm:$0xff]  ;;  %v4707_v55 = vcombine.high %v109_v48, %v113_v49  ;;  %v116_v56 = vld [vmem:[%s7675_s1 + $0x1c0] sm:$0xff]  ;;  %v4704_v61 = vcombine.low %v108_v46, %v112_v47 }
  0x10   :  { %v45_v54 = vld [vmem:[%s7674_s0 + $0x28] sm:$0xff]  ;;  %v120_v57 = vld [vmem:[%s7675_s1 + $0x1e0] sm:$0xff]  ;;  %v4706_v62 = vcombine.low %v109_v48, %v113_v49 }
  0x11   :  { %v5904_v58 = vpack.c.bf16 %v45_v54, %v41_v53  ;;  %v117_v59 = vld [vmem:[%s7675_s1 + $0x1c8] sm:$0xff]  ;;  %v4713_v63 = vcombine.high %v116_v56, %v120_v57  ;;  %v124_v1 = vld [vmem:[%s7675_s1 + $0x200] sm:$0xff]  ;;  %v4712_v5 = vcombine.low %v116_v56, %v120_v57 }
  0x12   :  { %1653 = vmatpush1.bf16.msra.mxu0 %v4680_v34  ;;  %1755 = vmatpush1.bf16.msra.mxu1 %v4682_v35  ;;  %v121_v60 = vld [vmem:[%s7675_s1 + $0x1e8] sm:$0xff]  ;;  %v128_v2 = vld [vmem:[%s7675_s1 + $0x220] sm:$0xff] }
  0x13   :  { %1654 = vmatprep.subr.bf16.mxu0 %v4689_v36  ;;  %1756 = vmatprep.subr.bf16.mxu1 %v4691_v37  ;;  %v4715_v0 = vcombine.high %v117_v59, %v121_v60  ;;  %v125_v3 = vld [vmem:[%s7675_s1 + $0x208] sm:$0xff]  ;;  %v4714_v6 = vcombine.low %v117_v59, %v121_v60  ;;  %v4721_v7 = vcombine.high %v124_v1, %v128_v2  ;;  %v132_v9 = vld [vmem:[%s7675_s1 + $0x240] sm:$0xff] }
  0x14   :  { %1678 = vmatprep.mubr.bf16.mxu0 %v5904_v58  ;;  %1780 = vmatprep.mubr.bf16.mxu1 %v5904_v58  ;;  %v129_v4 = vld [vmem:[%s7675_s1 + $0x228] sm:$0xff]  ;;  %v136_v10 = vld [vmem:[%s7675_s1 + $0x260] sm:$0xff]  ;;  %v4720_v13 = vcombine.low %v124_v1, %v128_v2 }
  0x15   :  { %v4723_v8 = vcombine.high %v125_v3, %v129_v4  ;;  %v133_v11 = vld [vmem:[%s7675_s1 + $0x248] sm:$0xff]  ;;  %v4722_v14 = vcombine.low %v125_v3, %v129_v4  ;;  %v4729_v15 = vcombine.high %v132_v9, %v136_v10  ;;  %v140_v17 = vld [vmem:[%s7675_s1 + $0x280] sm:$0xff]  ;;  %v4728_v21 = vcombine.low %v132_v9, %v136_v10 }
  0x16   :  { %1655 = vmatpush1.bf16.msra.mxu0 %v4688_v42  ;;  %1757 = vmatpush1.bf16.msra.mxu1 %v4690_v43  ;;  %v137_v12 = vld [vmem:[%s7675_s1 + $0x268] sm:$0xff]  ;;  %v144_v18 = vld [vmem:[%s7675_s1 + $0x2a0] sm:$0xff] }
  0x17   :  { %1656 = vmatprep.subr.bf16.mxu0 %v4697_v44  ;;  %1758 = vmatprep.subr.bf16.mxu1 %v4699_v45  ;;  %v4731_v16 = vcombine.high %v133_v11, %v137_v12  ;;  %v141_v19 = vld [vmem:[%s7675_s1 + $0x288] sm:$0xff]  ;;  %v4730_v22 = vcombine.low %v133_v11, %v137_v12  ;;  %v4737_v23 = vcombine.high %v140_v17, %v144_v18  ;;  %v148_v25 = vld [vmem:[%s7675_s1 + $0x2c0] sm:$0xff] }
  0x18   :  { %v145_v20 = vld [vmem:[%s7675_s1 + $0x2a8] sm:$0xff]  ;;  %v152_v26 = vld [vmem:[%s7675_s1 + $0x2e0] sm:$0xff]  ;;  %v4736_v29 = vcombine.low %v140_v17, %v144_v18 }
  0x19   :  { %v4739_v24 = vcombine.high %v141_v19, %v145_v20  ;;  %v149_v27 = vld [vmem:[%s7675_s1 + $0x2c8] sm:$0xff]  ;;  %v4738_v30 = vcombine.low %v141_v19, %v145_v20  ;;  %v4745_v31 = vcombine.high %v148_v25, %v152_v26  ;;  %v156_v33 = vld [vmem:[%s7675_s1 + $0x300] sm:$0xff]  ;;  %v4744_v37 = vcombine.low %v148_v25, %v152_v26 }
  0x1a   :  { %1657 = vmatpush1.bf16.msra.mxu0 %v4696_v50  ;;  %1759 = vmatpush1.bf16.msra.mxu1 %v4698_v51  ;;  %v153_v28 = vld [vmem:[%s7675_s1 + $0x2e8] sm:$0xff]  ;;  %v160_v34 = vld [vmem:[%s7675_s1 + $0x320] sm:$0xff] }
  0x1b   :  { %1658 = vmatprep.subr.bf16.mxu0 %v4705_v52  ;;  %1760 = vmatprep.subr.bf16.mxu1 %v4707_v55  ;;  %v4747_v32 = vcombine.high %v149_v27, %v153_v28  ;;  %v157_v35 = vld [vmem:[%s7675_s1 + $0x308] sm:$0xff]  ;;  %v4746_v38 = vcombine.low %v149_v27, %v153_v28  ;;  %v4753_v39 = vcombine.high %v156_v33, %v160_v34  ;;  %v164_v41 = vld [vmem:[%s7675_s1 + $0x340] sm:$0xff] }
  0x1c   :  { %v161_v36 = vld [vmem:[%s7675_s1 + $0x328] sm:$0xff]  ;;  %v168_v42 = vld [vmem:[%s7675_s1 + $0x360] sm:$0xff]  ;;  %v4752_v45 = vcombine.low %v156_v33, %v160_v34 }
  0x1d   :  { %v4755_v40 = vcombine.high %v157_v35, %v161_v36  ;;  %v165_v43 = vld [vmem:[%s7675_s1 + $0x348] sm:$0xff]  ;;  %v4754_v46 = vcombine.low %v157_v35, %v161_v36  ;;  %v4761_v47 = vcombine.high %v164_v41, %v168_v42  ;;  %v172_v49 = vld [vmem:[%s7675_s1 + $0x380] sm:$0xff]  ;;  %v4760_v53 = vcombine.low %v164_v41, %v168_v42  ;;  %v43_v35 = vld [vmem:[%s7674_s0 + $0x18] sm:$0xff] }
  0x1e   :  { %1659 = vmatpush1.bf16.msra.mxu0 %v4704_v61  ;;  %1761 = vmatpush1.bf16.msra.mxu1 %v4706_v62  ;;  %v169_v44 = vld [vmem:[%s7675_s1 + $0x368] sm:$0xff]  ;;  %v176_v50 = vld [vmem:[%s7675_s1 + $0x3a0] sm:$0xff] }
  0x1f   :  { %1660 = vmatprep.subr.bf16.mxu0 %v4713_v63  ;;  %1762 = vmatprep.subr.bf16.mxu1 %v4715_v0  ;;  %v4763_v48 = vcombine.high %v165_v43, %v169_v44  ;;  %v173_v51 = vld [vmem:[%s7675_s1 + $0x388] sm:$0xff]  ;;  %v4762_v54 = vcombine.low %v165_v43, %v169_v44  ;;  %v4769_v55 = vcombine.high %v172_v49, %v176_v50  ;;  %v180_v57 = vld [vmem:[%s7675_s1 + $0x3c0] sm:$0xff] }
  0x20   :  { %v177_v52 = vld [vmem:[%s7675_s1 + $0x3a8] sm:$0xff]  ;;  %v184_v59 = vld [vmem:[%s7675_s1 + $0x3e0] sm:$0xff]  ;;  %v4768_v62 = vcombine.low %v172_v49, %v176_v50 }
  0x21   :  { %v4771_v56 = vcombine.high %v173_v51, %v177_v52  ;;  %v181_v60 = vld [vmem:[%s7675_s1 + $0x3c8] sm:$0xff]  ;;  %v4770_v63 = vcombine.low %v173_v51, %v177_v52  ;;  %v4777_v0 = vcombine.high %v180_v57, %v184_v59  ;;  %v188_v2 = vld [vmem:[%s7675_s1 + $0x400] sm:$0xff] }
  0x22   :  { %1661 = vmatpush1.bf16.msra.mxu0 %v4712_v5  ;;  %1763 = vmatpush1.bf16.msra.mxu1 %v4714_v6  ;;  %v185_v61 = vld [vmem:[%s7675_s1 + $0x3e8] sm:$0xff]  ;;  %v192_v3 = vld [vmem:[%s7675_s1 + $0x420] sm:$0xff]  ;;  %v4776_v6 = vcombine.low %v180_v57, %v184_v59 }
  0x23   :  { %1662 = vmatprep.subr.bf16.mxu0 %v4721_v7  ;;  %1764 = vmatprep.subr.bf16.mxu1 %v4723_v8  ;;  %v4779_v1 = vcombine.high %v181_v60, %v185_v61  ;;  %v189_v4 = vld [vmem:[%s7675_s1 + $0x408] sm:$0xff]  ;;  %v40_v7 = vld [vmem:[%s7674_s0] sm:$0xff]  ;;  %v4778_v9 = vcombine.low %v181_v60, %v185_v61  ;;  %v4785_v10 = vcombine.high %v188_v2, %v192_v3 }
  0x24   :  { %v193_v5 = vld [vmem:[%s7675_s1 + $0x428] sm:$0xff]  ;;  %v44_v8 = vld [vmem:[%s7674_s0 + $0x20] sm:$0xff]  ;;  %v4784_v18 = vcombine.low %v188_v2, %v192_v3 }
  0x25   :  { %v4787_v11 = vcombine.high %v189_v4, %v193_v5  ;;  %v196_v12 = vld [vmem:[%s7675_s1 + $0x440] sm:$0xff]  ;;  %v49_v17 = vld [vmem:[%s7674_s0 + $0x48] sm:$0xff]  ;;  %v4786_v19 = vcombine.low %v189_v4, %v193_v5 }
  0x26   :  { %1663 = vmatpush1.bf16.msra.mxu0 %v4720_v13  ;;  %1765 = vmatpush1.bf16.msra.mxu1 %v4722_v14  ;;  %v200_v13 = vld [vmem:[%s7675_s1 + $0x460] sm:$0xff]  ;;  %v6034_v14 = vpack.c.bf16 %v44_v8, %v40_v7  ;;  %v205_v25 = vld [vmem:[%s7675_s1 + $0x488] sm:$0xff] }
  0x27   :  { %1664 = vmatprep.subr.bf16.mxu0 %v4729_v15  ;;  %1766 = vmatprep.subr.bf16.mxu1 %v4731_v16  ;;  %v197_v15 = vld [vmem:[%s7675_s1 + $0x448] sm:$0xff]  ;;  %v4793_v20 = vcombine.high %v196_v12, %v200_v13  ;;  %v4792_v27 = vcombine.low %v196_v12, %v200_v13  ;;  %v212_v28 = vld [vmem:[%s7675_s1 + $0x4c0] sm:$0xff] }
  0x28   :  { %v201_v16 = vld [vmem:[%s7675_s1 + $0x468] sm:$0xff]  ;;  %v220_v42 = vld [vmem:[%s7675_s1 + $0x500] sm:$0xff] }
  0x29   :  { %v209_v26 = vld [vmem:[%s7675_s1 + $0x4a8] sm:$0xff]  ;;  %v224_v43 = vld [vmem:[%s7675_s1 + $0x520] sm:$0xff] }
  0x2a   :  { %1665 = vmatpush1.bf16.msra.mxu0 %v4728_v21  ;;  %1767 = vmatpush1.bf16.msra.mxu1 %v4730_v22  ;;  %v4795_v21 = vcombine.high %v197_v15, %v201_v16  ;;  %v204_v22 = vld [vmem:[%s7675_s1 + $0x480] sm:$0xff]  ;;  %v213_v33 = vld [vmem:[%s7675_s1 + $0x4c8] sm:$0xff]  ;;  %v4803_v36 = vcombine.high %v205_v25, %v209_v26  ;;  %v4817_v50 = vcombine.high %v220_v42, %v224_v43 }
  0x2b   :  { %1666 = vmatprep.subr.bf16.mxu0 %v4737_v23  ;;  %1768 = vmatprep.subr.bf16.mxu1 %v4739_v24  ;;  %v208_v23 = vld [vmem:[%s7675_s1 + $0x4a0] sm:$0xff]  ;;  %v6051_v24 = vpack.c.bf16 %v49_v17, %v49_v17  ;;  %v217_v34 = vld [vmem:[%s7675_s1 + $0x4e8] sm:$0xff] }
  0x2c   :  { %v221_v44 = vld [vmem:[%s7675_s1 + $0x508] sm:$0xff]  ;;  %v4810_v49 = vcombine.low %v213_v33, %v217_v34  ;;  %v228_v51 = vld [vmem:[%s7675_s1 + $0x540] sm:$0xff] }
  0x2d   :  { %v232_v52 = vld [vmem:[%s7675_s1 + $0x560] sm:$0xff]  ;;  %v249_v8 = vld [vmem:[%s7675_s1 + $0x5e8] sm:$0xff] }
  0x2e   :  { %1667 = vmatpush1.bf16.msra.mxu0 %v4736_v29  ;;  %1769 = vmatpush1.bf16.msra.mxu1 %v4738_v30  ;;  %v216_v29 = vld [vmem:[%s7675_s1 + $0x4e0] sm:$0xff]  ;;  %v4825_v59 = vcombine.high %v228_v51, %v232_v52  ;;  %v257_v17 = vld [vmem:[%s7675_s1 + $0x628] sm:$0xff] }
  0x2f   :  { %1668 = vmatprep.subr.bf16.mxu0 %v4745_v31  ;;  %1770 = vmatprep.subr.bf16.mxu1 %v4747_v32  ;;  %v48_v30 = vld [vmem:[%s7674_s0 + $0x40] sm:$0xff]  ;;  %v4794_v31 = vcombine.low %v197_v15, %v201_v16  ;;  %v4801_v32 = vcombine.high %v204_v22, %v208_v23  ;;  %v4809_v41 = vcombine.high %v212_v28, %v216_v29  ;;  %v253_v15 = vld [vmem:[%s7675_s1 + $0x608] sm:$0xff] }
  0x30   :  { %v236_v60 = vld [vmem:[%s7675_s1 + $0x580] sm:$0xff] }
  0x31   :  { %v240_v61 = vld [vmem:[%s7675_s1 + $0x5a0] sm:$0xff] }
  0x32   :  { %1669 = vmatpush1.bf16.msra.mxu0 %v4744_v37  ;;  %1771 = vmatpush1.bf16.msra.mxu1 %v4746_v38  ;;  %v47_v37 = vld [vmem:[%s7674_s0 + $0x38] sm:$0xff]  ;;  %v6084_v38 = vpack.c.bf16 %v48_v30, %v48_v30  ;;  %v4833_v3 = vcombine.high %v236_v60, %v240_v61  ;;  %v244_v4 = vld [vmem:[%s7675_s1 + $0x5c0] sm:$0xff] }
  0x33   :  { %1670 = vmatprep.subr.bf16.mxu0 %v4753_v39  ;;  %1772 = vmatprep.subr.bf16.mxu1 %v4755_v40  ;;  %v4800_v39 = vcombine.low %v204_v22, %v208_v23  ;;  %v4802_v40 = vcombine.low %v205_v25, %v209_v26  ;;  %v248_v5 = vld [vmem:[%s7675_s1 + $0x5e0] sm:$0xff]  ;;  %v261_v23 = vld [vmem:[%s7675_s1 + $0x648] sm:$0xff]  ;;  %v4851_v25 = vcombine.high %v253_v15, %v257_v17 }
  0x34   :  { %v252_v12 = vld [vmem:[%s7675_s1 + $0x600] sm:$0xff]  ;;  %v265_v26 = vld [vmem:[%s7675_s1 + $0x668] sm:$0xff] }
  0x35   :  { %v256_v13 = vld [vmem:[%s7675_s1 + $0x620] sm:$0xff] }
  0x36   :  { %1671 = vmatpush1.bf16.msra.mxu0 %v4752_v45  ;;  %1773 = vmatpush1.bf16.msra.mxu1 %v4754_v46  ;;  %v4811_v45 = vcombine.high %v213_v33, %v217_v34  ;;  %v225_v46 = vld [vmem:[%s7675_s1 + $0x528] sm:$0xff]  ;;  %v264_v22 = vld [vmem:[%s7675_s1 + $0x660] sm:$0xff]  ;;  %v4859_v33 = vcombine.high %v261_v23, %v265_v26 }
  0x37   :  { %1672 = vmatprep.subr.bf16.mxu0 %v4761_v47  ;;  %1774 = vmatprep.subr.bf16.mxu1 %v4763_v48  ;;  %v6098_v47 = vpack.c.bf16 %v47_v37, %v43_v35  ;;  %v4808_v48 = vcombine.low %v212_v28, %v216_v29  ;;  %v4818_v57 = vcombine.low %v221_v44, %v225_v46  ;;  %v268_v30 = vld [vmem:[%s7675_s1 + $0x680] sm:$0xff]  ;;  %v273_v34 = vld [vmem:[%s7675_s1 + $0x6a8] sm:$0xff] }
  0x38   :  { %v4850_v28 = vcombine.low %v253_v15, %v257_v17  ;;  %v62_v17 = vld [vmem:[%s7675_s1 + $0x10] sm:$0xff] }
  0x3a   :  { %1673 = vmatpush1.bf16.msra.mxu0 %v4760_v53  ;;  %1775 = vmatpush1.bf16.msra.mxu1 %v4762_v54  ;;  %v229_v53 = vld [vmem:[%s7675_s1 + $0x548] sm:$0xff]  ;;  %v4819_v54 = vcombine.high %v221_v44, %v225_v46 }
  0x3b   :  { %1674 = vmatprep.subr.bf16.mxu0 %v4769_v55  ;;  %1776 = vmatprep.subr.bf16.mxu1 %v4771_v56  ;;  %v233_v55 = vld [vmem:[%s7675_s1 + $0x568] sm:$0xff]  ;;  %v4816_v56 = vcombine.low %v220_v42, %v224_v43 }
  0x3c   :  { %v4826_v2 = vcombine.low %v229_v53, %v233_v55  ;;  %v281_v43 = vld [vmem:[%s7675_s1 + $0x6e8] sm:$0xff] }
  0x3e   :  { %1675 = vmatpush1.bf16.msra.mxu0 %v4768_v62  ;;  %1777 = vmatpush1.bf16.msra.mxu1 %v4770_v63  ;;  %v237_v62 = vld [vmem:[%s7675_s1 + $0x588] sm:$0xff]  ;;  %v4827_v63 = vcombine.high %v229_v53, %v233_v55 }
  0x3f   :  { %1676 = vmatprep.subr.bf16.mxu0 %v4777_v0  ;;  %1778 = vmatprep.subr.bf16.mxu1 %v4779_v1  ;;  %v241_v0 = vld [vmem:[%s7675_s1 + $0x5a8] sm:$0xff]  ;;  %v4824_v1 = vcombine.low %v228_v51, %v232_v52 }
  0x40   :  { %v4835_v7 = vcombine.high %v237_v62, %v241_v0  ;;  %v289_v52 = vld [vmem:[%s7675_s1 + $0x728] sm:$0xff] }
  0x42   :  { %1677 = vmatpush1.bf16.msra.mxu0 %v4776_v6  ;;  %1779 = vmatpush1.bf16.msra.mxu1 %v4778_v9  ;;  %v245_v6 = vld [vmem:[%s7675_s1 + $0x5c8] sm:$0xff]  ;;  %v4832_v9 = vcombine.low %v236_v60, %v240_v61 }
  0x43   :  { %1697 = vmatprep.subr.bf16.mxu0 %v4785_v10  ;;  %1799 = vmatprep.subr.bf16.mxu1 %v4787_v11  ;;  %v4834_v10 = vcombine.low %v237_v62, %v241_v0  ;;  %v4841_v11 = vcombine.high %v244_v4, %v248_v5  ;;  %v4843_v16 = vcombine.high %v245_v6, %v249_v8  ;;  %v297_v61 = vld [vmem:[%s7675_s1 + $0x768] sm:$0xff] }
  0x45   :  { %1679 = vmatmul.mubr.bf16.vlgmr.msra.gmra.mrb[0].mxu0 %v6034_v14  ;;  %1781 = vmatmul.mubr.bf16.vlgmr.msra.gmra.mrb[0].mxu1 %v6034_v14 }
  0x46   :  { %1698 = vmatpush1.bf16.msra.mxu0 %v4784_v18  ;;  %1800 = vmatpush1.bf16.msra.mxu1 %v4786_v19  ;;  %v4840_v18 = vcombine.low %v244_v4, %v248_v5  ;;  %v4842_v19 = vcombine.low %v245_v6, %v249_v8  ;;  %v305_v5 = vld [vmem:[%s7675_s1 + $0x7a8] sm:$0xff] }
  0x47   :  { %1699 = vmatprep.subr.bf16.mxu0 %v4793_v20  ;;  %1801 = vmatprep.subr.bf16.mxu1 %v4795_v21  ;;  %v4849_v20 = vcombine.high %v252_v12, %v256_v13  ;;  %v260_v21 = vld [vmem:[%s7675_s1 + $0x640] sm:$0xff] }
  0x48   :  { %1688 = vmatprep.mubr.bf16.mxu0 %v6051_v24  ;;  %1790 = vmatprep.mubr.bf16.mxu1 %v6051_v24  ;;  %v4857_v29 = vcombine.high %v260_v21, %v264_v22  ;;  %v4856_v35 = vcombine.low %v260_v21, %v264_v22  ;;  %v42_v22 = vld [vmem:[%s7674_s0 + $0x10] sm:$0xff] }
  0x4a   :  { %1700 = vmatpush1.bf16.msra.mxu0 %v4792_v27  ;;  %1802 = vmatpush1.bf16.msra.mxu1 %v4794_v31  ;;  %v4848_v27 = vcombine.low %v252_v12, %v256_v13  ;;  %v272_v31 = vld [vmem:[%s7675_s1 + $0x6a0] sm:$0xff] }
  0x4b   :  { %1701 = vmatprep.subr.bf16.mxu0 %v4801_v32  ;;  %1803 = vmatprep.subr.bf16.mxu1 %v4803_v36  ;;  %v269_v32 = vld [vmem:[%s7675_s1 + $0x688] sm:$0xff]  ;;  %v4858_v36 = vcombine.low %v261_v23, %v265_v26  ;;  %v4865_v37 = vcombine.high %v268_v30, %v272_v31  ;;  %v4864_v44 = vcombine.low %v268_v30, %v272_v31  ;;  %v46_v23 = vld [vmem:[%s7674_s0 + $0x30] sm:$0xff]  ;;  %v71_v30 = vld [vmem:[%s7675_s1 + $0x58] sm:$0xff] }
  0x4c   :  { %v4867_v42 = vcombine.high %v269_v32, %v273_v34  ;;  %v70_v26 = vld [vmem:[%s7675_s1 + $0x50] sm:$0xff]  ;;  %v75_v31 = vld [vmem:[%s7675_s1 + $0x78] sm:$0xff] }
  0x4d   :  { %1689 = vmatmul.mubr.bf16.gmra.mrb[4].mxu0 %v6084_v38  ;;  %1791 = vmatmul.mubr.bf16.gmra.mrb[4].mxu1 %v6084_v38 }
  0x4e   :  { %1702 = vmatpush1.bf16.msra.mxu0 %v4800_v39  ;;  %1804 = vmatpush1.bf16.msra.mxu1 %v4802_v40  ;;  %v276_v39 = vld [vmem:[%s7675_s1 + $0x6c0] sm:$0xff] }
  0x4f   :  { %1703 = vmatprep.subr.bf16.mxu0 %v4809_v41  ;;  %1805 = vmatprep.subr.bf16.mxu1 %v4811_v45  ;;  %v280_v40 = vld [vmem:[%s7675_s1 + $0x6e0] sm:$0xff]  ;;  %v277_v41 = vld [vmem:[%s7675_s1 + $0x6c8] sm:$0xff]  ;;  %v4866_v45 = vcombine.low %v269_v32, %v273_v34  ;;  %v51_v32 = vld [vmem:[%s7674_s0 + $0x58] sm:$0xff] }
  0x50   :  { %4913 = vmatprep.mubr.msk.bf16.mxu0 %vm1614_vm0, %v6098_v47  ;;  %4916 = vmatprep.mubr.msk.bf16.mxu1 %vm1614_vm0, %v6098_v47  ;;  %v4873_v46 = vcombine.high %v276_v39, %v280_v40  ;;  %v4875_v51 = vcombine.high %v277_v41, %v281_v43  ;;  %v4872_v53 = vcombine.low %v276_v39, %v280_v40  ;;  %v82_v39 = vld [vmem:[%s7675_s1 + $0xb0] sm:$0xff] }
  0x52   :  { %1704 = vmatpush1.bf16.msra.mxu0 %v4808_v48  ;;  %1806 = vmatpush1.bf16.msra.mxu1 %v4810_v49  ;;  %v284_v48 = vld [vmem:[%s7675_s1 + $0x700] sm:$0xff] }
  0x53   :  { %1705 = vmatprep.subr.bf16.mxu0 %v4817_v50  ;;  %1807 = vmatprep.subr.bf16.mxu1 %v4819_v54  ;;  %v288_v49 = vld [vmem:[%s7675_s1 + $0x720] sm:$0xff]  ;;  %v285_v50 = vld [vmem:[%s7675_s1 + $0x708] sm:$0xff]  ;;  %v4874_v54 = vcombine.low %v277_v41, %v281_v43  ;;  %v83_v43 = vld [vmem:[%s7675_s1 + $0xb8] sm:$0xff] }
  0x54   :  { %v4881_v55 = vcombine.high %v284_v48, %v288_v49  ;;  %v4883_v60 = vcombine.high %v285_v50, %v289_v52  ;;  %v4880_v62 = vcombine.low %v284_v48, %v288_v49  ;;  %v86_v49 = vld [vmem:[%s7675_s1 + $0xd0] sm:$0xff] }
  0x56   :  { %1706 = vmatpush1.bf16.msra.mxu0 %v4816_v56  ;;  %1808 = vmatpush1.bf16.msra.mxu1 %v4818_v57  ;;  %v292_v56 = vld [vmem:[%s7675_s1 + $0x740] sm:$0xff] }
  0x57   :  { %1707 = vmatprep.subr.bf16.mxu0 %v4825_v59  ;;  %1809 = vmatprep.subr.bf16.mxu1 %v4827_v63  ;;  %v296_v57 = vld [vmem:[%s7675_s1 + $0x760] sm:$0xff]  ;;  %v293_v59 = vld [vmem:[%s7675_s1 + $0x748] sm:$0xff]  ;;  %v4882_v63 = vcombine.low %v285_v50, %v289_v52  ;;  %v90_v50 = vld [vmem:[%s7675_s1 + $0xf0] sm:$0xff] }
  0x58   :  { %v4889_v0 = vcombine.high %v292_v56, %v296_v57  ;;  %v4891_v4 = vcombine.high %v293_v59, %v297_v61  ;;  %v4888_v6 = vcombine.low %v292_v56, %v296_v57 }
  0x5a   :  { %1708 = vmatpush1.bf16.msra.mxu0 %v4824_v1  ;;  %1810 = vmatpush1.bf16.msra.mxu1 %v4826_v2  ;;  %v300_v1 = vld [vmem:[%s7675_s1 + $0x780] sm:$0xff] }
  0x5b   :  { %1709 = vmatprep.subr.bf16.mxu0 %v4833_v3  ;;  %1811 = vmatprep.subr.bf16.mxu1 %v4835_v7  ;;  %v304_v2 = vld [vmem:[%s7675_s1 + $0x7a0] sm:$0xff]  ;;  %v301_v3 = vld [vmem:[%s7675_s1 + $0x788] sm:$0xff]  ;;  %v4890_v7 = vcombine.low %v293_v59, %v297_v61  ;;  %v94_v59 = vld [vmem:[%s7675_s1 + $0x110] sm:$0xff] }
  0x5c   :  { %v4897_v8 = vcombine.high %v300_v1, %v304_v2  ;;  %v4896_v12 = vcombine.low %v300_v1, %v304_v2  ;;  %v4898_v13 = vcombine.low %v301_v3, %v305_v5  ;;  %v4684_v2 = vcombine.low %v86_v49, %v90_v50 }
  0x5e   :  { %1710 = vmatpush1.bf16.msra.mxu0 %v4832_v9  ;;  %1812 = vmatpush1.bf16.msra.mxu1 %v4834_v10  ;;  %v308_v9 = vld [vmem:[%s7675_s1 + $0x7c0] sm:$0xff]  ;;  %v4899_v10 = vcombine.high %v301_v3, %v305_v5  ;;  %v102_v3 = vld [vmem:[%s7675_s1 + $0x150] sm:$0xff] }
  0x5f   :  { %1711 = vmatprep.subr.bf16.mxu0 %v4841_v11  ;;  %1813 = vmatprep.subr.bf16.mxu1 %v4843_v16  ;;  %v309_v11 = vld [vmem:[%s7675_s1 + $0x7c8] sm:$0xff]  ;;  %v4905_v15 = vcombine.high %v308_v9, %v308_v9  ;;  %v4904_v16 = vcombine.low %v308_v9, %v308_v9  ;;  %v107_v9 = vld [vmem:[%s7675_s1 + $0x178] sm:$0xff] }
  0x60   :  { %v4906_v21 = vcombine.low %v309_v11, %v309_v11 }
  0x62   :  { %1712 = vmatpush1.bf16.msra.mxu0 %v4840_v18  ;;  %1814 = vmatpush1.bf16.msra.mxu1 %v4842_v19  ;;  %v66_v18 = vld [vmem:[%s7675_s1 + $0x30] sm:$0xff]  ;;  %v63_v19 = vld [vmem:[%s7675_s1 + $0x18] sm:$0xff] }
  0x63   :  { %1713 = vmatprep.subr.bf16.mxu0 %v4849_v20  ;;  %1815 = vmatprep.subr.bf16.mxu1 %v4851_v25  ;;  %v4907_v20 = vcombine.high %v309_v11, %v309_v11  ;;  %v67_v25 = vld [vmem:[%s7675_s1 + $0x38] sm:$0xff]  ;;  %v110_v11 = vld [vmem:[%s7675_s1 + $0x190] sm:$0xff] }
  0x64   :  { %v4663_v34 = vcombine.high %v63_v19, %v67_v25  ;;  %v4662_v40 = vcombine.low %v63_v19, %v67_v25  ;;  %v118_v19 = vld [vmem:[%s7675_s1 + $0x1d0] sm:$0xff]  ;;  %v123_v25 = vld [vmem:[%s7675_s1 + $0x1f8] sm:$0xff] }
  0x66   :  { %1714 = vmatpush1.bf16.msra.mxu0 %v4848_v27  ;;  %1816 = vmatpush1.bf16.msra.mxu1 %v4850_v28  ;;  %v74_v27 = vld [vmem:[%s7675_s1 + $0x70] sm:$0xff]  ;;  %v1623_v28 = vsel %vm1621_vm1, %v4904_v16, 0  ;;  %v111_v16 = vld [vmem:[%s7675_s1 + $0x198] sm:$0xff] }
  0x67   :  { %1715 = vmatprep.subr.bf16.mxu0 %v4857_v29  ;;  %1817 = vmatprep.subr.bf16.mxu1 %v4859_v33  ;;  %v4661_v29 = vcombine.high %v62_v17, %v66_v18  ;;  %v1629_v33 = vsel %vm1621_vm1, %v4906_v21, 0  ;;  %v4669_v41 = vcombine.high %v70_v26, %v74_v27  ;;  %v4668_v48 = vcombine.low %v70_v26, %v74_v27 }
  0x6a   :  { %1716 = vmatpush1.bf16.msra.mxu0 %v4856_v35  ;;  %1818 = vmatpush1.bf16.msra.mxu1 %v4858_v36  ;;  %v6269_v35 = vpack.c.bf16 %v46_v23, %v42_v22  ;;  %v4660_v36 = vcombine.low %v62_v17, %v66_v18  ;;  %v119_v23 = vld [vmem:[%s7675_s1 + $0x1d8] sm:$0xff] }
  0x6b   :  { %1717 = vmatprep.subr.bf16.mxu0 %v4865_v37  ;;  %1819 = vmatprep.subr.bf16.mxu1 %v4867_v42  ;;  %v78_v37 = vld [vmem:[%s7675_s1 + $0x90] sm:$0xff]  ;;  %v79_v42 = vld [vmem:[%s7675_s1 + $0x98] sm:$0xff] }
  0x6c   :  { %v4677_v52 = vcombine.high %v78_v37, %v82_v39  ;;  %v4676_v57 = vcombine.low %v78_v37, %v82_v39  ;;  %v4678_v61 = vcombine.low %v79_v42, %v83_v43  ;;  %v134_v37 = vld [vmem:[%s7675_s1 + $0x250] sm:$0xff] }
  0x6d   :  { %v138_v39 = vld [vmem:[%s7675_s1 + $0x270] sm:$0xff] }
  0x6e   :  { %1718 = vmatpush1.bf16.msra.mxu0 %v4864_v44  ;;  %1820 = vmatpush1.bf16.msra.mxu1 %v4866_v45  ;;  %v4671_v44 = vcombine.high %v71_v30, %v75_v31  ;;  %v6283_v45 = vpack.c.bf16 %v51_v32, %v51_v32  ;;  %v127_v32 = vld [vmem:[%s7675_s1 + $0x218] sm:$0xff] }
  0x6f   :  { %1719 = vmatprep.subr.bf16.mxu0 %v4873_v46  ;;  %1821 = vmatprep.subr.bf16.mxu1 %v4875_v51  ;;  %v50_v46 = vld [vmem:[%s7674_s0 + $0x50] sm:$0xff]  ;;  %v4670_v51 = vcombine.low %v71_v30, %v75_v31 }
  0x70   :  { %v6306_v56 = vpack.c.bf16 %v50_v46, %v50_v46 }
  0x72   :  { %1720 = vmatpush1.bf16.msra.mxu0 %v4872_v53  ;;  %1822 = vmatpush1.bf16.msra.mxu1 %v4874_v54  ;;  %v87_v53 = vld [vmem:[%s7675_s1 + $0xd8] sm:$0xff] }
  0x73   :  { %1721 = vmatprep.subr.bf16.mxu0 %v4881_v55  ;;  %1823 = vmatprep.subr.bf16.mxu1 %v4883_v60  ;;  %v91_v54 = vld [vmem:[%s7675_s1 + $0xf8] sm:$0xff]  ;;  %v4679_v55 = vcombine.high %v79_v42, %v83_v43  ;;  %v98_v60 = vld [vmem:[%s7675_s1 + $0x130] sm:$0xff] }
  0x74   :  { %v4687_v1 = vcombine.high %v87_v53, %v91_v54  ;;  %v4686_v5 = vcombine.low %v87_v53, %v91_v54  ;;  %v135_v42 = vld [vmem:[%s7675_s1 + $0x258] sm:$0xff] }
  0x75   :  { %v139_v43 = vld [vmem:[%s7675_s1 + $0x278] sm:$0xff] }
  0x76   :  { %1722 = vmatpush1.bf16.msra.mxu0 %v4880_v62  ;;  %1824 = vmatpush1.bf16.msra.mxu1 %v4882_v63  ;;  %v4685_v62 = vcombine.high %v86_v49, %v90_v50  ;;  %v95_v63 = vld [vmem:[%s7675_s1 + $0x118] sm:$0xff]  ;;  %v146_v49 = vld [vmem:[%s7675_s1 + $0x2b0] sm:$0xff]  ;;  %v4735_v54 = vcombine.high %v135_v42, %v139_v43 }
  0x77   :  { %1723 = vmatprep.subr.bf16.mxu0 %v4889_v0  ;;  %1825 = vmatprep.subr.bf16.mxu1 %v4891_v4  ;;  %v99_v0 = vld [vmem:[%s7675_s1 + $0x138] sm:$0xff]  ;;  %v106_v4 = vld [vmem:[%s7675_s1 + $0x170] sm:$0xff] }
  0x78   :  { %v4700_v18 = vcombine.low %v102_v3, %v106_v4  ;;  %v147_v53 = vld [vmem:[%s7675_s1 + $0x2b8] sm:$0xff] }
  0x7a   :  { %1724 = vmatpush1.bf16.msra.mxu0 %v4888_v6  ;;  %1826 = vmatpush1.bf16.msra.mxu1 %v4890_v7  ;;  %v4693_v6 = vcombine.high %v94_v59, %v98_v60  ;;  %v103_v7 = vld [vmem:[%s7675_s1 + $0x158] sm:$0xff] }
  0x7b   :  { %1725 = vmatprep.subr.bf16.mxu0 %v4897_v8  ;;  %1827 = vmatprep.subr.bf16.mxu1 %v4899_v10  ;;  %v4695_v8 = vcombine.high %v95_v63, %v99_v0  ;;  %v4692_v10 = vcombine.low %v94_v59, %v98_v60  ;;  %v4703_v17 = vcombine.high %v103_v7, %v107_v9  ;;  %v154_v59 = vld [vmem:[%s7675_s1 + $0x2f0] sm:$0xff] }
  0x7c   :  { %v4702_v21 = vcombine.low %v103_v7, %v107_v9  ;;  %v4734_v60 = vcombine.low %v135_v42, %v139_v43  ;;  %v163_v7 = vld [vmem:[%s7675_s1 + $0x338] sm:$0xff] }
  0x7d   :  { %v195_v42 = vld [vmem:[%s7675_s1 + $0x438] sm:$0xff] }
  0x7e   :  { %1726 = vmatpush1.bf16.msra.mxu0 %v4896_v12  ;;  %1828 = vmatpush1.bf16.msra.mxu1 %v4898_v13  ;;  %v114_v12 = vld [vmem:[%s7675_s1 + $0x1b0] sm:$0xff]  ;;  %v4694_v13 = vcombine.low %v95_v63, %v99_v0  ;;  %v155_v63 = vld [vmem:[%s7675_s1 + $0x2f8] sm:$0xff] }
  0x7f   :  { %4912 = vmatprep.subr.msk.bf16.mxu0 %vm1621_vm1, %v4905_v15  ;;  %4915 = vmatprep.subr.msk.bf16.mxu1 %vm1621_vm1, %v4907_v20  ;;  %v4701_v15 = vcombine.high %v102_v3, %v106_v4  ;;  %v122_v20 = vld [vmem:[%s7675_s1 + $0x1f0] sm:$0xff]  ;;  %v4709_v22 = vcombine.high %v110_v11, %v114_v12  ;;  %v4708_v27 = vcombine.low %v110_v11, %v114_v12 }
  0x80   :  { %v4717_v31 = vcombine.high %v118_v19, %v122_v20  ;;  %v162_v3 = vld [vmem:[%s7675_s1 + $0x330] sm:$0xff] }
  0x81   :  { %v170_v11 = vld [vmem:[%s7675_s1 + $0x370] sm:$0xff] }
  0x82   :  { %1728 = vmatpush1.bf16.msra.mxu0 %v1623_v28  ;;  %1830 = vmatpush1.bf16.msra.mxu1 %v1629_v33  ;;  %v126_v28 = vld [vmem:[%s7675_s1 + $0x210] sm:$0xff]  ;;  %v131_v33 = vld [vmem:[%s7675_s1 + $0x238] sm:$0xff] }
  0x83   :  { %1850 = vmatprep.subr.bf16.mxu0 %v4661_v29  ;;  %1952 = vmatprep.subr.bf16.mxu1 %v4663_v34  ;;  %v130_v29 = vld [vmem:[%s7675_s1 + $0x230] sm:$0xff]  ;;  %v4719_v34 = vcombine.high %v119_v23, %v123_v25  ;;  %v4726_v50 = vcombine.low %v127_v32, %v131_v33 }
  0x84   :  { %v4724_v46 = vcombine.low %v126_v28, %v130_v29 }
  0x85   :  { %1730 = vmatmul.mubr.bf16.vlgmr.msra.gmra.mrb[0].mxu0 %v6269_v35  ;;  %1832 = vmatmul.mubr.bf16.vlgmr.msra.gmra.mrb[0].mxu1 %v6269_v35 }
  0x86   :  { %1851 = vmatpush1.bf16.msra.mxu0 %v4660_v36  ;;  %1953 = vmatpush1.bf16.msra.mxu1 %v4662_v40  ;;  %v4716_v36 = vcombine.low %v118_v19, %v122_v20  ;;  %v4718_v40 = vcombine.low %v119_v23, %v123_v25  ;;  %v178_v19 = vld [vmem:[%s7675_s1 + $0x3b0] sm:$0xff]  ;;  %v179_v23 = vld [vmem:[%s7675_s1 + $0x3b8] sm:$0xff] }
  0x87   :  { %1852 = vmatprep.subr.bf16.mxu0 %v4669_v41  ;;  %1954 = vmatprep.subr.bf16.mxu1 %v4671_v44  ;;  %v4725_v41 = vcombine.high %v126_v28, %v130_v29  ;;  %v4727_v44 = vcombine.high %v127_v32, %v131_v33  ;;  %v186_v28 = vld [vmem:[%s7675_s1 + $0x3f0] sm:$0xff]  ;;  %v187_v32 = vld [vmem:[%s7675_s1 + $0x3f8] sm:$0xff] }
  0x88   :  { %4914 = vmatprep.mubr.msk.bf16.mxu0 %vm1614_vm0, %v6283_v45  ;;  %4917 = vmatprep.mubr.msk.bf16.mxu1 %vm1614_vm0, %v6283_v45 }
  0x8a   :  { %1853 = vmatpush1.bf16.msra.mxu0 %v4668_v48  ;;  %1955 = vmatpush1.bf16.msra.mxu1 %v4670_v51  ;;  %v142_v48 = vld [vmem:[%s7675_s1 + $0x290] sm:$0xff]  ;;  %v4733_v51 = vcombine.high %v134_v37, %v138_v39 }
  0x8b   :  { %1854 = vmatprep.subr.bf16.mxu0 %v4677_v52  ;;  %1956 = vmatprep.subr.bf16.mxu1 %v4679_v55  ;;  %v143_v52 = vld [vmem:[%s7675_s1 + $0x298] sm:$0xff]  ;;  %v4732_v55 = vcombine.low %v134_v37, %v138_v39  ;;  %v194_v37 = vld [vmem:[%s7675_s1 + $0x430] sm:$0xff] }
  0x8c   :  { %v4743_v0 = vcombine.high %v143_v52, %v147_v53  ;;  %v4742_v4 = vcombine.low %v143_v52, %v147_v53  ;;  %v203_v52 = vld [vmem:[%s7675_s1 + $0x478] sm:$0xff] }
  0x8d   :  { %1740 = vmatmul.mubr.bf16.gmra.mrb[4].mxu0 %v6306_v56  ;;  %1842 = vmatmul.mubr.bf16.gmra.mrb[4].mxu1 %v6306_v56 }
  0x8e   :  { %1855 = vmatpush1.bf16.msra.mxu0 %v4676_v57  ;;  %1957 = vmatpush1.bf16.msra.mxu1 %v4678_v61  ;;  %v150_v57 = vld [vmem:[%s7675_s1 + $0x2d0] sm:$0xff]  ;;  %v4741_v61 = vcombine.high %v142_v48, %v146_v49 }
  0x8f   :  { %1856 = vmatprep.subr.bf16.mxu0 %v4685_v62  ;;  %1958 = vmatprep.subr.bf16.mxu1 %v4687_v1  ;;  %v151_v62 = vld [vmem:[%s7675_s1 + $0x2d8] sm:$0xff]  ;;  %v4740_v1 = vcombine.low %v142_v48, %v146_v49  ;;  %v4748_v9 = vcombine.low %v150_v57, %v154_v59  ;;  %v202_v48 = vld [vmem:[%s7675_s1 + $0x470] sm:$0xff] }
  0x90   :  { %1882 = vmatprep.mubr.bf16.mxu0 %v5904_v58  ;;  %1984 = vmatprep.mubr.bf16.mxu1 %v5904_v58  ;;  %v115_v58 = vld [vmem:[%s7675_s1 + $0x1b8] sm:$0xff]  ;;  %v4750_v12 = vcombine.low %v151_v62, %v155_v63 }
  0x91   :  { %v4711_v26 = vcombine.high %v111_v16, %v115_v58  ;;  %v4710_v30 = vcombine.low %v111_v16, %v115_v58  ;;  %v171_v16 = vld [vmem:[%s7675_s1 + $0x378] sm:$0xff] }
  0x92   :  { %1857 = vmatpush1.bf16.msra.mxu0 %v4684_v2  ;;  %1959 = vmatpush1.bf16.msra.mxu1 %v4686_v5  ;;  %v158_v2 = vld [vmem:[%s7675_s1 + $0x310] sm:$0xff]  ;;  %v4749_v5 = vcombine.high %v150_v57, %v154_v59 }
  0x93   :  { %1858 = vmatprep.subr.bf16.mxu0 %v4693_v6  ;;  %1960 = vmatprep.subr.bf16.mxu1 %v4695_v8  ;;  %v159_v6 = vld [vmem:[%s7675_s1 + $0x318] sm:$0xff]  ;;  %v4751_v8 = vcombine.high %v151_v62, %v155_v63  ;;  %v210_v57 = vld [vmem:[%s7675_s1 + $0x4b0] sm:$0xff] }
  0x94   :  { %v4759_v58 = vcombine.high %v159_v6, %v163_v7  ;;  %v4758_v20 = vcombine.low %v159_v6, %v163_v7  ;;  %v211_v62 = vld [vmem:[%s7675_s1 + $0x4b8] sm:$0xff] }
  0x96   :  { %1859 = vmatpush1.bf16.msra.mxu0 %v4692_v10  ;;  %1961 = vmatpush1.bf16.msra.mxu1 %v4694_v13  ;;  %v166_v10 = vld [vmem:[%s7675_s1 + $0x350] sm:$0xff]  ;;  %v4757_v13 = vcombine.high %v158_v2, %v162_v3 }
  0x97   :  { %1860 = vmatprep.subr.bf16.mxu0 %v4701_v15  ;;  %1962 = vmatprep.subr.bf16.mxu1 %v4703_v17  ;;  %v167_v15 = vld [vmem:[%s7675_s1 + $0x358] sm:$0xff]  ;;  %v4756_v17 = vcombine.low %v158_v2, %v162_v3 }
  0x98   :  { %v4767_v25 = vcombine.high %v167_v15, %v171_v16  ;;  %v4766_v29 = vcombine.low %v167_v15, %v171_v16 }
  0x9a   :  { %1861 = vmatpush1.bf16.msra.mxu0 %v4700_v18  ;;  %1963 = vmatpush1.bf16.msra.mxu1 %v4702_v21  ;;  %v174_v18 = vld [vmem:[%s7675_s1 + $0x390] sm:$0xff]  ;;  %v4765_v21 = vcombine.high %v166_v10, %v170_v11 }
  0x9b   :  { %1862 = vmatprep.subr.bf16.mxu0 %v4709_v22  ;;  %1964 = vmatprep.subr.bf16.mxu1 %v4711_v26  ;;  %v175_v22 = vld [vmem:[%s7675_s1 + $0x398] sm:$0xff]  ;;  %v4764_v26 = vcombine.low %v166_v10, %v170_v11 }
  0x9c   :  { %v4775_v33 = vcombine.high %v175_v22, %v179_v23  ;;  %v4774_v39 = vcombine.low %v175_v22, %v179_v23 }
  0x9e   :  { %1863 = vmatpush1.bf16.msra.mxu0 %v4708_v27  ;;  %1965 = vmatpush1.bf16.msra.mxu1 %v4710_v30  ;;  %v182_v27 = vld [vmem:[%s7675_s1 + $0x3d0] sm:$0xff]  ;;  %v4773_v30 = vcombine.high %v174_v18, %v178_v19 }
  0x9f   :  { %1864 = vmatprep.subr.bf16.mxu0 %v4717_v31  ;;  %1966 = vmatprep.subr.bf16.mxu1 %v4719_v34  ;;  %v183_v31 = vld [vmem:[%s7675_s1 + $0x3d8] sm:$0xff]  ;;  %v4772_v34 = vcombine.low %v174_v18, %v178_v19 }
  0xa0   :  { %v4783_v43 = vcombine.high %v183_v31, %v187_v32  ;;  %v4782_v49 = vcombine.low %v183_v31, %v187_v32 }
  0xa2   :  { %1865 = vmatpush1.bf16.msra.mxu0 %v4716_v36  ;;  %1967 = vmatpush1.bf16.msra.mxu1 %v4718_v40  ;;  %v190_v36 = vld [vmem:[%s7675_s1 + $0x410] sm:$0xff]  ;;  %v4781_v40 = vcombine.high %v182_v27, %v186_v28 }
  0xa3   :  { %1866 = vmatprep.subr.bf16.mxu0 %v4725_v41  ;;  %1968 = vmatprep.subr.bf16.mxu1 %v4727_v44  ;;  %v191_v41 = vld [vmem:[%s7675_s1 + $0x418] sm:$0xff]  ;;  %v4780_v44 = vcombine.low %v182_v27, %v186_v28 }
  0xa4   :  { %v4791_v53 = vcombine.high %v191_v41, %v195_v42  ;;  %v4790_v59 = vcombine.low %v191_v41, %v195_v42 }
  0xa6   :  { %1867 = vmatpush1.bf16.msra.mxu0 %v4724_v46  ;;  %1969 = vmatpush1.bf16.msra.mxu1 %v4726_v50  ;;  %v198_v46 = vld [vmem:[%s7675_s1 + $0x450] sm:$0xff]  ;;  %v4789_v50 = vcombine.high %v190_v36, %v194_v37 }
  0xa7   :  { %1868 = vmatprep.subr.bf16.mxu0 %v4733_v51  ;;  %1970 = vmatprep.subr.bf16.mxu1 %v4735_v54  ;;  %v199_v51 = vld [vmem:[%s7675_s1 + $0x458] sm:$0xff]  ;;  %v4788_v54 = vcombine.low %v190_v36, %v194_v37 }
  0xa8   :  { %v4799_v63 = vcombine.high %v199_v51, %v203_v52 }
  0xaa   :  { %1869 = vmatpush1.bf16.msra.mxu0 %v4732_v55  ;;  %1971 = vmatpush1.bf16.msra.mxu1 %v4734_v60  ;;  %v206_v55 = vld [vmem:[%s7675_s1 + $0x490] sm:$0xff]  ;;  %v4797_v60 = vcombine.high %v198_v46, %v202_v48 }
  0xab   :  { %1870 = vmatprep.subr.bf16.mxu0 %v4741_v61  ;;  %1972 = vmatprep.subr.bf16.mxu1 %v4743_v0  ;;  %v207_v61 = vld [vmem:[%s7675_s1 + $0x498] sm:$0xff]  ;;  %v4796_v0 = vcombine.low %v198_v46, %v202_v48  ;;  %v4805_v2 = vcombine.high %v206_v55, %v210_v57 }
  0xae   :  { %1871 = vmatpush1.bf16.msra.mxu0 %v4740_v1  ;;  %1973 = vmatpush1.bf16.msra.mxu1 %v4742_v4  ;;  %v4798_v1 = vcombine.low %v199_v51, %v203_v52 }
  0xaf   :  { %1872 = vmatprep.subr.bf16.mxu0 %v4749_v5  ;;  %1974 = vmatprep.subr.bf16.mxu1 %v4751_v8 }
  0xb2   :  { %1873 = vmatpush1.bf16.msra.mxu0 %v4748_v9  ;;  %1975 = vmatpush1.bf16.msra.mxu1 %v4750_v12 }
  0xb3   :  { %1874 = vmatprep.subr.bf16.mxu0 %v4757_v13  ;;  %1976 = vmatprep.subr.bf16.mxu1 %v4759_v58 }
  0xb6   :  { %1875 = vmatpush1.bf16.msra.mxu0 %v4756_v17  ;;  %1977 = vmatpush1.bf16.msra.mxu1 %v4758_v20 }
  0xb7   :  { %1876 = vmatprep.subr.bf16.mxu0 %v4765_v21  ;;  %1978 = vmatprep.subr.bf16.mxu1 %v4767_v25 }
  0xba   :  { %1877 = vmatpush1.bf16.msra.mxu0 %v4764_v26  ;;  %1979 = vmatpush1.bf16.msra.mxu1 %v4766_v29 }
  0xbb   :  { %1878 = vmatprep.subr.bf16.mxu0 %v4773_v30  ;;  %1980 = vmatprep.subr.bf16.mxu1 %v4775_v33 }
  0xbe   :  { %1879 = vmatpush1.bf16.msra.mxu0 %v4772_v34  ;;  %1981 = vmatpush1.bf16.msra.mxu1 %v4774_v39 }
  0xbf   :  { %1880 = vmatprep.subr.bf16.mxu0 %v4781_v40  ;;  %1982 = vmatprep.subr.bf16.mxu1 %v4783_v43 }
  0xc2   :  { %1881 = vmatpush1.bf16.msra.mxu0 %v4780_v44  ;;  %1983 = vmatpush1.bf16.msra.mxu1 %v4782_v49 }
  0xc3   :  { %1901 = vmatprep.subr.bf16.mxu0 %v4789_v50  ;;  %2003 = vmatprep.subr.bf16.mxu1 %v4791_v53 }
  0xc5   :  { %1883 = vmatmul.mubr.bf16.vlgmr.msra.gmra.mrb[8].mxu0 %v6034_v14  ;;  %1985 = vmatmul.mubr.bf16.vlgmr.msra.gmra.mrb[8].mxu1 %v6034_v14 }
  0xc6   :  { %1902 = vmatpush1.bf16.msra.mxu0 %v4788_v54  ;;  %2004 = vmatpush1.bf16.msra.mxu1 %v4790_v59 }
  0xc7   :  { %1903 = vmatprep.subr.bf16.mxu0 %v4797_v60 }
  0xc8   :  { %16 = vsyncpa [#allocation3], 0  ;;  %2005 = vmatprep.subr.bf16.mxu1 %v4799_v63  ;;  %v4807_v3 = vcombine.high %v207_v61, %v211_v62  ;;  %v214_v4 = vld [vmem:[%s7675_s1 + $0x4d0] sm:$0xff]  ;;  %1892 = vmatprep.mubr.bf16.mxu0 %v6051_v24  ;;  %v215_v14 = vld [vmem:[%s7675_s1 + $0x4d8] sm:$0xff]  ;;  %v4804_v7 = vcombine.low %v206_v55, %v210_v57  ;;  %v4806_v8 = vcombine.low %v207_v61, %v211_v62  ;;  %s5747_s26 = smov [#allocation2]  }
  0xc9   :  { %v218_v5 = vld [vmem:[%s7675_s1 + $0x4f0] sm:$0xff]  ;;  %v219_v6 = vld [vmem:[%s7675_s1 + $0x4f8] sm:$0xff]  ;;  %1994 = vmatprep.mubr.bf16.mxu1 %v6051_v24  ;;  %s4648_s27 = sshll.u32 %s5747_s26, 4  ;;  %s4649_s27 = int_to_ptr.vmem [resolvable:$true] %s4648_s27 }
  0xca   :  { %1904 = vmatpush1.bf16.msra.mxu0 %v4796_v0  ;;  %2006 = vmatpush1.bf16.msra.mxu1 %v4798_v1  ;;  %v4813_v9 = vcombine.high %v214_v4, %v218_v5  ;;  %v4815_v10 = vcombine.high %v215_v14, %v219_v6  ;;  %v222_v11 = vld [vmem:[%s7675_s1 + $0x510] sm:$0xff]  ;;  %v223_v24 = vld [vmem:[%s7675_s1 + $0x518] sm:$0xff]  ;;  %v4812_v15 = vcombine.low %v214_v4, %v218_v5  ;;  %s5720_s28 = scalar_lea.vmem %s4649_s27, 32  ;;  %p5725_p1 = scmp.lt.s32.totalorder %s4649_s27, %s4649_s27 }
  0xcb   :  { %1905 = vmatprep.subr.bf16.mxu0 %v4805_v2  ;;  %2007 = vmatprep.subr.bf16.mxu1 %v4807_v3  ;;  %v226_v12 = vld [vmem:[%s7675_s1 + $0x530] sm:$0xff]  ;;  %v227_v13 = vld [vmem:[%s7675_s1 + $0x538] sm:$0xff]  ;;  %v4814_v16 = vcombine.low %v215_v14, %v219_v6  ;;  %p5721_p0 = scmp.ne.s32.totalorder %s4649_s27, %s5720_s28  ;;  %p5726_p2 = scmp.lt.s32.totalorder %s5720_s28, %s5720_s28 }
  0xcc   :  { %v4821_v58 = vcombine.high %v222_v11, %v226_v12  ;;  %v4823_v17 = vcombine.high %v223_v24, %v227_v13  ;;  %v230_v18 = vld [vmem:[%s7675_s1 + $0x550] sm:$0xff]  ;;  %v235_v20 = vld [vmem:[%s7675_s1 + $0x578] sm:$0xff]  ;;  %v4820_v21 = vcombine.low %v222_v11, %v226_v12  ;;  %v4822_v22 = vcombine.low %v223_v24, %v227_v13 }
  0xcd   :  { %1893 = vmatmul.mubr.bf16.gmra.mrb[12].mxu0 %v6084_v38  ;;  %1995 = vmatmul.mubr.bf16.gmra.mrb[12].mxu1 %v6084_v38  ;;  %v234_v19 = vld [vmem:[%s7675_s1 + $0x570] sm:$0xff]  ;;  %v231_v38 = vld [vmem:[%s7675_s1 + $0x558] sm:$0xff]  ;;  %p5727_p3 = por %p5726_p2, %p5725_p1 }
  0xce   :  { %1906 = vmatpush1.bf16.msra.mxu0 %v4804_v7  ;;  %2008 = vmatpush1.bf16.msra.mxu1 %v4806_v8  ;;  %v4829_v23 = vcombine.high %v230_v18, %v234_v19  ;;  %v4831_v25 = vcombine.high %v231_v38, %v235_v20  ;;  %v238_v26 = vld [vmem:[%s7675_s1 + $0x590] sm:$0xff]  ;;  %v243_v28 = vld [vmem:[%s7675_s1 + $0x5b8] sm:$0xff]  ;;  %v4828_v29 = vcombine.low %v230_v18, %v234_v19 }
  0xcf   :  { %1907 = vmatprep.subr.bf16.mxu0 %v4813_v9  ;;  %2009 = vmatprep.subr.bf16.mxu1 %v4815_v10  ;;  %v242_v27 = vld [vmem:[%s7675_s1 + $0x5b0] sm:$0xff]  ;;  %v4830_v30 = vcombine.low %v231_v38, %v235_v20  ;;  %v247_v36 = vld [vmem:[%s7675_s1 + $0x5d8] sm:$0xff]  ;;  %p5728_p4 = pnand %p5727_p3, %p5721_p0 }
  0xd0   :  { %4919 = vmatprep.mubr.msk.bf16.mxu0 %vm1614_vm0, %v6098_v47  ;;  %4922 = vmatprep.mubr.msk.bf16.mxu1 %vm1614_vm0, %v6098_v47  ;;  %v239_v47 = vld [vmem:[%s7675_s1 + $0x598] sm:$0xff]  ;;  %v4837_v31 = vcombine.high %v238_v26, %v242_v27  ;;  %v246_v33 = vld [vmem:[%s7675_s1 + $0x5d0] sm:$0xff]  ;;  %v4836_v39 = vcombine.low %v238_v26, %v242_v27 }
  0xd1   :  { %v4839_v32 = vcombine.high %v239_v47, %v243_v28  ;;  %v250_v34 = vld [vmem:[%s7675_s1 + $0x5f0] sm:$0xff]  ;;  %v251_v37 = vld [vmem:[%s7675_s1 + $0x5f8] sm:$0xff]  ;;  %v4838_v40 = vcombine.low %v239_v47, %v243_v28 }
  0xd2   :  { %1908 = vmatpush1.bf16.msra.mxu0 %v4812_v15  ;;  %2010 = vmatpush1.bf16.msra.mxu1 %v4814_v16  ;;  %v4845_v41 = vcombine.high %v246_v33, %v250_v34  ;;  %v4847_v42 = vcombine.high %v247_v36, %v251_v37  ;;  %v254_v43 = vld [vmem:[%s7675_s1 + $0x610] sm:$0xff]  ;;  %v255_v46 = vld [vmem:[%s7675_s1 + $0x618] sm:$0xff]  ;;  %v4844_v49 = vcombine.low %v246_v33, %v250_v34 }
  0xd3   :  { %1909 = vmatprep.subr.bf16.mxu0 %v4821_v58  ;;  %2011 = vmatprep.subr.bf16.mxu1 %v4823_v17  ;;  %v258_v44 = vld [vmem:[%s7675_s1 + $0x630] sm:$0xff]  ;;  %v259_v48 = vld [vmem:[%s7675_s1 + $0x638] sm:$0xff]  ;;  %v4846_v50 = vcombine.low %v247_v36, %v251_v37 }
  0xd4   :  { %v4853_v51 = vcombine.high %v254_v43, %v258_v44  ;;  %v4855_v52 = vcombine.high %v255_v46, %v259_v48  ;;  %v262_v53 = vld [vmem:[%s7675_s1 + $0x650] sm:$0xff]  ;;  %v263_v55 = vld [vmem:[%s7675_s1 + $0x658] sm:$0xff]  ;;  %v4852_v59 = vcombine.low %v254_v43, %v258_v44  ;;  %v4854_v60 = vcombine.low %v255_v46, %v259_v48 }
  0xd5   :  { %v266_v54 = vld [vmem:[%s7675_s1 + $0x670] sm:$0xff]  ;;  %v267_v57 = vld [vmem:[%s7675_s1 + $0x678] sm:$0xff] }
  0xd6   :  { %1910 = vmatpush1.bf16.msra.mxu0 %v4820_v21  ;;  %2012 = vmatpush1.bf16.msra.mxu1 %v4822_v22  ;;  %v4861_v61 = vcombine.high %v262_v53, %v266_v54  ;;  %v4863_v62 = vcombine.high %v263_v55, %v267_v57  ;;  %v270_v63 = vld [vmem:[%s7675_s1 + $0x690] sm:$0xff]  ;;  %v271_v1 = vld [vmem:[%s7675_s1 + $0x698] sm:$0xff]  ;;  %v4860_v3 = vcombine.low %v262_v53, %v266_v54 }
  0xd7   :  { %1911 = vmatprep.subr.bf16.mxu0 %v4829_v23  ;;  %2013 = vmatprep.subr.bf16.mxu1 %v4831_v25  ;;  %v274_v0 = vld [vmem:[%s7675_s1 + $0x6b0] sm:$0xff]  ;;  %v275_v2 = vld [vmem:[%s7675_s1 + $0x6b8] sm:$0xff]  ;;  %v4862_v4 = vcombine.low %v263_v55, %v267_v57 }
  0xd8   :  { %v4869_v5 = vcombine.high %v270_v63, %v274_v0  ;;  %v4871_v14 = vcombine.high %v271_v1, %v275_v2  ;;  %v278_v6 = vld [vmem:[%s7675_s1 + $0x6d0] sm:$0xff]  ;;  %v279_v8 = vld [vmem:[%s7675_s1 + $0x6d8] sm:$0xff]  ;;  %v4868_v10 = vcombine.low %v270_v63, %v274_v0  ;;  %v4870_v11 = vcombine.low %v271_v1, %v275_v2  ;;  %v5423_v2 = vld [vmem:[%s7677_s3 + $0x144] ss:$40 sps:$4 sm:$0xff]  }
  0xd9   :  { %v282_v7 = vld [vmem:[%s7675_s1 + $0x6f0] sm:$0xff]  ;;  %v283_v9 = vld [vmem:[%s7675_s1 + $0x6f8] sm:$0xff] }
  0xda   :  { %1912 = vmatpush1.bf16.msra.mxu0 %v4828_v29  ;;  %2014 = vmatpush1.bf16.msra.mxu1 %v4830_v30  ;;  %v4877_v12 = vcombine.high %v278_v6, %v282_v7  ;;  %v4879_v24 = vcombine.high %v279_v8, %v283_v9  ;;  %v286_v13 = vld [vmem:[%s7675_s1 + $0x710] sm:$0xff]  ;;  %v287_v16 = vld [vmem:[%s7675_s1 + $0x718] sm:$0xff]  ;;  %v4876_v17 = vcombine.low %v278_v6, %v282_v7 }
  0xdb   :  { %1913 = vmatprep.subr.bf16.mxu0 %v4837_v31  ;;  %2015 = vmatprep.subr.bf16.mxu1 %v4839_v32  ;;  %v290_v15 = vld [vmem:[%s7675_s1 + $0x730] sm:$0xff]  ;;  %v291_v58 = vld [vmem:[%s7675_s1 + $0x738] sm:$0xff]  ;;  %v4878_v18 = vcombine.low %v279_v8, %v283_v9  ;;  %v5435_v8 = vld [vmem:[%s7677_s3 + $0x1e4] ss:$40 sps:$4 sm:$0xff]  }
  0xdc   :  { %v4885_v19 = vcombine.high %v286_v13, %v290_v15  ;;  %v4887_v38 = vcombine.high %v287_v16, %v291_v58  ;;  %v294_v20 = vld [vmem:[%s7675_s1 + $0x750] sm:$0xff]  ;;  %v295_v22 = vld [vmem:[%s7675_s1 + $0x758] sm:$0xff]  ;;  %v4884_v25 = vcombine.low %v286_v13, %v290_v15  ;;  %v4886_v26 = vcombine.low %v287_v16, %v291_v58  ;;  %v5447_v16 = vld [vmem:[%s7677_s3 + $0x284] ss:$40 sps:$4 sm:$0xff]  }
  0xdd   :  { %v298_v21 = vld [vmem:[%s7675_s1 + $0x770] sm:$0xff]  ;;  %v299_v23 = vld [vmem:[%s7675_s1 + $0x778] sm:$0xff] }
  0xde   :  { %1914 = vmatpush1.bf16.msra.mxu0 %v4836_v39  ;;  %2016 = vmatpush1.bf16.msra.mxu1 %v4838_v40  ;;  %v4893_v27 = vcombine.high %v294_v20, %v298_v21  ;;  %v4895_v47 = vcombine.high %v295_v22, %v299_v23  ;;  %v302_v28 = vld [vmem:[%s7675_s1 + $0x790] sm:$0xff]  ;;  %v303_v30 = vld [vmem:[%s7675_s1 + $0x798] sm:$0xff]  ;;  %v4892_v32 = vcombine.low %v294_v20, %v298_v21 }
  0xdf   :  { %1915 = vmatprep.subr.bf16.mxu0 %v4845_v41  ;;  %2017 = vmatprep.subr.bf16.mxu1 %v4847_v42  ;;  %v306_v29 = vld [vmem:[%s7675_s1 + $0x7b0] sm:$0xff]  ;;  %v307_v31 = vld [vmem:[%s7675_s1 + $0x7b8] sm:$0xff]  ;;  %v4894_v33 = vcombine.low %v295_v22, %v299_v23  ;;  %v5459_v22 = vld [vmem:[%s7677_s3 + $0x324] ss:$40 sps:$4 sm:$0xff]  }
  0xe0   :  { %v4901_v34 = vcombine.high %v302_v28, %v306_v29  ;;  %v4903_v36 = vcombine.high %v303_v30, %v307_v31  ;;  %v310_v37 = vld [vmem:[%s7675_s1 + $0x7d0] sm:$0xff]  ;;  %v311_v39 = vld [vmem:[%s7675_s1 + $0x7d8] sm:$0xff]  ;;  %v4900_v40 = vcombine.low %v302_v28, %v306_v29  ;;  %v4902_v41 = vcombine.low %v303_v30, %v307_v31  ;;  %v5471_v30 = vld [vmem:[%s7677_s3 + $0x3c4] ss:$40 sps:$4 sm:$0xff]  }
  0xe1   :  { %v4909_v42 = vcombine.high %v310_v37, %v310_v37  ;;  %v4908_v43 = vcombine.low %v310_v37, %v310_v37  ;;  %v4911_v44 = vcombine.high %v311_v39, %v311_v39  ;;  %v4910_v46 = vcombine.low %v311_v39, %v311_v39  ;;  %v5400_v53 = vld [vmem:[%s7677_s3 + $0x8] ss:$40 sps:$4 sm:$0xff]   ;;  %v5405_v54 = vld [vmem:[%s7677_s3 + $0x54] ss:$40 sps:$4 sm:$0xff]   ;;  %v5418_v1 = vld [vmem:[%s7677_s3 + $0xf8] ss:$40 sps:$4 sm:$0xff]  }
  0xe2   :  { %1916 = vmatpush1.bf16.msra.mxu0 %v4844_v49  ;;  %2018 = vmatpush1.bf16.msra.mxu1 %v4846_v50  ;;  %v5399_v49 = vld [vmem:[%s7677_s3 + $0x4] ss:$40 sps:$4 sm:$0xff]   ;;  %v5403_v57 = vld [vmem:[%s7677_s3 + $0x50] ss:$40 sps:$4 sm:$0xff]  }
  0xe3   :  { %1917 = vmatprep.subr.bf16.mxu0 %v4853_v51  ;;  %2019 = vmatprep.subr.bf16.mxu1 %v4855_v52  ;;  %v1635_v48 = vsel %vm1621_vm1, %v4908_v43, 0  ;;  %v1641_v50 = vsel %vm1621_vm1, %v4910_v46, 0  ;;  %v5402_v51 = vld [vmem:[%s7677_s3 + $0xc] ss:$40 sps:$4 sm:$0xff]   ;;  %v5397_v52 = vld [vmem:[%s7677_s3] ss:$40 sps:$4 sm:$0xff]  }
  0xe4   :  { %v5408_v55 = vld [vmem:[%s7677_s3 + $0x5c] ss:$40 sps:$4 sm:$0xff]   ;;  %v5415_v0 = vld [vmem:[%s7677_s3 + $0xf0] ss:$40 sps:$4 sm:$0xff]   ;;  %v5438_v9 = vld [vmem:[%s7677_s3 + $0x1ec] ss:$40 sps:$4 sm:$0xff]  }
  0xe5   :  { %v5420_v63 = vld [vmem:[%s7677_s3 + $0xfc] ss:$40 sps:$4 sm:$0xff]   ;;  %v5427_v6 = vld [vmem:[%s7677_s3 + $0x190] ss:$40 sps:$4 sm:$0xff]   ;;  %v5450_v58 = vld [vmem:[%s7677_s3 + $0x28c] ss:$40 sps:$4 sm:$0xff]  }
  0xe6   :  { %1918 = vmatpush1.bf16.msra.mxu0 %v4852_v59  ;;  %2020 = vmatpush1.bf16.msra.mxu1 %v4854_v60  ;;  %v5406_v59 = vld [vmem:[%s7677_s3 + $0x58] ss:$40 sps:$4 sm:$0xff]   ;;  %v5462_v23 = vld [vmem:[%s7677_s3 + $0x32c] ss:$40 sps:$4 sm:$0xff]  }
  0xe7   :  { %1919 = vmatprep.subr.bf16.mxu0 %v4861_v61  ;;  %2021 = vmatprep.subr.bf16.mxu1 %v4863_v62  ;;  %v5409_v60 = vld [vmem:[%s7677_s3 + $0xa0] ss:$40 sps:$4 sm:$0xff]   ;;  %v5417_v62 = vld [vmem:[%s7677_s3 + $0xf4] ss:$40 sps:$4 sm:$0xff]   ;;  %v5439_v13 = vld [vmem:[%s7677_s3 + $0x230] ss:$40 sps:$4 sm:$0xff]  }
  0xe8   :  { %v5412_v61 = vld [vmem:[%s7677_s3 + $0xa8] ss:$40 sps:$4 sm:$0xff]   ;;  %v5430_v7 = vld [vmem:[%s7677_s3 + $0x198] ss:$40 sps:$4 sm:$0xff]   ;;  %v5474_v31 = vld [vmem:[%s7677_s3 + $0x3cc] ss:$40 sps:$4 sm:$0xff]  }
  0xe9   :  { %v5442_v15 = vld [vmem:[%s7677_s3 + $0x238] ss:$40 sps:$4 sm:$0xff]  }
  0xea   :  { %1920 = vmatpush1.bf16.msra.mxu0 %v4860_v3  ;;  %2022 = vmatpush1.bf16.msra.mxu1 %v4862_v4  ;;  %v5421_v3 = vld [vmem:[%s7677_s3 + $0x140] ss:$40 sps:$4 sm:$0xff]   ;;  %v5451_v20 = vld [vmem:[%s7677_s3 + $0x2d0] ss:$40 sps:$4 sm:$0xff]  }
  0xeb   :  { %1921 = vmatprep.subr.bf16.mxu0 %v4869_v5  ;;  %2023 = vmatprep.subr.bf16.mxu1 %v4871_v14  ;;  %v5424_v4 = vld [vmem:[%s7677_s3 + $0x148] ss:$40 sps:$4 sm:$0xff]   ;;  %v5429_v5 = vld [vmem:[%s7677_s3 + $0x194] ss:$40 sps:$4 sm:$0xff]   ;;  %v5454_v21 = vld [vmem:[%s7677_s3 + $0x2d8] ss:$40 sps:$4 sm:$0xff]  }
  0xec   :  { %v5432_v14 = vld [vmem:[%s7677_s3 + $0x19c] ss:$40 sps:$4 sm:$0xff]   ;;  %v5463_v28 = vld [vmem:[%s7677_s3 + $0x370] ss:$40 sps:$4 sm:$0xff]  }
  0xed   :  { %v5466_v29 = vld [vmem:[%s7677_s3 + $0x378] ss:$40 sps:$4 sm:$0xff]  }
  0xee   :  { %1922 = vmatpush1.bf16.msra.mxu0 %v4868_v10  ;;  %2024 = vmatpush1.bf16.msra.mxu1 %v4870_v11  ;;  %v5433_v10 = vld [vmem:[%s7677_s3 + $0x1e0] ss:$40 sps:$4 sm:$0xff]  }
  0xef   :  { %1923 = vmatprep.subr.bf16.mxu0 %v4877_v12  ;;  %2025 = vmatprep.subr.bf16.mxu1 %v4879_v24  ;;  %v5436_v11 = vld [vmem:[%s7677_s3 + $0x1e8] ss:$40 sps:$4 sm:$0xff]   ;;  %v5441_v12 = vld [vmem:[%s7677_s3 + $0x234] ss:$40 sps:$4 sm:$0xff]   ;;  %v6828_v39 = vld [vmem:[%s7676_s2] sm:$0xff] }
  0xf0   :  { %v5444_v24 = vld [vmem:[%s7677_s3 + $0x23c] ss:$40 sps:$4 sm:$0xff]  }
  0xf2   :  { %1924 = vmatpush1.bf16.msra.mxu0 %v4876_v17  ;;  %2026 = vmatpush1.bf16.msra.mxu1 %v4878_v18  ;;  %v5445_v17 = vld [vmem:[%s7677_s3 + $0x280] ss:$40 sps:$4 sm:$0xff]  }
  0xf3   :  { %1925 = vmatprep.subr.bf16.mxu0 %v4885_v19  ;;  %2027 = vmatprep.subr.bf16.mxu1 %v4887_v38  ;;  %v5448_v18 = vld [vmem:[%s7677_s3 + $0x288] ss:$40 sps:$4 sm:$0xff]   ;;  %v5453_v19 = vld [vmem:[%s7677_s3 + $0x2d4] ss:$40 sps:$4 sm:$0xff]  }
  0xf4   :  { %v5456_v38 = vld [vmem:[%s7677_s3 + $0x2dc] ss:$40 sps:$4 sm:$0xff]  }
  0xf6   :  { %1926 = vmatpush1.bf16.msra.mxu0 %v4884_v25  ;;  %2028 = vmatpush1.bf16.msra.mxu1 %v4886_v26  ;;  %v5457_v25 = vld [vmem:[%s7677_s3 + $0x320] ss:$40 sps:$4 sm:$0xff]  }
  0xf7   :  { %1927 = vmatprep.subr.bf16.mxu0 %v4893_v27  ;;  %2029 = vmatprep.subr.bf16.mxu1 %v4895_v47  ;;  %v5460_v26 = vld [vmem:[%s7677_s3 + $0x328] ss:$40 sps:$4 sm:$0xff]   ;;  %v5465_v27 = vld [vmem:[%s7677_s3 + $0x374] ss:$40 sps:$4 sm:$0xff]  }
  0xf8   :  { %v5468_v47 = vld [vmem:[%s7677_s3 + $0x37c] ss:$40 sps:$4 sm:$0xff]  }
  0xfa   :  { %1928 = vmatpush1.bf16.msra.mxu0 %v4892_v32  ;;  %2030 = vmatpush1.bf16.msra.mxu1 %v4894_v33  ;;  %v5469_v32 = vld [vmem:[%s7677_s3 + $0x3c0] ss:$40 sps:$4 sm:$0xff]  }
  0xfb   :  { %1929 = vmatprep.subr.bf16.mxu0 %v4901_v34  ;;  %2031 = vmatprep.subr.bf16.mxu1 %v4903_v36  ;;  %v5472_v33 = vld [vmem:[%s7677_s3 + $0x3c8] ss:$40 sps:$4 sm:$0xff]   ;;  %v314_v34 = vlaneseq }
  0xfd   :  { %v6820_v36 = vshrl.u32 %v314_v34, 7 }
  0xfe   :  { %1930 = vmatpush1.bf16.msra.mxu0 %v4900_v40  ;;  %2032 = vmatpush1.bf16.msra.mxu1 %v4902_v41 }
  0xff   :  { %4918 = vmatprep.subr.msk.bf16.mxu0 %vm1621_vm1, %v4909_v42  ;;  %4921 = vmatprep.subr.msk.bf16.mxu1 %vm1621_vm1, %v4911_v44  ;;  %v6823_v37 = vsub.s32 0, %v6820_v36  ;;  %v324_v40 = vsub.s32 2, %v6820_v36  ;;  %v6832_v41 = vsub.s32 1, %v6820_v36  ;;  %v328_v42 = vsub.s32 3, %v6820_v36 }
 0x101   :  { %v317_v43 = vrot.slane %v6828_v39, %v6823_v37  ;;  %v325_v44 = vrot.slane %v6828_v39, %v324_v40  ;;  %v321_v46 = vrot.slane %v6828_v39, %v6832_v41 }
 0x102   :  { %1932 = vmatpush1.bf16.msra.mxu0 %v1635_v48  ;;  %2034 = vmatpush1.bf16.msra.mxu1 %v1641_v50  ;;  %v329_v48 = vrot.slane %v6828_v39, %v328_v42 }
 0x103   :  { %3060 = vmatprep.subr.bf16.mxu0 %v5399_v49  ;;  %3111 = vmatprep.subr.bf16.mxu1 %v5402_v51 }
 0x105   :  { %1934 = vmatmul.mubr.bf16.vlgmr.msra.gmra.mrb[8].mxu0 %v6269_v35  ;;  %2036 = vmatmul.mubr.bf16.vlgmr.msra.gmra.mrb[8].mxu1 %v6269_v35  ;;  %v5411_v35 = vld [vmem:[%s7677_s3 + $0xa4] ss:$40 sps:$4 sm:$0xff]  }
 0x106   :  { %4920 = vmatprep.mubr.msk.bf16.mxu0 %vm1614_vm0, %v6283_v45  ;;  %4923 = vmatprep.mubr.msk.bf16.mxu1 %vm1614_vm0, %v6283_v45  ;;  %v5414_v45 = vld [vmem:[%s7677_s3 + $0xac] ss:$40 sps:$4 sm:$0xff]  }
 0x107   :  { %3061 = vmatpush1.bf16.msra.mxu0 %v5397_v52  ;;  %3112 = vmatpush1.bf16.msra.mxu1 %v5400_v53  ;;  %v5477_v53 = vld [vmem:[%s7677_s3 + $0x414] ss:$40 sps:$4 sm:$0xff]  }
 0x108   :  { %3062 = vmatprep.subr.bf16.mxu0 %v5405_v54  ;;  %3113 = vmatprep.subr.bf16.mxu1 %v5408_v55  ;;  %v5480_v54 = vld [vmem:[%s7677_s3 + $0x41c] ss:$40 sps:$4 sm:$0xff]  }
 0x10b   :  { %3063 = vmatpush1.bf16.msra.mxu0 %v5403_v57  ;;  %3114 = vmatpush1.bf16.msra.mxu1 %v5406_v59 }
 0x10c   :  { %3064 = vmatprep.subr.bf16.mxu0 %v5411_v35  ;;  %3115 = vmatprep.subr.bf16.mxu1 %v5414_v45  ;;  %v5475_v45 = vld [vmem:[%s7677_s3 + $0x410] ss:$40 sps:$4 sm:$0xff]  }
 0x10d   :  { %1944 = vmatmul.mubr.bf16.gmra.mrb[12].mxu0 %v6306_v56  ;;  %2046 = vmatmul.mubr.bf16.gmra.mrb[12].mxu1 %v6306_v56  ;;  %v5426_v56 = vld [vmem:[%s7677_s3 + $0x14c] ss:$40 sps:$4 sm:$0xff]  }
 0x10f   :  { %3065 = vmatpush1.bf16.msra.mxu0 %v5409_v60  ;;  %3116 = vmatpush1.bf16.msra.mxu1 %v5412_v61  ;;  %v5478_v60 = vld [vmem:[%s7677_s3 + $0x418] ss:$40 sps:$4 sm:$0xff]  }
 0x110   :  { %3066 = vmatprep.subr.bf16.mxu0 %v5417_v62  ;;  %3117 = vmatprep.subr.bf16.mxu1 %v5420_v63 }
 0x113   :  { %3067 = vmatpush1.bf16.msra.mxu0 %v5415_v0  ;;  %3118 = vmatpush1.bf16.msra.mxu1 %v5418_v1 }
 0x114   :  { %3068 = vmatprep.subr.bf16.mxu0 %v5423_v2  ;;  %3119 = vmatprep.subr.bf16.mxu1 %v5426_v56 }
 0x117   :  { %3069 = vmatpush1.bf16.msra.mxu0 %v5421_v3  ;;  %3120 = vmatpush1.bf16.msra.mxu1 %v5424_v4 }
 0x118   :  { %3070 = vmatprep.subr.bf16.mxu0 %v5429_v5  ;;  %3121 = vmatprep.subr.bf16.mxu1 %v5432_v14 }
 0x11b   :  { %3071 = vmatpush1.bf16.msra.mxu0 %v5427_v6  ;;  %3122 = vmatpush1.bf16.msra.mxu1 %v5430_v7 }
 0x11c   :  { %3072 = vmatprep.subr.bf16.mxu0 %v5435_v8  ;;  %3123 = vmatprep.subr.bf16.mxu1 %v5438_v9  ;;  %v5483_v8 = vld [vmem:[%s7677_s3 + $0x464] ss:$40 sps:$4 sm:$0xff]  }
 0x11d   :  { %v5486_v9 = vld [vmem:[%s7677_s3 + $0x46c] ss:$40 sps:$4 sm:$0xff]  }
 0x11f   :  { %3073 = vmatpush1.bf16.msra.mxu0 %v5433_v10  ;;  %3124 = vmatpush1.bf16.msra.mxu1 %v5436_v11 }
 0x120   :  { %3074 = vmatprep.subr.bf16.mxu0 %v5441_v12  ;;  %3125 = vmatprep.subr.bf16.mxu1 %v5444_v24  ;;  %v5481_v24 = vld [vmem:[%s7677_s3 + $0x460] ss:$40 sps:$4 sm:$0xff]  }
 0x123   :  { %3075 = vmatpush1.bf16.msra.mxu0 %v5439_v13  ;;  %3126 = vmatpush1.bf16.msra.mxu1 %v5442_v15  ;;  %v5484_v13 = vld [vmem:[%s7677_s3 + $0x468] ss:$40 sps:$4 sm:$0xff]  }
 0x124   :  { %3076 = vmatprep.subr.bf16.mxu0 %v5447_v16  ;;  %3127 = vmatprep.subr.bf16.mxu1 %v5450_v58 }
 0x127   :  { %3077 = vmatpush1.bf16.msra.mxu0 %v5445_v17  ;;  %3128 = vmatpush1.bf16.msra.mxu1 %v5448_v18 }
 0x128   :  { %3078 = vmatprep.subr.bf16.mxu0 %v5453_v19  ;;  %3129 = vmatprep.subr.bf16.mxu1 %v5456_v38 }
 0x12b   :  { %3079 = vmatpush1.bf16.msra.mxu0 %v5451_v20  ;;  %3130 = vmatpush1.bf16.msra.mxu1 %v5454_v21  ;;  %v5489_v21 = vld [vmem:[%s7677_s3 + $0x4b4] ss:$40 sps:$4 sm:$0xff]  }
 0x12c   :  { %3080 = vmatprep.subr.bf16.mxu0 %v5459_v22  ;;  %3131 = vmatprep.subr.bf16.mxu1 %v5462_v23  ;;  %v5492_v22 = vld [vmem:[%s7677_s3 + $0x4bc] ss:$40 sps:$4 sm:$0xff]  }
 0x12f   :  { %3081 = vmatpush1.bf16.msra.mxu0 %v5457_v25  ;;  %3132 = vmatpush1.bf16.msra.mxu1 %v5460_v26 }
 0x130   :  { %3082 = vmatprep.subr.bf16.mxu0 %v5465_v27  ;;  %3133 = vmatprep.subr.bf16.mxu1 %v5468_v47  ;;  %v5487_v47 = vld [vmem:[%s7677_s3 + $0x4b0] ss:$40 sps:$4 sm:$0xff]  }
 0x133   :  { %3083 = vmatpush1.bf16.msra.mxu0 %v5463_v28  ;;  %3134 = vmatpush1.bf16.msra.mxu1 %v5466_v29  ;;  %v5490_v28 = vld [vmem:[%s7677_s3 + $0x4b8] ss:$40 sps:$4 sm:$0xff]  }
 0x134   :  { %3084 = vmatprep.subr.bf16.mxu0 %v5471_v30  ;;  %3135 = vmatprep.subr.bf16.mxu1 %v5474_v31 }
 0x137   :  { %3085 = vmatpush1.bf16.msra.mxu0 %v5469_v32  ;;  %3136 = vmatpush1.bf16.msra.mxu1 %v5472_v33 }
 0x138   :  { %3086 = vmatprep.subr.bf16.mxu0 %v5477_v53  ;;  %3137 = vmatprep.subr.bf16.mxu1 %v5480_v54  ;;  %v3316_v53 = vld [vmem:[%s7678_s4 + $0x8] sm:$0xff]  ;;  %v3317_v54 = vld [vmem:[%s7678_s4 + $0x10] sm:$0xff] }
 0x13b   :  { %3087 = vmatpush1.bf16.msra.mxu0 %v5475_v45  ;;  %3138 = vmatpush1.bf16.msra.mxu1 %v5478_v60 }
 0x13c   :  { %3088 = vmatprep.subr.bf16.mxu0 %v5483_v8  ;;  %3139 = vmatprep.subr.bf16.mxu1 %v5486_v9 }
 0x13f   :  { %3089 = vmatpush1.bf16.msra.mxu0 %v5481_v24  ;;  %3140 = vmatpush1.bf16.msra.mxu1 %v5484_v13 }
 0x140   :  { %3090 = vmatprep.subr.bf16.mxu0 %v5489_v21  ;;  %3141 = vmatprep.subr.bf16.mxu1 %v5492_v22 }
 0x143   :  { %3091 = vmatpush1.bf16.msra.mxu0 %v5487_v47  ;;  %3142 = vmatpush1.bf16.msra.mxu1 %v5490_v28 }
 0x158   :  { %v1731_v49 = vpop.f32.mrb[0].mxu0  ;;  %v1833_v51 = vpop.f32.mrb[0].mxu1 }
 0x159   :  { %v5327_v50 = vadd.f32 %v1731_v49, %v317_v43  ;;  %v1733_v52 = vpop.f32.mrb[1].mxu0  ;;  %v5333_v55 = vadd.f32 %v1833_v51, %v325_v44  ;;  %v1835_v59 = vpop.f32.mrb[1].mxu1  ;;  %v5498_v49 = vld [vmem:[%s7677_s3 + $0x1c] ss:$40 sps:$4 sm:$0xff]  }
 0x15a   :  { %v5328_v57 = vadd.f32 %v1733_v52, %v321_v46  ;;  %v1735_v35 = vpop.f32.mrb[2].mxu0  ;;  %v5334_v62 = vadd.f32 %v1835_v59, %v329_v48  ;;  %v1837_v0 = vpop.f32.mrb[2].mxu1  ;;  %3213 = vmatprep.subr.bf16.mxu1 %v5498_v49  ;;  %v3315_v51 = vld [vmem:[%s7678_s4] sm:$0xff]  ;;  %v5744_v52 = vmov 0   ;;  %v336_v59 = vsub.s32 5, %v6820_v36 }
 0x15b   :  { %v2054_v61 = vmax.f32 %v5327_v50, 0.0  ;;  %v5329_v63 = vadd.f32 %v1735_v35, %v317_v43  ;;  %v1737_v1 = vpop.f32.mrb[3].mxu0  ;;  %v2056_v2 = vmax.f32 %v5333_v55, 0.0  ;;  %v5335_v3 = vadd.f32 %v1837_v0, %v325_v44  ;;  %v1839_v5 = vpop.f32.mrb[3].mxu1  ;;  %5387 = vset.pattern.permute.xlu0 %v5744_v52  ;;  %5388 = vset.pattern.permute.xlu1 %v5744_v52 }
 0x15c   :  { %v2055_v56 = vmax.f32 %v5328_v57, 0.0  ;;  %v5330_v4 = vadd.f32 %v1737_v1, %v321_v46  ;;  %v2057_v14 = vmax.f32 %v5334_v62, 0.0  ;;  %v5336_v7 = vadd.f32 %v1839_v5, %v329_v48  ;;  %3322 = vperm.xlu0 %5387, %v3315_v51   ;;  %3332 = vperm.xlu1 %5388, %v3317_v54  }
 0x15d   :  { %v2062_v6 = vmax.f32 %v5329_v63, 0.0  ;;  %v6863_v10 = vmax.f32 %v2054_v61, %v2056_v2  ;;  %v2064_v11 = vmax.f32 %v5335_v3, 0.0  ;;  %v332_v55 = vsub.s32 4, %v6820_v36 }
 0x15e   :  { %v2063_v12 = vmax.f32 %v5330_v4, 0.0  ;;  %v6871_v15 = vmax.f32 %v2055_v56, %v2057_v14  ;;  %v2065_v16 = vmax.f32 %v5336_v7, 0.0  ;;  %v340_v57 = vsub.s32 6, %v6820_v36 }
 0x15f   :  { %v6873_v58 = vmax.f32 %v2062_v6, %v2064_v11  ;;  %v344_v35 = vsub.s32 7, %v6820_v36  ;;  %v333_v45 = vrot.slane %v6828_v39, %v332_v55  ;;  %v337_v61 = vrot.slane %v6828_v39, %v336_v59 }
 0x160   :  { %v1741_v17 = vpop.f32.mrb[4].mxu0  ;;  %v6875_v18 = vmax.f32 %v2063_v12, %v2065_v16  ;;  %v1843_v38 = vpop.f32.mrb[4].mxu1  ;;  %3327 = vperm.xlu0 %5387, %v3316_v53   ;;  %v341_v60 = vrot.slane %v6828_v39, %v340_v57 }
 0x161   :  { %v5331_v19 = vadd.f32 %v1741_v17, %v317_v43  ;;  %v1743_v20 = vpop.f32.mrb[5].mxu0  ;;  %v5337_v23 = vadd.f32 %v1843_v38, %v325_v44  ;;  %v1845_v26 = vpop.f32.mrb[5].mxu1  ;;  %v345_v62 = vrot.slane %v6828_v39, %v344_v35 }
 0x162   :  { %v5332_v25 = vadd.f32 %v1743_v20, %v321_v46  ;;  %v1745_v27 = vpop.f32.mrb[6].mxu0  ;;  %v5338_v30 = vadd.f32 %v1845_v26, %v329_v48  ;;  %v1847_v31 = vpop.f32.mrb[6].mxu1  ;;  %v5495_v46 = vld [vmem:[%s7677_s3 + $0x14] ss:$40 sps:$4 sm:$0xff]  }
 0x163   :  { %v2070_v29 = vmax.f32 %v5331_v19, 0.0  ;;  %v1746_v32 = vpop.f32.mrb[7].mxu0  ;;  %v2072_v33 = vmax.f32 %v5337_v23, 0.0  ;;  %v1848_v43 = vpop.f32.mrb[7].mxu1  ;;  %3162 = vmatprep.subr.bf16.mxu0 %v5495_v46 }
 0x164   :  { %v2071_v34 = vmax.f32 %v5332_v25, 0.0  ;;  %v2073_v44 = vmax.f32 %v5338_v30, 0.0 }
 0x165   :  { %v6895_v50 = vmax.f32 %v2070_v29, %v2072_v33 }
 0x166   :  { %v6897_v48 = vmax.f32 %v2071_v34, %v2073_v44 }
 0x1d8   :  { %v1935_v63 = vpop.f32.mrb[8].mxu0  ;;  %v2037_v1 = vpop.f32.mrb[8].mxu1 }
 0x1d9   :  { %v5339_v0 = vadd.f32 %v1935_v63, %v333_v45  ;;  %v1937_v2 = vpop.f32.mrb[9].mxu0  ;;  %v5345_v56 = vadd.f32 %v2037_v1, %v341_v60  ;;  %v2039_v4 = vpop.f32.mrb[9].mxu1 }
 0x1da   :  { %v5340_v3 = vadd.f32 %v1937_v2, %v337_v61  ;;  %v1939_v5 = vpop.f32.mrb[10].mxu0  ;;  %v5346_v6 = vadd.f32 %v2039_v4, %v345_v62  ;;  %v2041_v8 = vpop.f32.mrb[10].mxu1  ;;  %v5499_v4 = vld [vmem:[%s7677_s3 + $0x60] ss:$40 sps:$4 sm:$0xff]  }
 0x1db   :  { %v2058_v14 = vmax.f32 %v5339_v0, 0.0  ;;  %v5341_v7 = vadd.f32 %v1939_v5, %v333_v45  ;;  %v1941_v9 = vpop.f32.mrb[11].mxu0  ;;  %v2060_v11 = vmax.f32 %v5345_v56, 0.0  ;;  %v5347_v24 = vadd.f32 %v2041_v8, %v341_v60  ;;  %v2043_v16 = vpop.f32.mrb[11].mxu1  ;;  %v5502_v5 = vld [vmem:[%s7677_s3 + $0x68] ss:$40 sps:$4 sm:$0xff]  }
 0x1dc   :  { %v2059_v12 = vmax.f32 %v5340_v3, 0.0  ;;  %v5342_v13 = vadd.f32 %v1941_v9, %v337_v61  ;;  %v2061_v17 = vmax.f32 %v5346_v6, 0.0  ;;  %v5348_v19 = vadd.f32 %v2043_v16, %v345_v62  ;;  %v5505_v6 = vld [vmem:[%s7677_s3 + $0xb0] ss:$40 sps:$4 sm:$0xff]   ;;  %v5513_v9 = vld [vmem:[%s7677_s3 + $0x104] ss:$40 sps:$4 sm:$0xff]  }
 0x1dd   :  { %v2066_v39 = vmax.f32 %v5341_v7, 0.0  ;;  %v2084_v38 = vmax.f32 %v2058_v14, %v2060_v11  ;;  %v2068_v20 = vmax.f32 %v5347_v24, 0.0  ;;  %v5508_v7 = vld [vmem:[%s7677_s3 + $0xb8] ss:$40 sps:$4 sm:$0xff]   ;;  %v5516_v11 = vld [vmem:[%s7677_s3 + $0x10c] ss:$40 sps:$4 sm:$0xff]  }
 0x1de   :  { %v2067_v21 = vmax.f32 %v5342_v13, 0.0  ;;  %v2085_v22 = vmax.f32 %v2059_v12, %v2061_v17  ;;  %v2069_v23 = vmax.f32 %v5348_v19, 0.0  ;;  %v5511_v12 = vld [vmem:[%s7677_s3 + $0x100] ss:$40 sps:$4 sm:$0xff]   ;;  %v5519_v13 = vld [vmem:[%s7677_s3 + $0x154] ss:$40 sps:$4 sm:$0xff]  }
 0x1df   :  { %v2090_v25 = vmax.f32 %v6863_v10, %v2084_v38  ;;  %v2086_v26 = vmax.f32 %v2066_v39, %v2068_v20  ;;  %v5514_v24 = vld [vmem:[%s7677_s3 + $0x108] ss:$40 sps:$4 sm:$0xff]   ;;  %v5522_v16 = vld [vmem:[%s7677_s3 + $0x15c] ss:$40 sps:$4 sm:$0xff]   ;;  %v5520_v39 = vld [vmem:[%s7677_s3 + $0x158] ss:$40 sps:$4 sm:$0xff]  }
 0x1e0   :  { %v1945_v27 = vpop.f32.mrb[12].mxu0  ;;  %v2091_v47 = vmax.f32 %v6871_v15, %v2085_v22  ;;  %v2087_v28 = vmax.f32 %v2067_v21, %v2069_v23  ;;  %v2047_v30 = vpop.f32.mrb[12].mxu1  ;;  %v5517_v17 = vld [vmem:[%s7677_s3 + $0x150] ss:$40 sps:$4 sm:$0xff]   ;;  %v5525_v19 = vld [vmem:[%s7677_s3 + $0x1a4] ss:$40 sps:$4 sm:$0xff]  }
 0x1e1   :  { %v5343_v29 = vadd.f32 %v1945_v27, %v333_v45  ;;  %v1947_v31 = vpop.f32.mrb[13].mxu0  ;;  %v2092_v32 = vmax.f32 %v6873_v58, %v2086_v26  ;;  %v5349_v33 = vadd.f32 %v2047_v30, %v341_v60  ;;  %v2049_v43 = vpop.f32.mrb[13].mxu1  ;;  %v5493_v58 = vld [vmem:[%s7677_s3 + $0x10] ss:$40 sps:$4 sm:$0xff]   ;;  %v5528_v38 = vld [vmem:[%s7677_s3 + $0x1ac] ss:$40 sps:$4 sm:$0xff]  }
 0x1e2   :  { %v5344_v34 = vadd.f32 %v1947_v31, %v337_v61  ;;  %v1949_v44 = vpop.f32.mrb[14].mxu0  ;;  %v2093_v46 = vmax.f32 %v6875_v18, %v2087_v28  ;;  %v5350_v51 = vadd.f32 %v2049_v43, %v345_v62  ;;  %v2051_v53 = vpop.f32.mrb[14].mxu1  ;;  %v5496_v18 = vld [vmem:[%s7677_s3 + $0x18] ss:$40 sps:$4 sm:$0xff]   ;;  %v5501_v61 = vld [vmem:[%s7677_s3 + $0x64] ss:$40 sps:$4 sm:$0xff]  }
 0x1e3   :  { %v2074_v49 = vmax.f32 %v5343_v29, 0.0  ;;  %v1950_v10 = vpop.f32.mrb[15].mxu0  ;;  %v6930_v54 = vpack.c.bf16 %v2092_v32, %v2090_v25  ;;  %v2076_v63 = vmax.f32 %v5349_v33, 0.0  ;;  %v2052_v0 = vpop.f32.mrb[15].mxu1  ;;  %v5504_v62 = vld [vmem:[%s7677_s3 + $0x6c] ss:$40 sps:$4 sm:$0xff]  }
 0x1e4   :  { %v2075_v15 = vmax.f32 %v5344_v34, 0.0  ;;  %v6932_v45 = vpack.c.bf16 %v2093_v46, %v2091_v47  ;;  %v2077_v1 = vmax.f32 %v5350_v51, 0.0  ;;  %v5523_v20 = vld [vmem:[%s7677_s3 + $0x1a0] ss:$40 sps:$4 sm:$0xff]   ;;  %v5531_v22 = vld [vmem:[%s7677_s3 + $0x1f4] ss:$40 sps:$4 sm:$0xff]  }
 0x1e5   :  { %v2088_v60 = vmax.f32 %v2074_v49, %v2076_v63  ;;  %v5526_v21 = vld [vmem:[%s7677_s3 + $0x1a8] ss:$40 sps:$4 sm:$0xff]   ;;  %v5534_v23 = vld [vmem:[%s7677_s3 + $0x1fc] ss:$40 sps:$4 sm:$0xff]   ;;  %v5532_v26 = vld [vmem:[%s7677_s3 + $0x1f8] ss:$40 sps:$4 sm:$0xff]  }
 0x1e6   :  { %v2089_v2 = vmax.f32 %v2075_v15, %v2077_v1  ;;  %3092 = vmatprep.mubr.bf16.mxu0 %v6932_v45  ;;  %3143 = vmatprep.mubr.bf16.mxu1 %v6932_v45  ;;  %v5529_v25 = vld [vmem:[%s7677_s3 + $0x1f0] ss:$40 sps:$4 sm:$0xff]   ;;  %v5537_v27 = vld [vmem:[%s7677_s3 + $0x244] ss:$40 sps:$4 sm:$0xff]   ;;  %v5535_v28 = vld [vmem:[%s7677_s3 + $0x240] ss:$40 sps:$4 sm:$0xff]  }
 0x1e7   :  { %v2094_v56 = vmax.f32 %v6895_v50, %v2088_v60  ;;  %3093 = vmatmul.mubr.bf16.vlgmr.msra.gmra.mrb[16].mxu0 %v6930_v54  ;;  %3144 = vmatmul.mubr.bf16.vlgmr.msra.gmra.mrb[16].mxu1 %v6930_v54  ;;  %v5507_v50 = vld [vmem:[%s7677_s3 + $0xb4] ss:$40 sps:$4 sm:$0xff]   ;;  %v5538_v29 = vld [vmem:[%s7677_s3 + $0x248] ss:$40 sps:$4 sm:$0xff]   ;;  %v5544_v33 = vld [vmem:[%s7677_s3 + $0x298] ss:$40 sps:$4 sm:$0xff]  }
 0x1e8   :  { %v2095_v3 = vmax.f32 %v6897_v48, %v2089_v2  ;;  %3163 = vmatpush1.bf16.msra.mxu0 %v5493_v58  ;;  %3214 = vmatpush1.bf16.msra.mxu1 %v5496_v18  ;;  %v5510_v48 = vld [vmem:[%s7677_s3 + $0xbc] ss:$40 sps:$4 sm:$0xff]   ;;  %v5540_v47 = vld [vmem:[%s7677_s3 + $0x24c] ss:$40 sps:$4 sm:$0xff]   ;;  %v5541_v32 = vld [vmem:[%s7677_s3 + $0x290] ss:$40 sps:$4 sm:$0xff]  }
 0x1e9   :  { %3164 = vmatprep.subr.bf16.mxu0 %v5501_v61  ;;  %3215 = vmatprep.subr.bf16.mxu1 %v5504_v62  ;;  %v6972_v8 = vpack.c.bf16 %v2094_v56, %v2094_v56  ;;  %v5543_v30 = vld [vmem:[%s7677_s3 + $0x294] ss:$40 sps:$4 sm:$0xff]   ;;  %v5549_v34 = vld [vmem:[%s7677_s3 + $0x2e4] ss:$40 sps:$4 sm:$0xff]   ;;  %v5547_v44 = vld [vmem:[%s7677_s3 + $0x2e0] ss:$40 sps:$4 sm:$0xff]  }
 0x1ea   :  { %v6958_v14 = vpack.c.bf16 %v2095_v3, %v2095_v3  ;;  %v5546_v31 = vld [vmem:[%s7677_s3 + $0x29c] ss:$40 sps:$4 sm:$0xff]   ;;  %v5552_v43 = vld [vmem:[%s7677_s3 + $0x2ec] ss:$40 sps:$4 sm:$0xff]   ;;  %v5550_v46 = vld [vmem:[%s7677_s3 + $0x2e8] ss:$40 sps:$4 sm:$0xff]  }
 0x1eb   :  { %v5555_v49 = vld [vmem:[%s7677_s3 + $0x334] ss:$40 sps:$4 sm:$0xff]   ;;  %v5553_v53 = vld [vmem:[%s7677_s3 + $0x330] ss:$40 sps:$4 sm:$0xff]   ;;  %v5561_v63 = vld [vmem:[%s7677_s3 + $0x384] ss:$40 sps:$4 sm:$0xff]  }
 0x1ec   :  { %3165 = vmatpush1.bf16.msra.mxu0 %v5499_v4  ;;  %3216 = vmatpush1.bf16.msra.mxu1 %v5502_v5  ;;  %v5558_v51 = vld [vmem:[%s7677_s3 + $0x33c] ss:$40 sps:$4 sm:$0xff]   ;;  %v5556_v10 = vld [vmem:[%s7677_s3 + $0x338] ss:$40 sps:$4 sm:$0xff]   ;;  %v5564_v15 = vld [vmem:[%s7677_s3 + $0x38c] ss:$40 sps:$4 sm:$0xff]  }
 0x1ed   :  { %3102 = vmatprep.mubr.bf16.mxu0 %v6958_v14  ;;  %3153 = vmatprep.mubr.bf16.mxu1 %v6958_v14  ;;  %v5559_v0 = vld [vmem:[%s7677_s3 + $0x380] ss:$40 sps:$4 sm:$0xff]   ;;  %v5567_v58 = vld [vmem:[%s7677_s3 + $0x3d4] ss:$40 sps:$4 sm:$0xff]   ;;  %v5565_v60 = vld [vmem:[%s7677_s3 + $0x3d0] ss:$40 sps:$4 sm:$0xff]  }
 0x1ee   :  { %3166 = vmatprep.subr.bf16.mxu0 %v5507_v50  ;;  %3217 = vmatprep.subr.bf16.mxu1 %v5510_v48  ;;  %v5562_v1 = vld [vmem:[%s7677_s3 + $0x388] ss:$40 sps:$4 sm:$0xff]   ;;  %v5570_v18 = vld [vmem:[%s7677_s3 + $0x3dc] ss:$40 sps:$4 sm:$0xff]   ;;  %v5568_v61 = vld [vmem:[%s7677_s3 + $0x3d8] ss:$40 sps:$4 sm:$0xff]  }
 0x1ef   :  { %3103 = vmatmul.mubr.bf16.gmra.mrb[20].mxu0 %v6972_v8  ;;  %3154 = vmatmul.mubr.bf16.gmra.mrb[20].mxu1 %v6972_v8  ;;  %v5573_v62 = vld [vmem:[%s7677_s3 + $0x424] ss:$40 sps:$4 sm:$0xff]   ;;  %v5571_v56 = vld [vmem:[%s7677_s3 + $0x420] ss:$40 sps:$4 sm:$0xff]   ;;  %v5579_v4 = vld [vmem:[%s7677_s3 + $0x474] ss:$40 sps:$4 sm:$0xff]  }
 0x1f0   :  { %3167 = vmatpush1.bf16.msra.mxu0 %v5505_v6  ;;  %3218 = vmatpush1.bf16.msra.mxu1 %v5508_v7  ;;  %v5576_v2 = vld [vmem:[%s7677_s3 + $0x42c] ss:$40 sps:$4 sm:$0xff]   ;;  %v5574_v3 = vld [vmem:[%s7677_s3 + $0x428] ss:$40 sps:$4 sm:$0xff]   ;;  %v5582_v5 = vld [vmem:[%s7677_s3 + $0x47c] ss:$40 sps:$4 sm:$0xff]  }
 0x1f1   :  { %3194 = vmatprep.mubr.bf16.mxu0 %v6932_v45  ;;  %3245 = vmatprep.mubr.bf16.mxu1 %v6932_v45  ;;  %v5577_v50 = vld [vmem:[%s7677_s3 + $0x470] ss:$40 sps:$4 sm:$0xff]   ;;  %v5585_v6 = vld [vmem:[%s7677_s3 + $0x4c4] ss:$40 sps:$4 sm:$0xff]  }
 0x1f2   :  { %3168 = vmatprep.subr.bf16.mxu0 %v5513_v9  ;;  %3219 = vmatprep.subr.bf16.mxu1 %v5516_v11  ;;  %v5580_v48 = vld [vmem:[%s7677_s3 + $0x478] ss:$40 sps:$4 sm:$0xff]   ;;  %v5588_v7 = vld [vmem:[%s7677_s3 + $0x4cc] ss:$40 sps:$4 sm:$0xff]   ;;  %v5586_v11 = vld [vmem:[%s7677_s3 + $0x4c8] ss:$40 sps:$4 sm:$0xff]  }
 0x1f3   :  { %v5583_v9 = vld [vmem:[%s7677_s3 + $0x4c0] ss:$40 sps:$4 sm:$0xff]  }
 0x1f4   :  { %3169 = vmatpush1.bf16.msra.mxu0 %v5511_v12  ;;  %3220 = vmatpush1.bf16.msra.mxu1 %v5514_v24  ;;  %v5591_v12 = vld [vmem:[%s7677_s3 + $0x24] ss:$40 sps:$4 sm:$0xff]   ;;  %v5589_v24 = vld [vmem:[%s7677_s3 + $0x20] ss:$40 sps:$4 sm:$0xff]  }
 0x1f5   :  { %3170 = vmatprep.subr.bf16.mxu0 %v5519_v13  ;;  %3221 = vmatprep.subr.bf16.mxu1 %v5522_v16  ;;  %v5594_v13 = vld [vmem:[%s7677_s3 + $0x74] ss:$40 sps:$4 sm:$0xff]   ;;  %v5592_v16 = vld [vmem:[%s7677_s3 + $0x70] ss:$40 sps:$4 sm:$0xff]  }
 0x1f8   :  { %3171 = vmatpush1.bf16.msra.mxu0 %v5517_v17  ;;  %3222 = vmatpush1.bf16.msra.mxu1 %v5520_v39  ;;  %v5597_v17 = vld [vmem:[%s7677_s3 + $0xc4] ss:$40 sps:$4 sm:$0xff]   ;;  %v5595_v39 = vld [vmem:[%s7677_s3 + $0xc0] ss:$40 sps:$4 sm:$0xff]  }
 0x1f9   :  { %3172 = vmatprep.subr.bf16.mxu0 %v5525_v19  ;;  %3223 = vmatprep.subr.bf16.mxu1 %v5528_v38  ;;  %v5600_v19 = vld [vmem:[%s7677_s3 + $0x114] ss:$40 sps:$4 sm:$0xff]   ;;  %v5598_v38 = vld [vmem:[%s7677_s3 + $0x110] ss:$40 sps:$4 sm:$0xff]  }
 0x1fc   :  { %3173 = vmatpush1.bf16.msra.mxu0 %v5523_v20  ;;  %3224 = vmatpush1.bf16.msra.mxu1 %v5526_v21  ;;  %v5603_v20 = vld [vmem:[%s7677_s3 + $0x164] ss:$40 sps:$4 sm:$0xff]   ;;  %v5601_v21 = vld [vmem:[%s7677_s3 + $0x160] ss:$40 sps:$4 sm:$0xff]  }
 0x1fd   :  { %3174 = vmatprep.subr.bf16.mxu0 %v5531_v22  ;;  %3225 = vmatprep.subr.bf16.mxu1 %v5534_v23  ;;  %v5604_v22 = vld [vmem:[%s7677_s3 + $0x1b0] ss:$40 sps:$4 sm:$0xff]   ;;  %v5609_v23 = vld [vmem:[%s7677_s3 + $0x204] ss:$40 sps:$4 sm:$0xff]  }
 0x200   :  { %3175 = vmatpush1.bf16.msra.mxu0 %v5529_v25  ;;  %3226 = vmatpush1.bf16.msra.mxu1 %v5532_v26  ;;  %v5607_v25 = vld [vmem:[%s7677_s3 + $0x200] ss:$40 sps:$4 sm:$0xff]   ;;  %v5612_v26 = vld [vmem:[%s7677_s3 + $0x254] ss:$40 sps:$4 sm:$0xff]  }
 0x201   :  { %3176 = vmatprep.subr.bf16.mxu0 %v5537_v27  ;;  %3227 = vmatprep.subr.bf16.mxu1 %v5540_v47  ;;  %v5610_v27 = vld [vmem:[%s7677_s3 + $0x250] ss:$40 sps:$4 sm:$0xff]   ;;  %v5615_v47 = vld [vmem:[%s7677_s3 + $0x2a4] ss:$40 sps:$4 sm:$0xff]  }
 0x204   :  { %3177 = vmatpush1.bf16.msra.mxu0 %v5535_v28  ;;  %3228 = vmatpush1.bf16.msra.mxu1 %v5538_v29  ;;  %v5613_v28 = vld [vmem:[%s7677_s3 + $0x2a0] ss:$40 sps:$4 sm:$0xff]   ;;  %v5618_v29 = vld [vmem:[%s7677_s3 + $0x2f4] ss:$40 sps:$4 sm:$0xff]  }
 0x205   :  { %3178 = vmatprep.subr.bf16.mxu0 %v5543_v30  ;;  %3229 = vmatprep.subr.bf16.mxu1 %v5546_v31  ;;  %v5616_v30 = vld [vmem:[%s7677_s3 + $0x2f0] ss:$40 sps:$4 sm:$0xff]   ;;  %v5621_v31 = vld [vmem:[%s7677_s3 + $0x344] ss:$40 sps:$4 sm:$0xff]  }
 0x208   :  { %3179 = vmatpush1.bf16.msra.mxu0 %v5541_v32  ;;  %3230 = vmatpush1.bf16.msra.mxu1 %v5544_v33  ;;  %v5619_v32 = vld [vmem:[%s7677_s3 + $0x340] ss:$40 sps:$4 sm:$0xff]   ;;  %v5624_v33 = vld [vmem:[%s7677_s3 + $0x394] ss:$40 sps:$4 sm:$0xff]  }
 0x209   :  { %3180 = vmatprep.subr.bf16.mxu0 %v5549_v34  ;;  %3231 = vmatprep.subr.bf16.mxu1 %v5552_v43  ;;  %v5622_v34 = vld [vmem:[%s7677_s3 + $0x390] ss:$40 sps:$4 sm:$0xff]   ;;  %v5627_v43 = vld [vmem:[%s7677_s3 + $0x3e4] ss:$40 sps:$4 sm:$0xff]  }
 0x20c   :  { %3181 = vmatpush1.bf16.msra.mxu0 %v5547_v44  ;;  %3232 = vmatpush1.bf16.msra.mxu1 %v5550_v46  ;;  %v5625_v44 = vld [vmem:[%s7677_s3 + $0x3e0] ss:$40 sps:$4 sm:$0xff]   ;;  %v5630_v46 = vld [vmem:[%s7677_s3 + $0x434] ss:$40 sps:$4 sm:$0xff]  }
 0x20d   :  { %3182 = vmatprep.subr.bf16.mxu0 %v5555_v49  ;;  %3233 = vmatprep.subr.bf16.mxu1 %v5558_v51  ;;  %v5628_v49 = vld [vmem:[%s7677_s3 + $0x430] ss:$40 sps:$4 sm:$0xff]   ;;  %v5633_v51 = vld [vmem:[%s7677_s3 + $0x484] ss:$40 sps:$4 sm:$0xff]  }
 0x210   :  { %3183 = vmatpush1.bf16.msra.mxu0 %v5553_v53  ;;  %3234 = vmatpush1.bf16.msra.mxu1 %v5556_v10  ;;  %v5631_v53 = vld [vmem:[%s7677_s3 + $0x480] ss:$40 sps:$4 sm:$0xff]   ;;  %v5636_v10 = vld [vmem:[%s7677_s3 + $0x4d4] ss:$40 sps:$4 sm:$0xff]  }
 0x211   :  { %3184 = vmatprep.subr.bf16.mxu0 %v5561_v63  ;;  %3235 = vmatprep.subr.bf16.mxu1 %v5564_v15  ;;  %v5634_v63 = vld [vmem:[%s7677_s3 + $0x4d0] ss:$40 sps:$4 sm:$0xff]   ;;  %v7242_v15 = vpop.permute.xlu0 %3322 }
 0x214   :  { %3185 = vmatpush1.bf16.msra.mxu0 %v5559_v0  ;;  %3236 = vmatpush1.bf16.msra.mxu1 %v5562_v1  ;;  %v3318_v0 = vld [vmem:[%s7679_s5] sm:$0xff] }
 0x215   :  { %3186 = vmatprep.subr.bf16.mxu0 %v5567_v58  ;;  %3237 = vmatprep.subr.bf16.mxu1 %v5570_v18  ;;  %v7249_v1 = vrot.slane %v3318_v0, %v332_v55  ;;  %v3319_v58 = vld [vmem:[%s7679_s5 + $0x8] sm:$0x3]  ;;  %v7265_v18 = vrot.slane %v3318_v0, %v344_v35  ;;  %v7267_v55 = vpop.permute.xlu0 %3327 }
 0x216   :  { %v5662_v35 = vld [vmem:[%s7681_s7 + $0xe8] sm:$0xff]  }
 0x217   :  { %vm3391_vm4 = vcmp.eq.f32.partialorder %v7242_v15, %v7249_v1  ;;  %vm3401_vm5 = vcmp.eq.f32.partialorder %v7267_v55, %v7249_v1  ;;  %vm3394_vm7 = vcmp.eq.f32.partialorder %v7242_v15, %v7265_v18  ;;  %vm3404_vm8 = vcmp.eq.f32.partialorder %v7267_v55, %v7265_v18 }
 0x218   :  { %3187 = vmatpush1.bf16.msra.mxu0 %v5565_v60  ;;  %3238 = vmatpush1.bf16.msra.mxu1 %v5568_v61  ;;  %v7273_v60 = vrot.slane %v3319_v58, %v6832_v41  ;;  %vm7295_vm11 = vmpackc.low %vm3401_vm5, %vm3391_vm4  ;;  %v5664_v61 = vld [vmem:[%s7681_s7 + $0xa8] sm:$0xff]  }
 0x219   :  { %3188 = vmatprep.subr.bf16.mxu0 %v5573_v62  ;;  %3239 = vmatprep.subr.bf16.mxu1 %v5576_v2  ;;  %vm7303_vm14 = vmpackc.low %vm3404_vm8, %vm3394_vm7  ;;  %v5637_v62 = vld [vmem:[%s7681_s7 + $0x40] sm:$0xff]  }
 0x21a   :  { %vm3396_vm12 = vcmp.eq.f32.partialorder %v7242_v15, %v7273_v60  ;;  %vm3406_vm13 = vcmp.eq.f32.partialorder %v7267_v55, %v7273_v60 }
 0x21c   :  { %3189 = vmatpush1.bf16.msra.mxu0 %v5571_v56  ;;  %3240 = vmatpush1.bf16.msra.mxu1 %v5574_v3  ;;  %v3344_v56 = vrot.slane %v3318_v0, %v6832_v41  ;;  %v3340_v3 = vrot.slane %v3318_v0, %v6823_v37 }
 0x21d   :  { %3190 = vmatprep.subr.bf16.mxu0 %v5579_v4  ;;  %3241 = vmatprep.subr.bf16.mxu1 %v5582_v5  ;;  %v7325_v4 = vpop.permute.xlu1 %3332 }
 0x21e   :  { %vm3388_vm5 = vcmp.eq.f32.partialorder %v7242_v15, %v3344_v56  ;;  %vm3398_vm7 = vcmp.eq.f32.partialorder %v7267_v55, %v3344_v56  ;;  %vm3387_vm8 = vcmp.eq.f32.partialorder %v7242_v15, %v3340_v3 }
 0x220   :  { %3191 = vmatpush1.bf16.msra.mxu0 %v5577_v50  ;;  %3242 = vmatpush1.bf16.msra.mxu1 %v5580_v48 }
 0x221   :  { %3192 = vmatprep.subr.bf16.mxu0 %v5585_v6  ;;  %3243 = vmatprep.subr.bf16.mxu1 %v5588_v7 }
 0x224   :  { %3193 = vmatpush1.bf16.msra.mxu0 %v5583_v9  ;;  %3244 = vmatpush1.bf16.msra.mxu1 %v5586_v11 }
 0x225   :  { %3264 = vmatprep.subr.bf16.mxu0 %v5591_v12 }
 0x227   :  { %3195 = vmatmul.mubr.bf16.vlgmr.msra.gmra.mrb[24].mxu0 %v6930_v54  ;;  %3246 = vmatmul.mubr.bf16.vlgmr.msra.gmra.mrb[24].mxu1 %v6930_v54 }
 0x228   :  { %3204 = vmatprep.mubr.bf16.mxu0 %v6958_v14  ;;  %3255 = vmatprep.mubr.bf16.mxu1 %v6958_v14 }
 0x229   :  { %3265 = vmatpush1.bf16.msra.mxu0 %v5589_v24 }
 0x22a   :  { %3266 = vmatprep.subr.bf16.mxu0 %v5594_v13 }
 0x22d   :  { %3267 = vmatpush1.bf16.msra.mxu0 %v5592_v16  ;;  %v3348_v16 = vrot.slane %v3318_v0, %v324_v40 }
 0x22e   :  { %3268 = vmatprep.subr.bf16.mxu0 %v5597_v17  ;;  %v3352_v17 = vrot.slane %v3318_v0, %v328_v42 }
 0x22f   :  { %3205 = vmatmul.mubr.bf16.gmra.mrb[28].mxu0 %v6972_v8  ;;  %3256 = vmatmul.mubr.bf16.gmra.mrb[28].mxu1 %v6972_v8 }
 0x230   :  { %3296 = vmatprep.mubr.bf16.mxu0 %v6932_v45  ;;  %3534 = vmatprep.mubr.bf16.mxu1 %v5744_v52  ;;  %v5606_v45 = vld [vmem:[%s7677_s3 + $0x1b4] ss:$40 sps:$4 sm:$0xff]  }
 0x231   :  { %3269 = vmatpush1.bf16.msra.mxu0 %v5595_v39 }
 0x232   :  { %3270 = vmatprep.subr.bf16.mxu0 %v5600_v19 }
 0x235   :  { %3271 = vmatpush1.bf16.msra.mxu0 %v5598_v38 }
 0x236   :  { %3272 = vmatprep.subr.bf16.mxu0 %v5603_v20 }
 0x239   :  { %3273 = vmatpush1.bf16.msra.mxu0 %v5601_v21 }
 0x23a   :  { %3274 = vmatprep.subr.bf16.mxu0 %v5606_v45 }
 0x23d   :  { %3275 = vmatpush1.bf16.msra.mxu0 %v5604_v22 }
 0x23e   :  { %3276 = vmatprep.subr.bf16.mxu0 %v5609_v23 }
 0x241   :  { %3277 = vmatpush1.bf16.msra.mxu0 %v5607_v25 }
 0x242   :  { %3278 = vmatprep.subr.bf16.mxu0 %v5612_v26 }
 0x245   :  { %3279 = vmatpush1.bf16.msra.mxu0 %v5610_v27 }
 0x246   :  { %3280 = vmatprep.subr.bf16.mxu0 %v5615_v47 }
 0x249   :  { %3281 = vmatpush1.bf16.msra.mxu0 %v5613_v28  ;;  %v7348_v28 = vld [vmem:[%s7680_s6] sm:$0x1] }
 0x24a   :  { %3282 = vmatprep.subr.bf16.mxu0 %v5618_v29 }
 0x24d   :  { %3283 = vmatpush1.bf16.msra.mxu0 %v5616_v30 }
 0x24e   :  { %3284 = vmatprep.subr.bf16.mxu0 %v5621_v31 }
 0x251   :  { %3285 = vmatpush1.bf16.msra.mxu0 %v5619_v32  ;;  %v5642_v32 = vld [vmem:[%s7681_s7 + $0xc0] sm:$0xff]  }
 0x252   :  { %3286 = vmatprep.subr.bf16.mxu0 %v5624_v33  ;;  %v5644_v33 = vld [vmem:[%s7681_s7 + $0x80] sm:$0xff]  }
 0x255   :  { %3287 = vmatpush1.bf16.msra.mxu0 %v5622_v34  ;;  %v5646_v34 = vld [vmem:[%s7681_s7 + $0xc8] sm:$0xff]  }
 0x256   :  { %3288 = vmatprep.subr.bf16.mxu0 %v5627_v43  ;;  %v5648_v43 = vld [vmem:[%s7681_s7 + $0x88] sm:$0xff]  }
 0x259   :  { %3289 = vmatpush1.bf16.msra.mxu0 %v5625_v44  ;;  %v5650_v44 = vld [vmem:[%s7681_s7 + $0xd0] sm:$0xff]  }
 0x25a   :  { %3290 = vmatprep.subr.bf16.mxu0 %v5630_v46  ;;  %v5652_v46 = vld [vmem:[%s7681_s7 + $0x90] sm:$0xff]  }
 0x25d   :  { %3291 = vmatpush1.bf16.msra.mxu0 %v5628_v49  ;;  %v5654_v49 = vld [vmem:[%s7681_s7 + $0xd8] sm:$0xff]  }
 0x25e   :  { %3292 = vmatprep.subr.bf16.mxu0 %v5633_v51  ;;  %v5656_v51 = vld [vmem:[%s7681_s7 + $0x98] sm:$0xff]  }
 0x261   :  { %3293 = vmatpush1.bf16.msra.mxu0 %v5631_v53  ;;  %v5658_v53 = vld [vmem:[%s7681_s7 + $0xe0] sm:$0xff]  }
 0x262   :  { %3294 = vmatprep.subr.bf16.mxu0 %v5636_v10  ;;  %v5660_v10 = vld [vmem:[%s7681_s7 + $0xa0] sm:$0xff]  }
 0x265   :  { %3295 = vmatpush1.bf16.msra.mxu0 %v5634_v63 }
 0x266   :  { %5232 = vmatprep.subr.bf16.mxu0 %v5642_v32 }
 0x268   :  { %3297 = vmatmul.mubr.bf16.vlgmr.msra.gmra.mrb[32].mxu0 %v6930_v54  ;;  %v7257_v54 = vrot.slane %v3318_v0, %v336_v59 }
 0x269   :  { %3306 = vmatprep.mubr.bf16.mxu0 %v6958_v14  ;;  %v7261_v14 = vrot.slane %v3318_v0, %v340_v57  ;;  %5233 = vmatpush3.bf16.msra.mxu0 %v5644_v33 }
 0x26a   :  { %vm3392_vm2 = vcmp.eq.f32.partialorder %v7242_v15, %v7257_v54  ;;  %vm3402_vm3 = vcmp.eq.f32.partialorder %v7267_v55, %v7257_v54  ;;  %5234 = vmatprep.subr.bf16.mxu0 %v5646_v34 }
 0x26b   :  { %vm7283_vm6 = vmpackc.low %vm3402_vm3, %vm3392_vm2  ;;  %vm3393_vm9 = vcmp.eq.f32.partialorder %v7242_v15, %v7261_v14  ;;  %vm3403_vm10 = vcmp.eq.f32.partialorder %v7267_v55, %v7261_v14 }
 0x26c   :  { %vm7311_vm2 = vmpackc.low %vm3403_vm10, %vm3393_vm9  ;;  %vm3397_vm9 = vcmp.eq.f32.partialorder %v7267_v55, %v3340_v3 }
 0x26d   :  { %vm7315_vm3 = vmpackc.low %vm3406_vm13, %vm3396_vm12  ;;  %vm3407_vm13 = vcmp.eq.f32.partialorder %v7325_v4, %v3340_v3  ;;  %5235 = vmatpush3.bf16.msra.mxu0 %v5648_v43 }
 0x26e   :  { %vm5084_vm10 = vmpackc.low %vm3398_vm7, %vm3388_vm5  ;;  %vm3400_vm5 = vcmp.eq.f32.partialorder %v7267_v55, %v3352_v17  ;;  %vm3409_vm7 = vcmp.eq.f32.partialorder %v7325_v4, %v3348_v16  ;;  %5236 = vmatprep.subr.bf16.mxu0 %v5650_v44  ;;  %v5641_v44 = vld [vmem:[%s7681_s7 + $0x50] sm:$0xff]  }
 0x26f   :  { %vm5087_vm12 = vmpackc.low %vm3397_vm9, %vm3387_vm8  ;;  %vm3410_vm8 = vcmp.eq.f32.partialorder %v7325_v4, %v3352_v17 }
 0x270   :  { %3307 = vmatmul.mubr.bf16.gmra.mrb[36].mxu0 %v6972_v8  ;;  %v7270_v8 = vrot.slane %v3319_v58, %v6823_v37 }
 0x271   :  { %5237 = vmatpush3.bf16.msra.mxu0 %v5652_v46  ;;  %v5643_v46 = vld [vmem:[%s7681_s7 + $0x10] sm:$0xff]  }
 0x272   :  { %vm3395_vm15 = vcmp.eq.f32.partialorder %v7242_v15, %v7270_v8  ;;  %vm3405_vm0 = vcmp.eq.f32.partialorder %v7267_v55, %v7270_v8  ;;  %5238 = vmatprep.subr.bf16.mxu0 %v5654_v49  ;;  %v5647_v49 = vld [vmem:[%s7681_s7 + $0x18] sm:$0xff]  }
 0x273   :  { %vm7319_vm4 = vmpackc.low %vm3405_vm0, %vm3395_vm15  ;;  %vm3408_vm15 = vcmp.eq.f32.partialorder %v7325_v4, %v3344_v56  ;;  %vm3390_vm0 = vcmp.eq.f32.partialorder %v7242_v15, %v3352_v17 }
 0x274   :  { %vm5092_vm9 = vmpackc.low %vm3400_vm5, %vm3390_vm0  ;;  %vm3411_vm0 = vcmp.eq.f32.partialorder %v7325_v4, %v7249_v1  ;;  %vm3413_vm5 = vcmp.eq.f32.partialorder %v7325_v4, %v7261_v14 }
 0x275   :  { %5239 = vmatpush3.bf16.msra.mxu0 %v5656_v51  ;;  %v5649_v51 = vld [vmem:[%s7681_s7 + $0x60] sm:$0xff]  }
 0x276   :  { %5240 = vmatprep.subr.bf16.mxu0 %v5658_v53  ;;  %v5651_v53 = vld [vmem:[%s7681_s7 + $0x20] sm:$0xff]  }
 0x279   :  { %5241 = vmatpush3.bf16.msra.mxu0 %v5660_v10  ;;  %v5653_v10 = vld [vmem:[%s7681_s7 + $0x68] sm:$0xff]  }
 0x27a   :  { %5242 = vmatprep.subr.bf16.mxu0 %v5662_v35  ;;  %v5683_v35 = vld [vmem:[%s7681_s7 + $0x120] sm:$0xff]  }
 0x27d   :  { %5243 = vmatpush3.bf16.msra.mxu0 %v5664_v61  ;;  %v5684_v61 = vld [vmem:[%s7681_s7 + $0x190] sm:$0xff]  }
 0x2ba   :  { %v3094_v5 = vpop.f32.mrb[16].mxu0  ;;  %v3145_v50 = vpop.f32.mrb[16].mxu1 }
 0x2bb   :  { %v3096_v48 = vpop.f32.mrb[17].mxu0  ;;  %v3147_v6 = vpop.f32.mrb[17].mxu1 }
 0x2bc   :  { %v3098_v7 = vpop.f32.mrb[18].mxu0  ;;  %v3149_v9 = vpop.f32.mrb[18].mxu1 }
 0x2bd   :  { %v5088_v11 = vpack.c.bf16 %v3098_v7, %v3094_v5  ;;  %v5096_v41 = vpack.c.bf16 %v3149_v9, %v3145_v50  ;;  %v3100_v12 = vpop.f32.mrb[19].mxu0  ;;  %v3151_v37 = vpop.f32.mrb[19].mxu1 }
 0x2be   :  { %v5085_v24 = vpack.c.bf16 %v3100_v12, %v3096_v48  ;;  %v5093_v13 = vpack.c.bf16 %v3151_v37, %v3147_v6 }
 0x2c0   :  { %5086 = vmatprep.subr.msk.bf16.mxu1 %vm5084_vm10, %v5085_v24  ;;  %vm3389_vm10 = vcmp.eq.f32.partialorder %v7242_v15, %v3348_v16 }
 0x2c1   :  { %5089 = vmatpush1.bf16.msk.msra.mxu1 %vm5087_vm12, %v5088_v11  ;;  %vm3399_vm12 = vcmp.eq.f32.partialorder %v7267_v55, %v3348_v16 }
 0x2c2   :  { %v3104_v39 = vpop.f32.mrb[20].mxu0  ;;  %v3155_v19 = vpop.f32.mrb[20].mxu1 }
 0x2c3   :  { %v3437_v38 = vsel %vm3407_vm13, %v3104_v39, 0.0  ;;  %v3106_v20 = vpop.f32.mrb[21].mxu0  ;;  %v3157_v21 = vpop.f32.mrb[21].mxu1  ;;  %v3439_v27 = vsel %vm3409_vm7, %v3155_v19, 0.0  ;;  %vm3468_vm13 = vcmask 195584   ;;  %vm3412_vm7 = vcmp.eq.f32.partialorder %v7325_v4, %v7257_v54 }
 0x2c4   :  { %v3457_v45 = vpack.c.bf16 %v3437_v38, %v3437_v38  ;;  %v3438_v22 = vsel %vm3408_vm15, %v3106_v20, 0.0  ;;  %v3108_v23 = vpop.f32.mrb[22].mxu0  ;;  %v3159_v25 = vpop.f32.mrb[22].mxu1  ;;  %v3440_v47 = vsel %vm3410_vm8, %v3157_v21, 0.0  ;;  %vm5095_vm15 = vmpackc.low %vm3399_vm12, %vm3389_vm10  ;;  %v3459_v29 = vpack.c.bf16 %v3439_v27, %v3439_v27  ;;  %v5665_v20 = vld [vmem:[%s7681_s7 + $0xf0] sm:$0xff]  }
 0x2c5   :  { %v3458_v40 = vpack.c.bf16 %v3438_v22, %v3438_v22  ;;  %v3109_v36 = vpop.f32.mrb[23].mxu0  ;;  %v3160_v42 = vpop.f32.mrb[23].mxu1  ;;  %v3460_v30 = vpack.c.bf16 %v3440_v47, %v3440_v47  ;;  %v5667_v21 = vld [vmem:[%s7681_s7 + $0xb0] sm:$0xff]   ;;  %5244 = vmatprep.subr.bf16.mxu0 %v5665_v20  ;;  %v5671_v22 = vld [vmem:[%s7681_s7 + $0xb8] sm:$0xff]   ;;  %v5674_v23 = vld [vmem:[%s7681_s7 + $0x1c0] sm:$0xff]  }
 0x2c6   :  { %v3473_v26 = vsel %vm1621_vm1, %v3457_v45, 0  ;;  %v3479_v31 = vsel %vm1621_vm1, %v3459_v29, 0  ;;  %5245 = vmatpush3.bf16.msra.mxu0 %v5667_v21  ;;  %v5669_v45 = vld [vmem:[%s7681_s7 + $0xf8] sm:$0xff]   ;;  %v5685_v20 = vld [vmem:[%s7681_s7 + $0x168] sm:$0xff]  }
 0x2c7   :  { %5090 = vmatprep.subr.msk.bf16.mxu1 %vm1621_vm1, %v3458_v40  ;;  %5246 = vmatprep.subr.bf16.mxu0 %v5669_v45  ;;  %v5686_v21 = vld [vmem:[%s7681_s7 + $0x1d8] sm:$0xff]   ;;  %v5687_v45 = vld [vmem:[%s7681_s7 + $0x128] sm:$0xff]  }
 0x2c8   :  { %3505 = vmatpush1.bf16.msra.mxu1 %v3473_v26 }
 0x2c9   :  { %5094 = vmatprep.subr.msk.bf16.mxu1 %vm5092_vm9, %v5093_v13 }
 0x2ca   :  { %5247 = vmatpush3.bf16.msra.mxu0 %v5671_v22  ;;  %v5688_v22 = vld [vmem:[%s7681_s7 + $0x198] sm:$0xff]  }
 0x2cb   :  { %5091 = vmatmul.mubr.msk.bf16.vlgmr.msra.gmra.mrb[32].mxu1 %vm3468_vm13, %v7348_v28  ;;  %5276 = vmatprep.subr.bf16.mxu0 %v5674_v23  ;;  %v5689_v23 = vld [vmem:[%s7681_s7 + $0x170] sm:$0xff]  }
 0x2cc   :  { %5097 = vmatpush1.bf16.msk.msra.mxu1 %vm5095_vm15, %v5096_v41  ;;  %3575 = vmatprep.mubr.bf16.mxu1 %v5744_v52 }
 0x2cd   :  { %5098 = vmatprep.subr.msk.bf16.mxu1 %vm1621_vm1, %v3460_v30 }
 0x2d0   :  { %3546 = vmatpush1.bf16.msra.mxu1 %v3479_v31 }
 0x2d3   :  { %5099 = vmatmul.mubr.msk.bf16.vlgmr.msra.gmra.mrb[36].mxu1 %vm3468_vm13, %v7348_v28 }
 0x2d4   :  { %3616 = vmatprep.mubr.bf16.mxu1 %v5744_v52 }
 0x2fa   :  { %v3196_v63 = vpop.f32.mrb[24].mxu0  ;;  %v3247_v15 = vpop.f32.mrb[24].mxu1 }
 0x2fb   :  { %v3198_v0 = vpop.f32.mrb[25].mxu0  ;;  %v3249_v58 = vpop.f32.mrb[25].mxu1 }
 0x2fc   :  { %v3200_v55 = vpop.f32.mrb[26].mxu0  ;;  %v3251_v56 = vpop.f32.mrb[26].mxu1 }
 0x2fd   :  { %v5104_v3 = vpack.c.bf16 %v3200_v55, %v3196_v63  ;;  %v5112_v5 = vpack.c.bf16 %v3251_v56, %v3247_v15  ;;  %v3202_v50 = vpop.f32.mrb[27].mxu0  ;;  %v3253_v48 = vpop.f32.mrb[27].mxu1  ;;  %v5655_v63 = vld [vmem:[%s7681_s7 + $0x28] sm:$0xff]   ;;  %v5657_v15 = vld [vmem:[%s7681_s7 + $0x70] sm:$0xff]   ;;  %v5663_v55 = vld [vmem:[%s7681_s7 + $0x38] sm:$0xff]  }
 0x2fe   :  { %v5101_v6 = vpack.c.bf16 %v3202_v50, %v3198_v0  ;;  %v5109_v7 = vpack.c.bf16 %v3253_v48, %v3249_v58  ;;  %v5659_v0 = vld [vmem:[%s7681_s7 + $0x30] sm:$0xff]   ;;  %v5661_v58 = vld [vmem:[%s7681_s7 + $0x78] sm:$0xff]   ;;  %v5666_v56 = vld [vmem:[%s7681_s7 + $0x140] sm:$0xff]  }
 0x300   :  { %5102 = vmatprep.subr.msk.bf16.mxu1 %vm7283_vm6, %v5101_v6  ;;  %vm3414_vm6 = vcmp.eq.f32.partialorder %v7325_v4, %v7265_v18  ;;  %v5668_v6 = vld [vmem:[%s7681_s7 + $0x100] sm:$0xff]  }
 0x301   :  { %5105 = vmatpush1.bf16.msk.msra.mxu1 %vm7295_vm11, %v5104_v3  ;;  %vm3415_vm11 = vcmp.eq.f32.partialorder %v7325_v4, %v7270_v8  ;;  %v5638_v8 = vld [vmem:[%s7681_s7] sm:$0xff]  }
 0x302   :  { %v3206_v9 = vpop.f32.mrb[28].mxu0  ;;  %v3257_v11 = vpop.f32.mrb[28].mxu1 }
 0x303   :  { %v3441_v41 = vsel %vm3411_vm0, %v3206_v9, 0.0  ;;  %v3443_v12 = vsel %vm3413_vm5, %v3257_v11, 0.0  ;;  %v3208_v37 = vpop.f32.mrb[29].mxu0  ;;  %v3259_v24 = vpop.f32.mrb[29].mxu1  ;;  %v5670_v11 = vld [vmem:[%s7681_s7 + $0x148] sm:$0xff]  }
 0x304   :  { %v3461_v57 = vpack.c.bf16 %v3441_v41, %v3441_v41  ;;  %v3442_v59 = vsel %vm3412_vm7, %v3208_v37, 0.0  ;;  %v3444_v13 = vsel %vm3414_vm6, %v3259_v24, 0.0  ;;  %v3210_v16 = vpop.f32.mrb[30].mxu0  ;;  %v3261_v17 = vpop.f32.mrb[30].mxu1  ;;  %v3463_v54 = vpack.c.bf16 %v3443_v12, %v3443_v12  ;;  %v5672_v41 = vld [vmem:[%s7681_s7 + $0x108] sm:$0xff]   ;;  %v5673_v12 = vld [vmem:[%s7681_s7 + $0x150] sm:$0xff]  }
 0x305   :  { %v3462_v1 = vpack.c.bf16 %v3442_v59, %v3442_v59  ;;  %v3211_v39 = vpop.f32.mrb[31].mxu0  ;;  %v3262_v19 = vpop.f32.mrb[31].mxu1  ;;  %v3464_v38 = vpack.c.bf16 %v3444_v13, %v3444_v13  ;;  %v5675_v13 = vld [vmem:[%s7681_s7 + $0x110] sm:$0xff]   ;;  %v5676_v16 = vld [vmem:[%s7681_s7 + $0x180] sm:$0xff]  }
 0x306   :  { %v3485_v14 = vsel %vm1621_vm1, %v3461_v57, 0  ;;  %v3491_v18 = vsel %vm1621_vm1, %v3463_v54, 0  ;;  %v5678_v39 = vld [vmem:[%s7681_s7 + $0x1c8] sm:$0xff]  }
 0x307   :  { %5106 = vmatprep.subr.msk.bf16.mxu1 %vm1621_vm1, %v3462_v1  ;;  %v5677_v1 = vld [vmem:[%s7681_s7 + $0x158] sm:$0xff]   ;;  %v5680_v54 = vld [vmem:[%s7681_s7 + $0x188] sm:$0xff]  }
 0x308   :  { %3587 = vmatpush1.bf16.msra.mxu1 %v3485_v14  ;;  %v5679_v14 = vld [vmem:[%s7681_s7 + $0x118] sm:$0xff]  }
 0x309   :  { %5110 = vmatprep.subr.msk.bf16.mxu1 %vm7303_vm14, %v5109_v7  ;;  %vm3416_vm14 = vcmp.eq.f32.partialorder %v7325_v4, %v7273_v60  ;;  %v5639_v60 = vld [vmem:[%s7681_s7 + $0x48] sm:$0xff]  }
 0x30a   :  { %v5640_v4 = vld [vmem:[%s7681_s7 + $0x8] sm:$0xff]  }
 0x30b   :  { %5107 = vmatmul.mubr.msk.bf16.vlgmr.msra.gmra.mrb[40].mxu1 %vm3468_vm13, %v7348_v28 }
 0x30c   :  { %5113 = vmatpush1.bf16.msk.msra.mxu1 %vm7311_vm2, %v5112_v5  ;;  %3657 = vmatprep.mubr.bf16.mxu1 %v5744_v52  ;;  %vm5746_vm2 = vmmov 0  }
 0x30d   :  { %5114 = vmatprep.subr.msk.bf16.mxu1 %vm1621_vm1, %v3464_v38  ;;  %v5681_v38 = vld [vmem:[%s7681_s7 + $0x160] sm:$0xff]  }
 0x310   :  { %3628 = vmatpush1.bf16.msra.mxu1 %v3491_v18  ;;  %v5682_v18 = vld [vmem:[%s7681_s7 + $0x1d0] sm:$0xff]  }
 0x313   :  { %5115 = vmatmul.mubr.msk.bf16.vlgmr.msra.gmra.mrb[44].mxu1 %vm3468_vm13, %v7348_v28 }
 0x314   :  { %3698 = vmatprep.mubr.bf16.mxu1 %v5744_v52 }
 0x33b   :  { %v3298_v25 = vpop.f32.mrb[32].mxu0 }
 0x33c   :  { %v3300_v40 = vpop.f32.mrb[33].mxu0 }
 0x33d   :  { %v3302_v36 = vpop.f32.mrb[34].mxu0 }
 0x33e   :  { %v5120_v42 = vpack.c.bf16 %v3302_v36, %v3298_v25  ;;  %v3304_v26 = vpop.f32.mrb[35].mxu0  ;;  %v5690_v25 = vld [vmem:[%s7681_s7 + $0x1e0] sm:$0xff]  }
 0x33f   :  { %v5117_v27 = vpack.c.bf16 %v3304_v26, %v3300_v40  ;;  %v5691_v40 = vld [vmem:[%s7681_s7 + $0x130] sm:$0xff]   ;;  %v5692_v36 = vld [vmem:[%s7681_s7 + $0x1a0] sm:$0xff]   ;;  %v5694_v26 = vld [vmem:[%s7681_s7 + $0x1e8] sm:$0xff]  }
 0x341   :  { %5118 = vmatprep.subr.msk.bf16.mxu1 %vm7315_vm3, %v5117_v27  ;;  %v5695_v27 = vld [vmem:[%s7681_s7 + $0x138] sm:$0xff]  }
 0x342   :  { %5121 = vmatpush1.bf16.msk.msra.mxu1 %vm7319_vm4, %v5120_v42  ;;  %v5693_v42 = vld [vmem:[%s7681_s7 + $0x178] sm:$0xff]  }
 0x343   :  { %v3308_v47 = vpop.f32.mrb[36].mxu0 }
 0x344   :  { %v3445_v29 = vsel %vm3415_vm11, %v3308_v47, 0.0  ;;  %v3310_v30 = vpop.f32.mrb[37].mxu0  ;;  %v5696_v47 = vld [vmem:[%s7681_s7 + $0x1a8] sm:$0xff]  }
 0x345   :  { %v3465_v31 = vpack.c.bf16 %v3445_v29, %v3445_v29  ;;  %v3446_v32 = vsel %vm3416_vm14, %v3310_v30, 0.0  ;;  %v3312_v33 = vpop.f32.mrb[38].mxu0  ;;  %v5697_v29 = vld [vmem:[%s7681_s7 + $0x1f0] sm:$0xff]  }
 0x346   :  { %v3466_v34 = vpack.c.bf16 %v3446_v32, %v3446_v32  ;;  %v3313_v43 = vpop.f32.mrb[39].mxu0  ;;  %v5698_v30 = vld [vmem:[%s7681_s7 + $0x1b0] sm:$0xff]   ;;  %v5700_v32 = vld [vmem:[%s7681_s7 + $0x1b8] sm:$0xff]  }
 0x347   :  { %v3497_v2 = vsel %vm1621_vm1, %v3465_v31, 0  ;;  %v5699_v31 = vld [vmem:[%s7681_s7 + $0x1f8] sm:$0xff]  }
 0x348   :  { %5122 = vmatprep.subr.msk.bf16.mxu1 %vm1621_vm1, %v3466_v34  ;;  %vm4324_vm1 = vcmask 392192  }
 0x349   :  { %3669 = vmatpush1.bf16.msra.mxu1 %v3497_v2 }
 0x34a   :  { %5210 = vmatprep.subr.bf16.mxu1 %v5637_v62 }
 0x34c   :  { %5123 = vmatmul.mubr.msk.bf16.vlgmr.msra.gmra.mrb[48].mxu1 %vm3468_vm13, %v7348_v28  ;;  %v5645_v28 = vld [vmem:[%s7681_s7 + $0x58] sm:$0xff]  }
 0x34d   :  { %5211 = vmatpush3.bf16.msra.mxu1 %v5638_v8  ;;  %v5701_v8 = vld [vmem:[%s7681_s7 + $0x200] sm:$0xff]  }
 0x34e   :  { %5212 = vmatprep.subr.bf16.mxu1 %v5639_v60 }
 0x351   :  { %5213 = vmatpush3.bf16.msra.mxu1 %v5640_v4  ;;  %v5702_v4 = vld [vmem:[%s7681_s7 + $0x208] sm:$0xff]  }
 0x352   :  { %5214 = vmatprep.subr.bf16.mxu1 %v5641_v44 }
 0x355   :  { %5215 = vmatpush3.bf16.msra.mxu1 %v5643_v46 }
 0x356   :  { %5216 = vmatprep.subr.bf16.mxu1 %v5645_v28 }
 0x359   :  { %5217 = vmatpush3.bf16.msra.mxu1 %v5647_v49 }
 0x35a   :  { %5218 = vmatprep.subr.bf16.mxu1 %v5649_v51  ;;  %v5703_v51 = vld [vmem:[%s7681_s7 + $0x210] sm:$0xff]  }
 0x35d   :  { %5219 = vmatpush3.bf16.msra.mxu1 %v5651_v53 }
 0x35e   :  { %5220 = vmatprep.subr.bf16.mxu1 %v5653_v10 }
 0x361   :  { %5221 = vmatpush3.bf16.msra.mxu1 %v5655_v63  ;;  %v5704_v63 = vld [vmem:[%s7681_s7 + $0x218] sm:$0xff]  }
 0x362   :  { %5222 = vmatprep.subr.bf16.mxu1 %v5657_v15  ;;  %v5705_v15 = vld [vmem:[%s7681_s7 + $0x220] sm:$0xff]  }
 0x365   :  { %5223 = vmatpush3.bf16.msra.mxu1 %v5659_v0  ;;  %v5706_v0 = vld [vmem:[%s7681_s7 + $0x228] sm:$0xff]  }
 0x366   :  { %5224 = vmatprep.subr.bf16.mxu1 %v5661_v58  ;;  %v5707_v58 = vld [vmem:[%s7681_s7 + $0x230] sm:$0xff]  }
 0x369   :  { %5225 = vmatpush3.bf16.msra.mxu1 %v5663_v55  ;;  %v5708_v55 = vld [vmem:[%s7681_s7 + $0x238] sm:$0xff]  }
 0x36a   :  { %5254 = vmatprep.subr.bf16.mxu1 %v5666_v56  ;;  %v5709_v56 = vld [vmem:[%s7681_s7 + $0x240] sm:$0xff]  }
 0x39e   :  { %v3536_v3 = vpop.f32.mrb[32].mxu1 }
 0x39f   :  { %v3707_v5 = vpack.c.bf16 %v3536_v3, %v3536_v3  ;;  %v3538_v50 = vpop.f32.mrb[33].mxu1  ;;  %v5710_v3 = vld [vmem:[%s7681_s7 + $0x248] sm:$0xff]  }
 0x3a0   :  { %v3708_v48 = vpack.c.bf16 %v3538_v50, %v3538_v50  ;;  %v3540_v7 = vpop.f32.mrb[34].mxu1 }
 0x3a1   :  { %v3541_v9 = vpop.f32.mrb[35].mxu1 }
 0x3a2   :  { %4360 = vmatprep.mubr.bf16.mxu1 %v3708_v48 }
 0x3a3   :  { %4361 = vmatmul.mubr.bf16.vlgmr.msra.gmra.mrb[52].mxu1 %v3707_v5  ;;  %v5711_v5 = vld [vmem:[%s7681_s7 + $0x250] sm:$0xff]  }
 0x3a4   :  { %5255 = vmatpush3.bf16.msra.mxu1 %v5668_v6 }
 0x3a5   :  { %5256 = vmatprep.subr.bf16.mxu1 %v5670_v11 }
 0x3a6   :  { %v3577_v37 = vpop.f32.mrb[36].mxu1 }
 0x3a7   :  { %v3709_v24 = vpack.c.bf16 %v3577_v37, %v3577_v37  ;;  %v3579_v57 = vpop.f32.mrb[37].mxu1  ;;  %v5714_v37 = vld [vmem:[%s7683_s9 + $0x10] sm:$0xff]  }
 0x3a8   :  { %v3710_v59 = vpack.c.bf16 %v3579_v57, %v3579_v57  ;;  %5257 = vmatpush3.bf16.msra.mxu1 %v5672_v41  ;;  %v3581_v17 = vpop.f32.mrb[38].mxu1  ;;  %v5712_v41 = vld [vmem:[%s7683_s9] sm:$0xff]  }
 0x3a9   :  { %5258 = vmatprep.subr.bf16.mxu1 %v5673_v12  ;;  %v3582_v19 = vpop.f32.mrb[39].mxu1  ;;  %v5745_v12 = vmov 0.0   ;;  %v5716_v57 = vld [vmem:[%s7683_s9 + $0x20] sm:$0xff]  }
 0x3aa   :  { %4400 = vmatprep.mubr.bf16.mxu0 %v3710_v59  ;;  %v5717_v59 = vld [vmem:[%s7683_s9 + $0x28] sm:$0xff]  }
 0x3ab   :  { %4401 = vmatmul.mubr.bf16.vlgmr.msra.gmra.mrb[40].mxu0 %v3709_v24  ;;  %v5715_v24 = vld [vmem:[%s7683_s9 + $0x18] sm:$0xff]  }
 0x3ac   :  { %5259 = vmatpush3.bf16.msra.mxu1 %v5675_v13  ;;  %5277 = vmatpush3.bf16.msra.mxu0 %v5676_v16  ;;  %v5718_v13 = vld [vmem:[%s7683_s9 + $0x30] sm:$0xff]  }
 0x3ad   :  { %5260 = vmatprep.subr.bf16.mxu1 %v5677_v1  ;;  %5278 = vmatprep.subr.bf16.mxu0 %v5678_v39 }
 0x3b0   :  { %5261 = vmatpush3.bf16.msra.mxu1 %v5679_v14  ;;  %5279 = vmatpush3.bf16.msra.mxu0 %v5680_v54  ;;  %v5719_v14 = vld [vmem:[%s7683_s9 + $0x38] sm:$0xff]   ;;  %v5124_v54 = vld [vmem:[%s7682_s8] ss:$0 sm:$0xff] }
 0x3b1   :  { %5262 = vmatprep.subr.bf16.mxu1 %v5681_v38  ;;  %5280 = vmatprep.subr.bf16.mxu0 %v5682_v18 }
 0x3b4   :  { %5263 = vmatpush3.bf16.msra.mxu1 %v5683_v35  ;;  %5281 = vmatpush3.bf16.msra.mxu0 %v5684_v61 }
 0x3b5   :  { %5264 = vmatprep.subr.bf16.mxu1 %v5685_v20  ;;  %5282 = vmatprep.subr.bf16.mxu0 %v5686_v21 }
 0x3b8   :  { %5265 = vmatpush3.bf16.msra.mxu1 %v5687_v45  ;;  %5283 = vmatpush3.bf16.msra.mxu0 %v5688_v22 }
 0x3b9   :  { %5266 = vmatprep.subr.bf16.mxu1 %v5689_v23  ;;  %5284 = vmatprep.subr.bf16.mxu0 %v5690_v25 }
 0x3bc   :  { %5267 = vmatpush3.bf16.msra.mxu1 %v5691_v40  ;;  %5285 = vmatpush3.bf16.msra.mxu0 %v5692_v36 }
 0x3bd   :  { %5268 = vmatprep.subr.bf16.mxu1 %v5693_v42  ;;  %5286 = vmatprep.subr.bf16.mxu0 %v5694_v26 }
 0x3c0   :  { %5269 = vmatpush3.bf16.msra.mxu1 %v5695_v27  ;;  %5287 = vmatpush3.bf16.msra.mxu0 %v5696_v47 }
 0x3c1   :  { %5288 = vmatprep.subr.bf16.mxu0 %v5697_v29  ;;  %4488 = vmatprep.subr.bf16.mxu1 %v5744_v52 }
 0x3c4   :  { %5289 = vmatpush3.bf16.msra.mxu0 %v5698_v30 }
 0x3c5   :  { %5290 = vmatprep.subr.bf16.mxu0 %v5699_v31 }
 0x3c8   :  { %5291 = vmatpush3.bf16.msra.mxu0 %v5700_v32 }
 0x3c9   :  { %5307 = vmatprep.subr.bf16.mxu0 %v5745_v12 }
 0x3de   :  { %v3618_v33 = vpop.f32.mrb[40].mxu1 }
 0x3df   :  { %v3711_v34 = vpack.c.bf16 %v3618_v33, %v3618_v33  ;;  %v3620_v43 = vpop.f32.mrb[41].mxu1 }
 0x3e0   :  { %v3712_v62 = vpack.c.bf16 %v3620_v43, %v3620_v43  ;;  %v3622_v2 = vpop.f32.mrb[42].mxu1 }
 0x3e1   :  { %v3623_v60 = vpop.f32.mrb[43].mxu1 }
 0x3e2   :  { %4440 = vmatprep.mubr.bf16.mxu1 %v3712_v62  ;;  %v5201_v60 = vld [vmem:[%s7684_s10] ss:$0 sm:$0xff] }
 0x3e3   :  { %4441 = vmatmul.mubr.bf16.vlgmr.msra.gmra.mrb[56].mxu1 %v3711_v34 }
 0x3e4   :  { %4489 = vmatpush1.bf16.msra.mxu1 %v5701_v8 }
 0x3e5   :  { %4490 = vmatprep.subr.bf16.mxu1 %v5744_v52 }
 0x3e6   :  { %v3659_v44 = vpop.f32.mrb[44].mxu1 }
 0x3e7   :  { %v3713_v46 = vpack.c.bf16 %v3659_v44, %v3659_v44  ;;  %v3661_v28 = vpop.f32.mrb[45].mxu1 }
 0x3e8   :  { %v3714_v49 = vpack.c.bf16 %v3661_v28, %v3661_v28  ;;  %4491 = vmatpush1.bf16.msra.mxu1 %v5702_v4  ;;  %v3663_v53 = vpop.f32.mrb[46].mxu1 }
 0x3e9   :  { %4492 = vmatprep.subr.bf16.mxu1 %v5744_v52  ;;  %v3664_v10 = vpop.f32.mrb[47].mxu1 }
 0x3ea   :  { %4480 = vmatprep.mubr.bf16.mxu0 %v3714_v49 }
 0x3eb   :  { %4481 = vmatmul.mubr.bf16.vlgmr.msra.gmra.mrb[44].mxu0 %v3713_v46 }
 0x3ec   :  { %4493 = vmatpush1.bf16.msra.mxu1 %v5703_v51  ;;  %5308 = vmatpush3.bf16.msra.mxu0 %v5712_v41 }
 0x3ed   :  { %4494 = vmatprep.subr.bf16.mxu1 %v5744_v52  ;;  %5309 = vmatprep.subr.bf16.mxu0 %v5745_v12 }
 0x3ee   :  { %5323 = vmatprep.mubr.msk.bf16.mxu0 %vm5746_vm2, %v5745_v12 }
 0x3f0   :  { %4495 = vmatpush1.bf16.msra.mxu1 %v5704_v63 }
 0x3f1   :  { %4496 = vmatprep.subr.bf16.mxu1 %v5744_v52 }
 0x3f4   :  { %4497 = vmatpush1.bf16.msra.mxu1 %v5705_v15 }
 0x3f5   :  { %4498 = vmatprep.subr.bf16.mxu1 %v5744_v52 }
 0x3f8   :  { %4499 = vmatpush1.bf16.msra.mxu1 %v5706_v0 }
 0x3f9   :  { %4500 = vmatprep.subr.bf16.mxu1 %v5744_v52 }
 0x3fc   :  { %4501 = vmatpush1.bf16.msra.mxu1 %v5707_v58 }
 0x3fd   :  { %4502 = vmatprep.subr.bf16.mxu1 %v5744_v52 }
 0x400   :  { %4503 = vmatpush1.bf16.msra.mxu1 %v5708_v55 }
 0x401   :  { %4504 = vmatprep.subr.bf16.mxu1 %v5744_v52 }
 0x404   :  { %4505 = vmatpush1.bf16.msra.mxu1 %v5709_v56 }
 0x405   :  { %4506 = vmatprep.subr.bf16.mxu1 %v5744_v52 }
 0x408   :  { %4507 = vmatpush1.bf16.msra.mxu1 %v5710_v3 }
 0x409   :  { %4508 = vmatprep.subr.bf16.mxu1 %v5744_v52  ;;  %v5713_v52 = vld [vmem:[%s7683_s9 + $0x8] sm:$0xff]  }
 0x40a   :  { %5310 = vmatpush3.bf16.msra.mxu0 %v5713_v52 }
 0x40b   :  { %5311 = vmatprep.subr.bf16.mxu0 %v5745_v12 }
 0x40c   :  { %4509 = vmatpush1.bf16.msra.mxu1 %v5711_v5 }
 0x40e   :  { %5312 = vmatpush3.bf16.msra.mxu0 %v5714_v37 }
 0x40f   :  { %5313 = vmatprep.subr.bf16.mxu0 %v5745_v12 }
 0x412   :  { %5314 = vmatpush3.bf16.msra.mxu0 %v5715_v24 }
 0x413   :  { %5315 = vmatprep.subr.bf16.mxu0 %v5745_v12 }
 0x416   :  { %5316 = vmatpush3.bf16.msra.mxu0 %v5716_v57 }
 0x417   :  { %5317 = vmatprep.subr.bf16.mxu0 %v5745_v12 }
 0x41a   :  { %5318 = vmatpush3.bf16.msra.mxu0 %v5717_v59 }
 0x41b   :  { %5319 = vmatprep.subr.bf16.mxu0 %v5745_v12 }
 0x41e   :  { %5320 = vmatpush3.bf16.msra.mxu0 %v5718_v13 }
 0x41f   :  { %v3700_v50 = vpop.f32.mrb[48].mxu1  ;;  %5321 = vmatprep.subr.bf16.mxu0 %v5745_v12 }
 0x420   :  { %v3702_v48 = vpop.f32.mrb[49].mxu1  ;;  %v3715_v9 = vpack.c.bf16 %v3700_v50, %v3700_v50 }
 0x421   :  { %v3716_v6 = vpack.c.bf16 %v3702_v48, %v3702_v48  ;;  %v3704_v7 = vpop.f32.mrb[50].mxu1 }
 0x422   :  { %v3705_v11 = vpop.f32.mrb[51].mxu1  ;;  %5322 = vmatpush3.bf16.msra.mxu0 %v5719_v14 }
 0x423   :  { %5200 = vmatprep.mubr.msk.bf16.mxu1 %vm4324_vm1, %v3716_v6 }
 0x424   :  { %4521 = vmatmul.mubr.bf16.vlgmr.msra.gmra.mrb[60].mxu1 %v3715_v9 }
 0x476   :  { %v5226_v16 = vpop.f32.mrb[52].mxu1 }
 0x477   :  { %v5227_v17 = vpop.f32.mrb[53].mxu1 }
 0x478   :  { %v5228_v1 = vadd.f32 %v5227_v17, %v5226_v16  ;;  %v5229_v39 = vpop.f32.mrb[54].mxu1 }
 0x479   :  { %v5230_v19 = vpop.f32.mrb[55].mxu1 }
 0x47a   :  { %v4363_v38 = vadd.f32 %v5228_v1, %v5124_v54 }
 0x47e   :  { %v5248_v18 = vpop.f32.mrb[40].mxu0 }
 0x47f   :  { %v5249_v35 = vpop.f32.mrb[41].mxu0 }
 0x480   :  { %v5250_v61 = vadd.f32 %v5249_v35, %v5248_v18  ;;  %v5251_v20 = vpop.f32.mrb[42].mxu0 }
 0x481   :  { %v5252_v21 = vpop.f32.mrb[43].mxu0 }
 0x482   :  { %v4403_v45 = vadd.f32 %v5250_v61, %v4363_v38 }
 0x4b6   :  { %v5270_v22 = vpop.f32.mrb[56].mxu1 }
 0x4b7   :  { %v5271_v23 = vpop.f32.mrb[57].mxu1 }
 0x4b8   :  { %v5272_v25 = vadd.f32 %v5271_v23, %v5270_v22  ;;  %v5273_v40 = vpop.f32.mrb[58].mxu1 }
 0x4b9   :  { %v5274_v36 = vpop.f32.mrb[59].mxu1 }
 0x4ba   :  { %v4443_v42 = vadd.f32 %v5272_v25, %v4403_v45 }
 0x4be   :  { %v5292_v26 = vpop.f32.mrb[44].mxu0 }
 0x4bf   :  { %v5293_v27 = vpop.f32.mrb[45].mxu0 }
 0x4c0   :  { %v5294_v47 = vadd.f32 %v5293_v27, %v5292_v26  ;;  %v5295_v29 = vpop.f32.mrb[46].mxu0 }
 0x4c1   :  { %v5296_v30 = vpop.f32.mrb[47].mxu0 }
 0x4c2   :  { %v4483_v31 = vadd.f32 %v5294_v47, %v4443_v42 }
 0x4f7   :  { %v4522_v32 = vpop.f32.mrb[60].mxu1 }
 0x4f8   :  { %v4523_v33 = vadd.f32 %v4522_v32, %v4483_v31  ;;  %v4524_v34 = vpop.f32.mrb[61].mxu1 }
 0x4f9   :  { %v4525_v43 = vpop.f32.mrb[62].mxu1 }
 0x4fa   :  { %v4528_v62 = vmax.f32 %v4523_v33, 0.0  ;;  %v4526_v2 = vpop.f32.mrb[63].mxu1 }
 0x4fc   :  { %v4529_v8 = vpack.c.bf16 %v4528_v62, %v4528_v62 }
 0x4fe   :  { %5324 = vmatmul.mubr.bf16.vlgmr.msra.gmra.mrb[48].mxu0 %v4529_v8 }
 0x5d1   :  { %v4635_v4 = vpop.f32.mrb[48].mxu0 }
 0x5d2   :  { %v4636_v44 = vadd.f32 %v5201_v60, %v4635_v4  ;;  %v5325_v46 = vpop.f32.mrb[49].mxu0 }
 0x5d3   :  { %v4638_v28 = vpop.f32.mrb[50].mxu0 }
 0x5d4   :  { %4641 = vst [vmem:[#allocation2] sm:$0x3] %v4636_v44  ;;  %v5326_v49 = vpop.f32.mrb[51].mxu0 }
 0x5d5   :  { %5731 = shalt.err (!%p5728_p4)
}
 0x5d6   :  { %s5732_s10 = scalar_lea.hbm %s7685_s11, 32 }
 0x5d7   :  { %p5733_p5 = scmp.ne.s32.totalorder %s7685_s11, %s5732_s10  ;;  %p5736_p6 = scmp.lt.u32.totalorder %s5732_s10, %s7685_s11 }
 0x5d9   :  { %p5738_p7 = pnand %p5736_p6, %p5733_p5 }
 0x5db   :  { %5741 = shalt.err (!%p5738_p7)
}
 0x5dc   :  { %4651 = dma.vmem_to_hbm [thread:$0]  %s4649_s27, 32, %s7685_s11, [#allocation3]  }
 0x5dd   :  { %5742 = dma.done.wait [#allocation3], 32  }
 0x5de   :  { %5743 = vsyncadd [#allocation3], 4294967264 }
 0x5df   :  { %4655 = vsyncpa [#allocation3], 1 }

</bundles_post_ra>
